<compile_context>
chip_gen: v7x
topology: tpu7x:2x2x1
jax: 0.10.0
libtpu: 0.0.40
codegen_flags: <defaults>
</compile_context>

<pallas_src>
import jax
import jax.numpy as jnp
from jax.experimental import pallas as pl
from jax.experimental.pallas import tpu as pltpu


def mlp_kernel(x_ref,
               w1_ref, b1_ref,
               w2_ref, b2_ref,
               w3_ref, b3_ref,
               w4_ref, b4_ref,
               w5_ref, b5_ref,
               w6_ref, b6_ref,
               o_ref):
    """One (TB, F) batch tile: 5x (Linear + ReLU) on MXU/VPU + lane-dense final layer."""

    def linear_relu(h_bf16, w_ref, b_ref):
        # bf16 x bf16 matmul on the MXU with f32 accumulation; bias + ReLU in f32 on VPU.
        acc = jnp.dot(h_bf16, w_ref[...], preferred_element_type=jnp.float32)
        return jnp.maximum(acc + b_ref[...], 0.0)

    h = x_ref[...]                                               # (TB, F) bf16
    # TODO(synk): K=8 first layer still costs a full (padded) MXU pass; negligible at F=8.
    h = linear_relu(h, w1_ref, b1_ref)                           # F    -> 256  (f32)
    h = linear_relu(h.astype(jnp.bfloat16), w2_ref, b2_ref)      # 256  -> 512
    h = linear_relu(h.astype(jnp.bfloat16), w3_ref, b3_ref)      # 512  -> 1024
    h = linear_relu(h.astype(jnp.bfloat16), w4_ref, b4_ref)      # 1024 -> 256
    h = linear_relu(h.astype(jnp.bfloat16), w5_ref, b5_ref)      # 256  -> 128  (f32)

    # Final 128 -> 1 layer computed transposed: (1,128) . (TB,128)^T -> (1, TB) so the
    # output block is lane-dense (width TB) instead of a lane-width-1 (TB,1) column.
    o = jax.lax.dot_general(
        w6_ref[...], h.astype(jnp.bfloat16),
        dimension_numbers=(((1,), (1,)), ((), ())),
        preferred_element_type=jnp.float32) + b6_ref[...]        # (1, TB) f32
    o_ref[...] = o.astype(o_ref.dtype)


def _choose_tb(batch):
    """Batch-tile heuristic: large enough to amortize per-step overhead and fill the
    256-row MXU on v6e/v7x, capped at 512 (fits v5e's 16 MiB default scoped VMEM), and
    preferring >= 2 tiles so v7x's two TensorCores both get work."""
    b_pad = pl.cdiv(batch, 128) * 128
    tb = min(512, b_pad)
    if b_pad >= 256 and b_pad // tb < 2:
        tb = max(128, (b_pad // 2) // 128 * 128)
    return tb


def prepare_params(params):
    """One-time prep: bf16 (in, out) weights, f32 (1, out) biases, final weight as a
    (1, 128) row. Do this once at init, NOT per forward call."""
    flat = []
    n = len(params)
    for li, (w, b) in enumerate(params):
        if li < n - 1:
            w_arg = w.astype(jnp.bfloat16)                       # (in, out) bf16
            b_arg = b.reshape(1, -1).astype(jnp.float32)         # (1, out)  f32
        else:
            w_arg = w.astype(jnp.bfloat16).reshape(1, -1)        # (1, 128) bf16 row
            b_arg = b.reshape(1, 1).astype(jnp.float32)          # (1, 1)   f32
        flat.extend([w_arg, b_arg])
    return tuple(flat)


def multiple_regression_forward(x, flat_params, *, tb=None, vmem_limit_bytes=None):
    """x: (B, num_features) f32. flat_params: output of prepare_params()."""
    B, F = x.shape
    if tb is None:
        tb = _choose_tb(B)
    num_tiles = pl.cdiv(B, tb)
    rows = num_tiles * tb

    # Only the tiny (B, F) input is cast per call; Pallas masks the partial last block.
    x_bf16 = x.astype(jnp.bfloat16)

    # Weights/biases resident in VMEM across the whole grid (constant index_map).
    flat_specs = [pl.BlockSpec(a.shape, lambda i: (0, 0)) for a in flat_params]
    in_specs = [pl.BlockSpec((tb, F), lambda i: (i, 0))] + flat_specs
    # Lane-dense output: one (1, tb) row per tile; leading grid dim squeezed.
    out_specs = pl.BlockSpec((None, 1, tb), lambda i: (i, 0, 0))

    dims = [F, 256, 512, 1024, 256, 128, 1]
    flops = 2 * rows * sum(dims[i] * dims[i + 1] for i in range(len(dims) - 1))
    bytes_accessed = (x_bf16.size * x_bf16.dtype.itemsize
                      + sum(a.size * a.dtype.itemsize for a in flat_params)
                      + rows * 4)

    # v5e's default scoped VMEM is 16 MiB; only needs raising for very large tiles.
    if vmem_limit_bytes is None and tb >= 1024:
        vmem_limit_bytes = 64 * 1024 * 1024

    out = pl.pallas_call(
        mlp_kernel,
        out_shape=jax.ShapeDtypeStruct((num_tiles, 1, tb), jnp.float32),
        grid=(num_tiles,),
        in_specs=in_specs,
        out_specs=out_specs,
        compiler_params=pltpu.CompilerParams(
            dimension_semantics=("parallel",),
            vmem_limit_bytes=vmem_limit_bytes),
        cost_estimate=pl.CostEstimate(
            flops=flops, transcendentals=0, bytes_accessed=bytes_accessed),
    )(x_bf16, *flat_params)

    return out.reshape(rows, 1)[:B]


def init_params(key, num_features):
    """Deterministic init mirroring the PyTorch layer shapes.

    PyTorch nn.Linear(in, out) has weight (out, in), bias (out,). We store the
    transposed weight (in, out) and bias as (1, out)."""
    dims = [num_features, 256, 512, 1024, 256, 128, 1]
    params = []
    for i in range(len(dims) - 1):
        fan_in, fan_out = dims[i], dims[i + 1]
        key, kw, kb = jax.random.split(key, 3)
        bound = 1.0 / (fan_in ** 0.5)  # same scale as PyTorch's default init
        w = jax.random.uniform(kw, (fan_in, fan_out), jnp.float32, -bound, bound)
        b = jax.random.uniform(kb, (1, fan_out), jnp.float32, -bound, bound)
        params.append((w, b))
    return params


def reference_forward(x, params):
    """Pure-JAX reference mirroring the kernel's bf16 weight/activation quantization.

    Note: activations are re-quantized to bf16 between layers (deliberate precision
    trade-off vs. the all-f32 PyTorch module)."""
    h = x.astype(jnp.bfloat16)
    for (w, b) in params[:-1]:
        acc = jnp.dot(h, w.astype(jnp.bfloat16), preferred_element_type=jnp.float32)
        h = jnp.maximum(acc + b.reshape(1, -1).astype(jnp.float32), 0.0).astype(jnp.bfloat16)
    w6, b6 = params[-1]
    out = jnp.dot(h, w6.astype(jnp.bfloat16), preferred_element_type=jnp.float32)
    return out + b6.reshape(1, -1).astype(jnp.float32)


if __name__ == "__main__":
    num_features = 8
    batch = 200          # deliberately not a tile multiple to exercise the masked last block

    key = jax.random.PRNGKey(0)
    key, kx = jax.random.split(key)
    x = jax.random.normal(kx, (batch, num_features), jnp.float32)

    params = init_params(key, num_features)
    flat_params = prepare_params(params)     # one-time bf16/f32 cast, outside the forward

    out = multiple_regression_forward(x, flat_params)
    out = jax.block_until_ready(out)

    ref = reference_forward(x, params)
    assert out.shape == (batch, 1), out.shape
    assert jnp.allclose(out, ref, atol=2e-3, rtol=2e-3), (out, ref)

    print("KERNEL_OK")
</pallas_src>

<mosaic_0001>
module attributes {stable_mosaic.version = 11 : i64} {
  func.func @mlp_kernel(%arg0: i32, %arg1: memref<128x8xbf16, #tpu.memory_space<vmem>>, %arg2: memref<8x256xbf16, #tpu.memory_space<vmem>>, %arg3: memref<1x256xf32, #tpu.memory_space<vmem>>, %arg4: memref<256x512xbf16, #tpu.memory_space<vmem>>, %arg5: memref<1x512xf32, #tpu.memory_space<vmem>>, %arg6: memref<512x1024xbf16, #tpu.memory_space<vmem>>, %arg7: memref<1x1024xf32, #tpu.memory_space<vmem>>, %arg8: memref<1024x256xbf16, #tpu.memory_space<vmem>>, %arg9: memref<1x256xf32, #tpu.memory_space<vmem>>, %arg10: memref<256x128xbf16, #tpu.memory_space<vmem>>, %arg11: memref<1x128xf32, #tpu.memory_space<vmem>>, %arg12: memref<1x128xbf16, #tpu.memory_space<vmem>>, %arg13: memref<1x1xf32, #tpu.memory_space<vmem>>, %arg14: memref<1x1x128xf32, #tpu.memory_space<vmem>>) attributes {dimension_semantics = [#tpu.dimension_semantics<parallel>], iteration_bounds = array<i64: 2>, scalar_prefetch = 0 : i64, scratch_operands = 0 : i64, tpu.core_type = #tpu.core_type<tc>, window_params = [{transform_indices = @transform_0, window_bounds = array<i64: 128, 8>}, {pipeline_mode = #tpu.pipeline_mode<synchronous>, transform_indices = @transform_1, window_bounds = array<i64: 8, 256>}, {pipeline_mode = #tpu.pipeline_mode<synchronous>, transform_indices = @transform_2, window_bounds = array<i64: 1, 256>}, {pipeline_mode = #tpu.pipeline_mode<synchronous>, transform_indices = @transform_3, window_bounds = array<i64: 256, 512>}, {pipeline_mode = #tpu.pipeline_mode<synchronous>, transform_indices = @transform_4, window_bounds = array<i64: 1, 512>}, {pipeline_mode = #tpu.pipeline_mode<synchronous>, transform_indices = @transform_5, window_bounds = array<i64: 512, 1024>}, {pipeline_mode = #tpu.pipeline_mode<synchronous>, transform_indices = @transform_6, window_bounds = array<i64: 1, 1024>}, {pipeline_mode = #tpu.pipeline_mode<synchronous>, transform_indices = @transform_7, window_bounds = array<i64: 1024, 256>}, {pipeline_mode = #tpu.pipeline_mode<synchronous>, transform_indices = @transform_8, window_bounds = array<i64: 1, 256>}, {pipeline_mode = #tpu.pipeline_mode<synchronous>, transform_indices = @transform_9, window_bounds = array<i64: 256, 128>}, {pipeline_mode = #tpu.pipeline_mode<synchronous>, transform_indices = @transform_10, window_bounds = array<i64: 1, 128>}, {pipeline_mode = #tpu.pipeline_mode<synchronous>, transform_indices = @transform_11, window_bounds = array<i64: 1, 128>}, {pipeline_mode = #tpu.pipeline_mode<synchronous>, transform_indices = @transform_12, window_bounds = array<i64: 1, 1>}, {transform_indices = @transform_13, window_bounds = array<i64: 1, 1, 128>}]} {
    %c0 = arith.constant 0 : index
    %c0_0 = arith.constant 0 : index
    %0 = vector.load %arg1[%c0, %c0_0] : memref<128x8xbf16, #tpu.memory_space<vmem>>, vector<128x8xbf16>
    %c0_1 = arith.constant 0 : index
    %c0_2 = arith.constant 0 : index
    %1 = vector.load %arg2[%c0_1, %c0_2] : memref<8x256xbf16, #tpu.memory_space<vmem>>, vector<8x256xbf16>
    %cst = arith.constant dense<0.000000e+00> : vector<128x256xf32>
    %2 = tpu.matmul %0, %1, %cst {dimension_numbers = #tpu.dot_dimension_numbers<[1], [0], [0], [1], [0, 0, 1, 1], [], []>} : vector<128x8xbf16>, vector<8x256xbf16>, vector<128x256xf32> -> vector<128x256xf32>
    %c0_3 = arith.constant 0 : index
    %c0_4 = arith.constant 0 : index
    %3 = vector.load %arg3[%c0_3, %c0_4] : memref<1x256xf32, #tpu.memory_space<vmem>>, vector<1x256xf32>
    %4 = vector.broadcast %3 : vector<1x256xf32> to vector<128x256xf32>
    %5 = arith.addf %2, %4 : vector<128x256xf32>
    %cst_5 = arith.constant 0.000000e+00 : f32
    %6 = vector.broadcast %cst_5 : f32 to vector<128x256xf32>
    %7 = arith.maximumf %5, %6 : vector<128x256xf32>
    %8 = arith.truncf %7 : vector<128x256xf32> to vector<128x256xbf16>
    %c0_6 = arith.constant 0 : index
    %c0_7 = arith.constant 0 : index
    %9 = vector.load %arg4[%c0_6, %c0_7] : memref<256x512xbf16, #tpu.memory_space<vmem>>, vector<256x512xbf16>
    %cst_8 = arith.constant dense<0.000000e+00> : vector<128x512xf32>
    %10 = tpu.matmul %8, %9, %cst_8 {dimension_numbers = #tpu.dot_dimension_numbers<[1], [0], [0], [1], [0, 0, 1, 1], [], []>} : vector<128x256xbf16>, vector<256x512xbf16>, vector<128x512xf32> -> vector<128x512xf32>
    %c0_9 = arith.constant 0 : index
    %c0_10 = arith.constant 0 : index
    %11 = vector.load %arg5[%c0_9, %c0_10] : memref<1x512xf32, #tpu.memory_space<vmem>>, vector<1x512xf32>
    %12 = vector.broadcast %11 : vector<1x512xf32> to vector<128x512xf32>
    %13 = arith.addf %10, %12 : vector<128x512xf32>
    %cst_11 = arith.constant 0.000000e+00 : f32
    %14 = vector.broadcast %cst_11 : f32 to vector<128x512xf32>
    %15 = arith.maximumf %13, %14 : vector<128x512xf32>
    %16 = arith.truncf %15 : vector<128x512xf32> to vector<128x512xbf16>
    %c0_12 = arith.constant 0 : index
    %c0_13 = arith.constant 0 : index
    %17 = vector.load %arg6[%c0_12, %c0_13] : memref<512x1024xbf16, #tpu.memory_space<vmem>>, vector<512x1024xbf16>
    %cst_14 = arith.constant dense<0.000000e+00> : vector<128x1024xf32>
    %18 = tpu.matmul %16, %17, %cst_14 {dimension_numbers = #tpu.dot_dimension_numbers<[1], [0], [0], [1], [0, 0, 1, 1], [], []>} : vector<128x512xbf16>, vector<512x1024xbf16>, vector<128x1024xf32> -> vector<128x1024xf32>
    %c0_15 = arith.constant 0 : index
    %c0_16 = arith.constant 0 : index
    %19 = vector.load %arg7[%c0_15, %c0_16] : memref<1x1024xf32, #tpu.memory_space<vmem>>, vector<1x1024xf32>
    %20 = vector.broadcast %19 : vector<1x1024xf32> to vector<128x1024xf32>
    %21 = arith.addf %18, %20 : vector<128x1024xf32>
    %cst_17 = arith.constant 0.000000e+00 : f32
    %22 = vector.broadcast %cst_17 : f32 to vector<128x1024xf32>
    %23 = arith.maximumf %21, %22 : vector<128x1024xf32>
    %24 = arith.truncf %23 : vector<128x1024xf32> to vector<128x1024xbf16>
    %c0_18 = arith.constant 0 : index
    %c0_19 = arith.constant 0 : index
    %25 = vector.load %arg8[%c0_18, %c0_19] : memref<1024x256xbf16, #tpu.memory_space<vmem>>, vector<1024x256xbf16>
    %cst_20 = arith.constant dense<0.000000e+00> : vector<128x256xf32>
    %26 = tpu.matmul %24, %25, %cst_20 {dimension_numbers = #tpu.dot_dimension_numbers<[1], [0], [0], [1], [0, 0, 1, 1], [], []>} : vector<128x1024xbf16>, vector<1024x256xbf16>, vector<128x256xf32> -> vector<128x256xf32>
    %c0_21 = arith.constant 0 : index
    %c0_22 = arith.constant 0 : index
    %27 = vector.load %arg9[%c0_21, %c0_22] : memref<1x256xf32, #tpu.memory_space<vmem>>, vector<1x256xf32>
    %28 = vector.broadcast %27 : vector<1x256xf32> to vector<128x256xf32>
    %29 = arith.addf %26, %28 : vector<128x256xf32>
    %cst_23 = arith.constant 0.000000e+00 : f32
    %30 = vector.broadcast %cst_23 : f32 to vector<128x256xf32>
    %31 = arith.maximumf %29, %30 : vector<128x256xf32>
    %32 = arith.truncf %31 : vector<128x256xf32> to vector<128x256xbf16>
    %c0_24 = arith.constant 0 : index
    %c0_25 = arith.constant 0 : index
    %33 = vector.load %arg10[%c0_24, %c0_25] : memref<256x128xbf16, #tpu.memory_space<vmem>>, vector<256x128xbf16>
    %cst_26 = arith.constant dense<0.000000e+00> : vector<128x128xf32>
    %34 = tpu.matmul %32, %33, %cst_26 {dimension_numbers = #tpu.dot_dimension_numbers<[1], [0], [0], [1], [0, 0, 1, 1], [], []>} : vector<128x256xbf16>, vector<256x128xbf16>, vector<128x128xf32> -> vector<128x128xf32>
    %c0_27 = arith.constant 0 : index
    %c0_28 = arith.constant 0 : index
    %35 = vector.load %arg11[%c0_27, %c0_28] : memref<1x128xf32, #tpu.memory_space<vmem>>, vector<1x128xf32>
    %36 = vector.broadcast %35 : vector<1x128xf32> to vector<128x128xf32>
    %37 = arith.addf %34, %36 : vector<128x128xf32>
    %cst_29 = arith.constant 0.000000e+00 : f32
    %38 = vector.broadcast %cst_29 : f32 to vector<128x128xf32>
    %39 = arith.maximumf %37, %38 : vector<128x128xf32>
    %c0_30 = arith.constant 0 : index
    %c0_31 = arith.constant 0 : index
    %40 = vector.load %arg12[%c0_30, %c0_31] : memref<1x128xbf16, #tpu.memory_space<vmem>>, vector<1x128xbf16>
    %41 = arith.truncf %39 : vector<128x128xf32> to vector<128x128xbf16>
    %cst_32 = arith.constant dense<0.000000e+00> : vector<1x128xf32>
    %42 = tpu.matmul %40, %41, %cst_32 {dimension_numbers = #tpu.dot_dimension_numbers<[1], [1], [0], [0], [0, 0, 1, 0], [], []>} : vector<1x128xbf16>, vector<128x128xbf16>, vector<1x128xf32> -> vector<1x128xf32>
    %c0_33 = arith.constant 0 : index
    %c0_34 = arith.constant 0 : index
    %43 = vector.load %arg13[%c0_33, %c0_34] : memref<1x1xf32, #tpu.memory_space<vmem>>, vector<1x1xf32>
    %44 = vector.broadcast %43 : vector<1x1xf32> to vector<1x128xf32>
    %45 = arith.addf %42, %44 : vector<1x128xf32>
    %c0_35 = arith.constant 0 : index
    %c0_36 = arith.constant 0 : index
    %c0_37 = arith.constant 0 : index
    %46 = vector.load %arg14[%c0_35, %c0_36, %c0_37] : memref<1x1x128xf32, #tpu.memory_space<vmem>>, vector<1x1x128xf32>
    %47 = vector.shape_cast %46 : vector<1x1x128xf32> to vector<1x128xf32>
    %48 = vector.shape_cast %45 : vector<1x128xf32> to vector<1x1x128xf32>
    tpu.vector_store %arg14[%c0_35, %c0_36, %c0_37], %48 {strides = array<i32>} : memref<1x1x128xf32, #tpu.memory_space<vmem>>, vector<1x1x128xf32>,
    return
  }
  func.func @transform_0(%arg0: i32) -> (i32, i32) {
    %c0_i32 = arith.constant 0 : i32
    %c0_i32_0 = arith.constant 0 : i32
    return %arg0, %c0_i32 : i32, i32
  }
  func.func @transform_1(%arg0: i32) -> (i32, i32) {
    %c0_i32 = arith.constant 0 : i32
    %c0_i32_0 = arith.constant 0 : i32
    %c0_i32_1 = arith.constant 0 : i32
    return %c0_i32, %c0_i32_0 : i32, i32
  }
  func.func @transform_2(%arg0: i32) -> (i32, i32) {
    %c0_i32 = arith.constant 0 : i32
    %c0_i32_0 = arith.constant 0 : i32
    %c0_i32_1 = arith.constant 0 : i32
    return %c0_i32, %c0_i32_0 : i32, i32
  }
  func.func @transform_3(%arg0: i32) -> (i32, i32) {
    %c0_i32 = arith.constant 0 : i32
    %c0_i32_0 = arith.constant 0 : i32
    %c0_i32_1 = arith.constant 0 : i32
    return %c0_i32, %c0_i32_0 : i32, i32
  }
  func.func @transform_4(%arg0: i32) -> (i32, i32) {
    %c0_i32 = arith.constant 0 : i32
    %c0_i32_0 = arith.constant 0 : i32
    %c0_i32_1 = arith.constant 0 : i32
    return %c0_i32, %c0_i32_0 : i32, i32
  }
  func.func @transform_5(%arg0: i32) -> (i32, i32) {
    %c0_i32 = arith.constant 0 : i32
    %c0_i32_0 = arith.constant 0 : i32
    %c0_i32_1 = arith.constant 0 : i32
    return %c0_i32, %c0_i32_0 : i32, i32
  }
  func.func @transform_6(%arg0: i32) -> (i32, i32) {
    %c0_i32 = arith.constant 0 : i32
    %c0_i32_0 = arith.constant 0 : i32
    %c0_i32_1 = arith.constant 0 : i32
    return %c0_i32, %c0_i32_0 : i32, i32
  }
  func.func @transform_7(%arg0: i32) -> (i32, i32) {
    %c0_i32 = arith.constant 0 : i32
    %c0_i32_0 = arith.constant 0 : i32
    %c0_i32_1 = arith.constant 0 : i32
    return %c0_i32, %c0_i32_0 : i32, i32
  }
  func.func @transform_8(%arg0: i32) -> (i32, i32) {
    %c0_i32 = arith.constant 0 : i32
    %c0_i32_0 = arith.constant 0 : i32
    %c0_i32_1 = arith.constant 0 : i32
    return %c0_i32, %c0_i32_0 : i32, i32
  }
  func.func @transform_9(%arg0: i32) -> (i32, i32) {
    %c0_i32 = arith.constant 0 : i32
    %c0_i32_0 = arith.constant 0 : i32
    %c0_i32_1 = arith.constant 0 : i32
    return %c0_i32, %c0_i32_0 : i32, i32
  }
  func.func @transform_10(%arg0: i32) -> (i32, i32) {
    %c0_i32 = arith.constant 0 : i32
    %c0_i32_0 = arith.constant 0 : i32
    %c0_i32_1 = arith.constant 0 : i32
    return %c0_i32, %c0_i32_0 : i32, i32
  }
  func.func @transform_11(%arg0: i32) -> (i32, i32) {
    %c0_i32 = arith.constant 0 : i32
    %c0_i32_0 = arith.constant 0 : i32
    %c0_i32_1 = arith.constant 0 : i32
    return %c0_i32, %c0_i32_0 : i32, i32
  }
  func.func @transform_12(%arg0: i32) -> (i32, i32) {
    %c0_i32 = arith.constant 0 : i32
    %c0_i32_0 = arith.constant 0 : i32
    %c0_i32_1 = arith.constant 0 : i32
    return %c0_i32, %c0_i32_0 : i32, i32
  }
  func.func @transform_13(%arg0: i32) -> (i32, i32, i32) {
    %c0_i32 = arith.constant 0 : i32
    %c0_i32_0 = arith.constant 0 : i32
    %c0_i32_1 = arith.constant 0 : i32
    return %arg0, %c0_i32, %c0_i32_0 : i32, i32, i32
  }
}

</mosaic_0001>

<bundles_post_ra>
// kernel: tpu_custom_call.1
= control target key start
LH: loop header
LB: loop body
LE: loop exit
PB: predicated region body
PF: predicated region fallthrough
CT: control target
= control target key end

     0   :  { %s8757_s0 = inlined_call_operand.vmem [shape: bf16[200,8], index: 0, kind: input, shape index: {}]   ;;  %s8758_s1 = inlined_call_operand.vmem [shape: bf16[8,256], index: 1, kind: input, shape index: {}]   ;;  %s8759_s2 = inlined_call_operand.hbm [shape: f32[1,256], index: 2, kind: input, shape index: {}]   ;;  %s8760_s3 = inlined_call_operand.hbm [shape: bf16[256,512], index: 3, kind: input, shape index: {}]   ;;  %s8761_s4 = inlined_call_operand.hbm [shape: f32[1,512], index: 4, kind: input, shape index: {}]   ;;  %s8762_s5 = inlined_call_operand.hbm [shape: bf16[512,1024], index: 5, kind: input, shape index: {}]   ;;  %s8763_s6 = inlined_call_operand.vmem [shape: f32[1,1024], index: 6, kind: input, shape index: {}]   ;;  %s8764_s7 = inlined_call_operand.hbm [shape: bf16[1024,256], index: 7, kind: input, shape index: {}]   ;;  %s8765_s8 = inlined_call_operand.hbm [shape: f32[1,256], index: 8, kind: input, shape index: {}]   ;;  %s8766_s9 = inlined_call_operand.vmem [shape: bf16[256,128], index: 9, kind: input, shape index: {}]   ;;  %s8767_s10 = inlined_call_operand.vmem [shape: f32[1,128], index: 10, kind: input, shape index: {}]   ;;  %s8768_s11 = inlined_call_operand.vmem [shape: bf16[1,128], index: 11, kind: input, shape index: {}]   ;;  %s8769_s12 = inlined_call_operand.<no memory space> [shape: f32[1,1], index: 12, kind: input, shape index: {}]   ;;  %s8770_s13 = inlined_call_operand.hbm [shape: f32[2,1,128], index: 13, kind: output, shape index: {}]  }
   0x1   :  { %8785 = sst [smem:[#allocation27_spill]] %s8760_s3  ;;  %v18_v0 = vstv %s8769_s12 }
   0x2   :  { %8786 = sst [smem:[#allocation28_spill]] %s8770_s13  ;;  %19 = vst [vmem:[#allocation2] sm:$0x1] %v18_v0 }
   0x3   :  { %20 = vsyncpa [#allocation4], 0 }
   0x4   :  { %21 = vsyncpa [#allocation7], 0 }
   0x5   :  { %22 = vsyncpa [#allocation10], 0 }
   0x6   :  { %23 = vsyncpa [#allocation13], 0 }
   0x7   :  { %24 = vsyncpa [#allocation5], 0 }
   0x8   :  { %26 = vsyncpa [#allocation5 + $0x1], 0  ;;  %s7673_s27 = smov 0   ;;  %s7675_s28 = smov 0  }
   0x9   :  { %s7677_s29 = smov 0   ;;  %s7679_s30 = smov 0  }
   0xa LB: > { %8787 = sst [smem:[#allocation20_spill]] %s7570_s27  ;;  %s7694_s12 = sadd.s32 4294967295, %s7582_s30   ;;  %s7582_s30 = sphi %s7679_s30, %s8818_s30   ;;  %s7578_s29 = sphi %s7677_s29, %s8820_s29   ;;  %s7574_s28 = sphi %s7675_s28, %s8822_s28   ;;  %s7570_s27 = sphi %s7673_s27, %s8821_s27  }
   0xb   : > { %8788 = sst [smem:[#allocation21_spill]] %s7578_s29  ;;  %s5930_s14 = sadd.s32 4294967294, %s7582_s30  }
   0xc   : > { %8789 = sst [smem:[#allocation22_spill]] %s7582_s30  ;;  %s7698_s15 = sadd.s32 1, %s7582_s30  }
   0xd   : > { %8790 = sst [smem:[#allocation23_spill]] %s7698_s15  ;;  %s317_s16 = sadd.s32 1, %s7578_s29 }
   0xe   : > { %s314_s17 = ssub.s32 %s7582_s30, %s7698_s15  ;;  %p327_p0 = scmp.ne.s32.totalorder %s7578_s29, %s7574_s28 }
   0xf   : > { %p315_p1 = scmp.eq.s32.totalorder %s314_s17, 0  ;;  %p328_p2 = scmp.eq.s32.totalorder %s7694_s12, 1 }
  0x10   : > { %p333_p3 = scmp.ne.s32.totalorder %s7574_s28, %s7570_s27  ;;  %p334_p4 = scmp.eq.s32.totalorder %s5930_s14, 1 }
  0x11   : > { %s7709_s18 = scalar_select %p315_p1, %s7578_s29, %s317_s16  }
  0x12   : > { %p7711_p5 = por %p328_p2, %p327_p0  ;;  %p7715_p6 = por %p334_p4, %p333_p3 }
  0x13   : > { %8791 = sst [smem:[#allocation24_spill]] %s7709_s18  ;;  %p5931_p7 = scmp.ge.s32.totalorder %s7582_s30, 1 }
  0x14   : > { %s8792_s19 = scalar_select %p7711_p5, 1, 0 }
  0x15   : > { %s8793_s20 = scalar_select %p7715_p6, 1, 0 }
  0x16   : > { %p341_p8 = scmp.lt.s32.totalorder %s7582_s30, 3  ;;  %p8774_p9 = scmp.eq.s32.totalorder %s7694_s12, 0 }
  0x17   : > { %8794 = sst [smem:[#allocation25_spill]] %s8793_s20  ;;  %s7584_s22 = smov [#allocation6]  }
  0x18   : > { %p7722_p10 = pnand %p5931_p7, %p341_p8  ;;  %s367_s23 = sshll.u32 %s7584_s22, 4  ;;  %s368_s23 = int_to_ptr.vmem [resolvable:$true] %s367_s23 }
  0x19   : > { %s7585_s25 = smov [#allocation9]   ;;  %s8797_s3 = sld [smem:[#allocation27_spill]] }
  0x1a   : > { %s8795_s21 = scalar_select %p7722_p10, 1, 0 }
  0x1b   : > { %p6938_p11 = pneg %p7722_p10  ;;  %s391_s26 = sshll.u32 %s7585_s25, 4  ;;  %s7734_s26 = int_to_ptr.vmem [resolvable:$true] %s391_s26 }
  0x1d   : > { %p7730_p12 = pnand %p8774_p9, %p6938_p11 }
  0x1f   : > { %s7336_s17 = scalar_lea.hbm %s8797_s3, 8192  ;;  %p7744_p0 = pneg %p7730_p12 }
  0x20   : > { %p7337_p13 = scmp.ne.s32.totalorder %s8797_s3, %s7336_s17  ;;  %p7343_p3 = scmp.lt.u32.totalorder %s7336_s17, %s8797_s3 }
  0x22   : > { %p7339_p1 = pnand %p7744_p0, %p7337_p13 }
  0x24   : > { %p7340_p2 = pneg %p7339_p1 }
  0x26   : > { %p7345_p4 = pnand %p7343_p3, %p7340_p2 }
  0x28   : > { %7348 = shalt.err (!%p7345_p4)
}
  0x29   : > { %s7349_s14 = scalar_lea.vmem %s368_s23, 8192  ;;  %p7357_p9 = scmp.lt.s32.totalorder %s368_s23, %s368_s23 }
  0x2a   : > { %p7350_p7 = scmp.ne.s32.totalorder %s368_s23, %s7349_s14  ;;  %p7358_p6 = scmp.lt.s32.totalorder %s7349_s14, %s7349_s14 }
  0x2c   : > { %p7352_p8 = pnand %p7350_p7, %p7744_p0  ;;  %p7359_p5 = por %p7358_p6, %p7357_p9 }
  0x2e   : > { %p7353_p11 = pneg %p7352_p8 }
  0x30   : > { %p7360_p10 = pnand %p7359_p5, %p7353_p11 }
  0x32   : > { %7363 = shalt.err (!%p7360_p10)
}
  0x33   : > { %s7586_s29 = smov 256   ;;  %s7587_s18 = smov 16  }
  0x34   : > { %6944 = dma.hbm_to_vmem [thread:$0]  (!%p7730_p12), %s8797_s3, 8192, %s368_s23, [#allocation7], %s7586_s29, %s7586_s29, %s7587_s18  }
  0x35   : > { %s7364_s20 = scalar_lea.hbm %s8762_s5, 32768 }
  0x36   : > { %p7365_p13 = scmp.ne.s32.totalorder %s8762_s5, %s7364_s20  ;;  %p7371_p9 = scmp.lt.u32.totalorder %s7364_s20, %s8762_s5 }
  0x38   : > { %p7367_p5 = pnand %p7365_p13, %p7744_p0 }
  0x3a   : > { %p7368_p6 = pneg %p7367_p5 }
  0x3c   : > { %p7373_p10 = pnand %p7371_p9, %p7368_p6 }
  0x3e   : > { %7376 = shalt.err (!%p7373_p10)
}
  0x3f   : > { %s7377_s23 = scalar_lea.vmem %s7734_s26, 32768  ;;  %p7385_p4 = scmp.lt.s32.totalorder %s7734_s26, %s7734_s26 }
  0x40   : > { %p7378_p1 = scmp.ne.s32.totalorder %s7734_s26, %s7377_s23  ;;  %p7386_p7 = scmp.lt.s32.totalorder %s7377_s23, %s7377_s23 }
  0x42   : > { %p7380_p2 = pnand %p7378_p1, %p7744_p0  ;;  %p7387_p8 = por %p7386_p7, %p7385_p4 }
  0x44   : > { %p7381_p3 = pneg %p7380_p2 }
  0x46   : > { %p7388_p11 = pnand %p7387_p8, %p7381_p3 }
  0x48   : > { %7391 = shalt.err (!%p7388_p11)
}
  0x49   : > { %s7588_s27 = smov 512   ;;  %s7589_s13 = smov 32  }
  0x4a   : > { %6950 = dma.hbm_to_vmem [thread:$0]  (!%p7730_p12), %s8762_s5, 32768, %s7734_s26, [#allocation10], %s7588_s27, %s7588_s27, %s7589_s13  }
  0x4b   : > { %s7590_s29 = smov [#allocation3]   ;;  %s7591_s15 = smov [#allocation8]  }
  0x4c   : > { %s357_s18 = sshll.u32 %s7590_s29, 4  ;;  %s381_s16 = sshll.u32 %s7591_s15, 4  ;;  %s358_s18 = int_to_ptr.vmem [resolvable:$true] %s357_s18  ;;  %s7783_s16 = int_to_ptr.vmem [resolvable:$true] %s381_s16 }
  0x4d   : > { %s7392_s14 = scalar_lea.hbm %s8759_s2, 32 }
  0x4e   : > { %p7393_p13 = scmp.ne.s32.totalorder %s8759_s2, %s7392_s14  ;;  %p7399_p9 = scmp.lt.u32.totalorder %s7392_s14, %s8759_s2 }
  0x50   : > { %p7395_p5 = pnand %p7393_p13, %p7744_p0 }
  0x52   : > { %p7396_p6 = pneg %p7395_p5 }
  0x54   : > { %p7401_p10 = pnand %p7399_p9, %p7396_p6 }
  0x56   : > { %7404 = shalt.err (!%p7401_p10)
}
  0x57   : > { %s7405_s27 = scalar_lea.vmem %s358_s18, 32  ;;  %p7413_p4 = scmp.lt.s32.totalorder %s358_s18, %s358_s18 }
  0x58   : > { %p7406_p1 = scmp.ne.s32.totalorder %s358_s18, %s7405_s27  ;;  %p7414_p7 = scmp.lt.s32.totalorder %s7405_s27, %s7405_s27 }
  0x5a   : > { %p7408_p2 = pnand %p7406_p1, %p7744_p0  ;;  %p7415_p8 = por %p7414_p7, %p7413_p4 }
  0x5c   : > { %p7409_p3 = pneg %p7408_p2 }
  0x5e   : > { %p7416_p11 = pnand %p7415_p8, %p7409_p3 }
  0x60   : > { %7419 = shalt.err (!%p7416_p11)
}
  0x61   : > { %6941 = dma.hbm_to_vmem [thread:$0]  (!%p7730_p12), %s8759_s2, 32, %s358_s18, [#allocation4]  }
  0x62   : > { %s7420_s15 = scalar_lea.hbm %s8761_s4, 64 }
  0x63   : > { %p7421_p13 = scmp.ne.s32.totalorder %s8761_s4, %s7420_s15  ;;  %p7427_p9 = scmp.lt.u32.totalorder %s7420_s15, %s8761_s4 }
  0x65   : > { %p7423_p5 = pnand %p7421_p13, %p7744_p0 }
  0x67   : > { %p7424_p6 = pneg %p7423_p5 }
  0x69   : > { %p7429_p10 = pnand %p7427_p9, %p7424_p6 }
  0x6b   : > { %7432 = shalt.err (!%p7429_p10)
}
  0x6c   : > { %s7433_s18 = scalar_lea.vmem %s7783_s16, 64  ;;  %p7441_p4 = scmp.lt.s32.totalorder %s7783_s16, %s7783_s16 }
  0x6d   : > { %p7434_p1 = scmp.ne.s32.totalorder %s7783_s16, %s7433_s18  ;;  %p7442_p7 = scmp.lt.s32.totalorder %s7433_s18, %s7433_s18 }
  0x6f   : > { %p7436_p2 = pnand %p7434_p1, %p7744_p0  ;;  %p7443_p8 = por %p7442_p7, %p7441_p4 }
  0x71   : > { %p7437_p3 = pneg %p7436_p2 }
  0x73   : > { %p7444_p11 = pnand %p7443_p8, %p7437_p3 }
  0x75   : > { %7447 = shalt.err (!%p7444_p11)
}
  0x76   : > { %6947 = dma.hbm_to_vmem [thread:$0]  (!%p7730_p12), %s8761_s4, 64, %s7783_s16, [#allocation7]  }
  0x77   : > { %s7592_s27 = smov [#allocation11]   ;;  %s7448_s29 = scalar_lea.hbm %s8764_s7, 16384 }
  0x78   : > { %s407_s3 = sshll.u32 %s7592_s27, 4  ;;  %p7449_p13 = scmp.ne.s32.totalorder %s8764_s7, %s7448_s29  ;;  %s408_s3 = int_to_ptr.vmem [resolvable:$true] %s407_s3 }
  0x79   : > { %p7455_p9 = scmp.lt.u32.totalorder %s7448_s29, %s8764_s7 }
  0x7a   : > { %p7451_p5 = pnand %p7449_p13, %p7744_p0 }
  0x7c   : > { %p7452_p6 = pneg %p7451_p5 }
  0x7e   : > { %p7457_p10 = pnand %p7455_p9, %p7452_p6 }
  0x80   : > { %7460 = shalt.err (!%p7457_p10)
}
  0x81   : > { %s7461_s16 = scalar_lea.vmem %s408_s3, 16384  ;;  %p7469_p4 = scmp.lt.s32.totalorder %s408_s3, %s408_s3 }
  0x82   : > { %p7462_p1 = scmp.ne.s32.totalorder %s408_s3, %s7461_s16  ;;  %p7470_p7 = scmp.lt.s32.totalorder %s7461_s16, %s7461_s16 }
  0x84   : > { %p7464_p2 = pnand %p7462_p1, %p7744_p0  ;;  %p7471_p8 = por %p7470_p7, %p7469_p4 }
  0x86   : > { %p7465_p3 = pneg %p7464_p2 }
  0x88   : > { %p7472_p11 = pnand %p7471_p8, %p7465_p3 }
  0x8a   : > { %7475 = shalt.err (!%p7472_p11)
}
  0x8b   : > { %s7593_s23 = smov 128   ;;  %s7594_s18 = smov 8  }
  0x8c   : > { %6953 = dma.hbm_to_vmem [thread:$0]  (!%p7730_p12), %s8764_s7, 16384, %s408_s3, [#allocation10], %s7593_s23, %s7593_s23, %s7594_s18  }
  0x8d   : > { %s7595_s27 = smov [#allocation12]   ;;  %s7476_s15 = scalar_lea.hbm %s8765_s8, 32 }
  0x8e   : > { %s421_s13 = sshll.u32 %s7595_s27, 4  ;;  %p7477_p13 = scmp.ne.s32.totalorder %s8765_s8, %s7476_s15  ;;  %s422_s13 = int_to_ptr.vmem [resolvable:$true] %s421_s13 }
  0x8f   : > { %p7483_p9 = scmp.lt.u32.totalorder %s7476_s15, %s8765_s8 }
  0x90   : > { %p7479_p5 = pnand %p7477_p13, %p7744_p0 }
  0x92   : > { %p7480_p6 = pneg %p7479_p5 }
  0x94   : > { %p7485_p10 = pnand %p7483_p9, %p7480_p6 }
  0x96   : > { %7488 = shalt.err (!%p7485_p10)
}
  0x97   : > { %s7489_s3 = scalar_lea.vmem %s422_s13, 32  ;;  %p7497_p4 = scmp.lt.s32.totalorder %s422_s13, %s422_s13 }
  0x98   : > { %p7490_p1 = scmp.ne.s32.totalorder %s422_s13, %s7489_s3  ;;  %p7498_p7 = scmp.lt.s32.totalorder %s7489_s3, %s7489_s3 }
  0x9a   : > { %p7492_p2 = pnand %p7490_p1, %p7744_p0  ;;  %p7499_p8 = por %p7498_p7, %p7497_p4 }
  0x9c   : > { %p7493_p3 = pneg %p7492_p2 }
  0x9e   : > { %p7500_p11 = pnand %p7499_p8, %p7493_p3 }
  0xa0   : > { %7503 = shalt.err (!%p7500_p11)
}
  0xa1   : > { %6956 = dma.hbm_to_vmem [thread:$0]  (!%p7730_p12), %s8765_s8, 32, %s422_s13, [#allocation13]  }
  0xa2   : > { %p8799_p13 = scmp.ne.s32.totalorder %s8795_s21, 0 }
  0xa4   : > { %463 = sbr.rel (%p8799_p13) target bundleno = 1851 (0x73b), region = 72 }
  0xab   : > { %p8800_p5 = scmp.eq.s32.totalorder %s7694_s12, 0 }
  0xad   : > { %7549 = dma.done.wait (%p8800_p5), [#allocation4], 32   ;;  %p8801_p0 = pmov %p8800_p5 }
  0xaf   : > { %7551 = vsyncadd (%p8801_p0), [#allocation4], 4294967264  ;;  %p8802_p6 = pmov %p8801_p0 }
  0xb0   : > { %p8803_p9 = pmov %p8801_p0 }
  0xb1   : > { %7553 = dma.done.wait (%p8802_p6), [#allocation7], 8256  }
  0xb2   : > { %7555 = vsyncadd (%p8803_p9), [#allocation7], 4294959040  ;;  %p8804_p10 = pmov %p8801_p0 }
  0xb3   : > { %p8805_p12 = pmov %p8801_p0 }
  0xb4   : > { %7557 = dma.done.wait (%p8804_p10), [#allocation10], 49152  }
  0xb5   : > { %7559 = vsyncadd (%p8805_p12), [#allocation10], 4294918144  ;;  %p8806_p1 = pmov %p8801_p0 }
  0xb6   : > { %p8807_p2 = pmov %p8801_p0 }
  0xb7   : > { %7561 = dma.done.wait (%p8806_p1), [#allocation13], 32  }
  0xb8   : > { %7563 = vsyncadd (%p8807_p2), [#allocation13], 4294967264  ;;  %s7881_s21 = sshll.u32 %s7694_s12, 4  ;;  %v7596_v1 = vmov 0   ;;  %v561_v2 = vld [vmem:[%s8758_s1] sm:$0xff]  ;;  %vm644_vm0 = vcmask 1043456   ;;  %v564_v47 = vlaneseq }
  0xb9   : > { %683 = vmatprep.mubr.bf16.mxu0 %v7596_v1  ;;  %p535_p3 = scmp.lt.s32.totalorder %s7881_s21, 24  ;;  %7021 = vset.pattern.permute.xlu0 %v7596_v1  ;;  %v5957_v3 = vcombine.high %v561_v2, %v561_v2  ;;  %v5956_v4 = vcombine.low %v561_v2, %v561_v2  ;;  %vm619_vm1 = vcmask 64512   ;;  %v7032_v7 = vld [vmem:[#allocation6] ss:$16 sps:$4 sm:$0xff]   ;;  %v7034_v8 = vld [vmem:[#allocation6 + $0x4] ss:$16 sps:$4 sm:$0xff]  }
  0xba   : > { %v7037_v9 = vld [vmem:[#allocation6 + $0x24] ss:$16 sps:$4 sm:$0xff]   ;;  %v7035_v11 = vld [vmem:[#allocation6 + $0x20] ss:$16 sps:$4 sm:$0xff]   ;;  %v7082_v46 = vld [vmem:[#allocation6 + $0xc] ss:$16 sps:$4 sm:$0xff]  }
  0xbb   : > { %s536_s24 = scalar_select %p535_p3, %s7881_s21, 24  ;;  %5958 = vmatprep.subr.msk.bf16.mxu0 %vm644_vm0, %v5957_v3  ;;  %v646_v5 = vsel %vm644_vm0, %v5956_v4, 0  ;;  %v7040_v12 = vld [vmem:[#allocation6 + $0x44] ss:$16 sps:$4 sm:$0xff]   ;;  %v7038_v13 = vld [vmem:[#allocation6 + $0x40] ss:$16 sps:$4 sm:$0xff]  }
  0xbc   : > { %652 = vmatpush1.bf16.msra.mxu0 %v646_v5  ;;  %v7043_v14 = vld [vmem:[#allocation6 + $0x64] ss:$16 sps:$4 sm:$0xff]   ;;  %v7041_v16 = vld [vmem:[#allocation6 + $0x60] ss:$16 sps:$4 sm:$0xff]   ;;  %v7918_v48 = vshrl.u32 %v564_v47, 7  ;;  %vm7598_vm2 = vmmov 0  }
  0xbd   : > { %s5947_s22 = sshll.u32 %s536_s24, 2  ;;  %1218 = vmatprep.subr.bf16.mxu0 %v7034_v8  ;;  %v7046_v17 = vld [vmem:[#allocation6 + $0x84] ss:$16 sps:$4 sm:$0xff]   ;;  %v7044_v18 = vld [vmem:[#allocation6 + $0x80] ss:$16 sps:$4 sm:$0xff]   ;;  %s528_s25 = sand.u32 1, %s7574_s28  }
  0xbe   : > { %s7890_s27 = scalar_lea.vmem %s8757_s0, %s5947_s22  ;;  %v7049_v19 = vld [vmem:[#allocation6 + $0xa4] ss:$16 sps:$4 sm:$0xff]   ;;  %v7047_v21 = vld [vmem:[#allocation6 + $0xa0] ss:$16 sps:$4 sm:$0xff]   ;;  %v7921_v49 = vsub.s32 0, %v7918_v48  ;;  %v7924_v51 = vsub.s32 1, %v7918_v48 }
  0xbf   : > { %v7024_v6 = vld [vmem:[%s7890_s27] sm:$0xff]   ;;  %v7025_v10 = vld [vmem:[%s7890_s27 + $0x8] sm:$0xff]   ;;  %v7026_v15 = vld [vmem:[%s7890_s27 + $0x10] sm:$0xff]   ;;  %s529_s14 = scalar_lea.vmem [#allocation14], %s528_s25  ;;  %s8812_s18 = sld [smem:[#allocation28_spill]] }
  0xc0   : > { %5959 = vmatmul.mubr.msk.bf16.vlgmr.msra.gmra.mrb[0].mxu0 %vm619_vm1, %v7024_v6  ;;  %v7027_v20 = vld [vmem:[%s7890_s27 + $0x18] sm:$0xff]   ;;  %v7050_v23 = vld [vmem:[#allocation6 + $0xc0] ss:$16 sps:$4 sm:$0xff]   ;;  %v7029_v30 = vld [vmem:[%s7890_s27 + $0x28] sm:$0xff]   ;;  %8808 = vst [vmem:[#allocation26_spill] sm:$0xff] %v7924_v51  ;;  %s5815_s16 = sshll.u32 %s529_s14, 4  ;;  %s8717_s16 = int_to_ptr.vmem [resolvable:$true] %s5815_s16 }
  0xc1   : > { %693 = vmatprep.mubr.bf16.mxu0 %v7596_v1  ;;  %1219 = vmatpush1.bf16.msra.mxu0 %v7032_v7  ;;  %v7052_v22 = vld [vmem:[#allocation6 + $0xc4] ss:$16 sps:$4 sm:$0xff]   ;;  %v7053_v26 = vld [vmem:[#allocation6 + $0xe0] ss:$16 sps:$4 sm:$0xff]   ;;  %v562_v50 = vld [vmem:[#allocation3] sm:$0x3] }
  0xc2   : > { %1220 = vmatprep.subr.bf16.mxu0 %v7037_v9  ;;  %v7055_v24 = vld [vmem:[#allocation6 + $0xe4] ss:$16 sps:$4 sm:$0xff]   ;;  %v7056_v28 = vld [vmem:[#allocation6 + $0x100] ss:$16 sps:$4 sm:$0xff]   ;;  %v7927_v52 = vrot.slane %v562_v50, %v7921_v49  ;;  %v7930_v53 = vrot.slane %v562_v50, %v7924_v51  ;;  %s5803_s22 = scalar_lea.sflag [#allocation5], %s528_s25  ;;  %s7504_s30 = scalar_lea.vmem %s8717_s16, 16 }
  0xc3   : > { %v7028_v25 = vld [vmem:[%s7890_s27 + $0x20] sm:$0xff]   ;;  %v7030_v35 = vld [vmem:[%s7890_s27 + $0x30] sm:$0xff]   ;;  %v7031_v40 = vld [vmem:[%s7890_s27 + $0x38] sm:$0xff]   ;;  %p7505_p4 = scmp.ne.s32.totalorder %s8717_s16, %s7504_s30  ;;  %p8813_p7 = scmp.ne.s32.totalorder %s8792_s19, 0 }
  0xc4   : > { %v7058_v27 = vld [vmem:[#allocation6 + $0x104] ss:$16 sps:$4 sm:$0xff]   ;;  %v7059_v31 = vld [vmem:[#allocation6 + $0x120] ss:$16 sps:$4 sm:$0xff]   ;;  %s7599_s26 = smov [#allocation14]  }
  0xc5   : > { %1221 = vmatpush1.bf16.msra.mxu0 %v7035_v11  ;;  %v7061_v29 = vld [vmem:[#allocation6 + $0x124] ss:$16 sps:$4 sm:$0xff]   ;;  %v7062_v33 = vld [vmem:[#allocation6 + $0x140] ss:$16 sps:$4 sm:$0xff]   ;;  %s8715_s24 = scalar_lea.hbm %s8812_s18, %s7881_s21  ;;  %p7506_p8 = pnand %p7505_p4, %p8813_p7 }
  0xc6   : > { %1222 = vmatprep.subr.bf16.mxu0 %v7040_v12  ;;  %v7064_v32 = vld [vmem:[#allocation6 + $0x144] ss:$16 sps:$4 sm:$0xff]   ;;  %v7065_v36 = vld [vmem:[#allocation6 + $0x160] ss:$16 sps:$4 sm:$0xff]   ;;  %s7508_s27 = sshll.u32 %s7599_s26, 4  ;;  %s7509_s27 = int_to_ptr.vmem [resolvable:$false] %s7508_s27 }
  0xc7   : > { %v7067_v34 = vld [vmem:[#allocation6 + $0x164] ss:$16 sps:$4 sm:$0xff]   ;;  %v7068_v38 = vld [vmem:[#allocation6 + $0x180] ss:$16 sps:$4 sm:$0xff]   ;;  %p7507_p11 = pneg %p7506_p8  ;;  %s7510_s13 = scalar_lea.vmem %s7509_s27, 32 }
  0xc8   : > { %5960 = vmatmul.mubr.msk.bf16.gmra.mrb[4].mxu0 %vm619_vm1, %v7025_v10  ;;  %v7070_v37 = vld [vmem:[#allocation6 + $0x184] ss:$16 sps:$4 sm:$0xff]   ;;  %v7071_v41 = vld [vmem:[#allocation6 + $0x1a0] ss:$16 sps:$4 sm:$0xff]   ;;  %p7511_p13 = scmp.lt.s32.totalorder %s8717_s16, %s7509_s27  ;;  %p7512_p5 = scmp.lt.s32.totalorder %s7510_s13, %s7504_s30 }
  0xc9   : > { %703 = vmatprep.mubr.bf16.mxu0 %v7596_v1  ;;  %1223 = vmatpush1.bf16.msra.mxu0 %v7038_v13  ;;  %v7073_v39 = vld [vmem:[#allocation6 + $0x1a4] ss:$16 sps:$4 sm:$0xff]   ;;  %v7074_v43 = vld [vmem:[#allocation6 + $0x1c0] ss:$16 sps:$4 sm:$0xff]  }
  0xca   : > { %1224 = vmatprep.subr.bf16.mxu0 %v7043_v14  ;;  %v7076_v42 = vld [vmem:[#allocation6 + $0x1c4] ss:$16 sps:$4 sm:$0xff]   ;;  %v7077_v45 = vld [vmem:[#allocation6 + $0x1e0] ss:$16 sps:$4 sm:$0xff]   ;;  %p7513_p0 = por %p7512_p5, %p7511_p13 }
  0xcb   : > { %v7079_v44 = vld [vmem:[#allocation6 + $0x1e4] ss:$16 sps:$4 sm:$0xff]  }
  0xcc   : > { %v1540_v61 = vld [vmem:[#allocation9] sm:$0xff]  ;;  %p7514_p6 = pnand %p7513_p0, %p7507_p11 }
  0xcd   : > { %1225 = vmatpush1.bf16.msra.mxu0 %v7041_v16  ;;  %v1544_v62 = vld [vmem:[#allocation9 + $0x20] sm:$0xff] }
  0xce   : > { %1226 = vmatprep.subr.bf16.mxu0 %v7046_v17  ;;  %v6032_v0 = vcombine.high %v1540_v61, %v1544_v62  ;;  %v1548_v2 = vld [vmem:[#allocation9 + $0x40] sm:$0xff] }
  0xcf   : > { %v1552_v3 = vld [vmem:[#allocation9 + $0x60] sm:$0xff] }
  0xd0   : > { %5961 = vmatmul.mubr.msk.bf16.gmra.mrb[8].mxu0 %vm619_vm1, %v7026_v15  ;;  %v6040_v6 = vcombine.high %v1548_v2, %v1552_v3  ;;  %v1556_v7 = vld [vmem:[#allocation9 + $0x80] sm:$0xff]  ;;  %3118 = vmatprep.subr.bf16.mxu1 %v6032_v0  ;;  %v6039_v12 = vcombine.low %v1548_v2, %v1552_v3 }
  0xd1   : > { %713 = vmatprep.mubr.bf16.mxu0 %v7596_v1  ;;  %1227 = vmatpush1.bf16.msra.mxu0 %v7044_v18  ;;  %v1560_v10 = vld [vmem:[#allocation9 + $0xa0] sm:$0xff] }
  0xd2   : > { %1228 = vmatprep.subr.bf16.mxu0 %v7049_v19  ;;  %v7080_v15 = vld [vmem:[#allocation6 + $0x8] ss:$16 sps:$4 sm:$0xff]   ;;  %v6048_v16 = vcombine.high %v1556_v7, %v1560_v10  ;;  %v7085_v19 = vld [vmem:[#allocation6 + $0x2c] ss:$16 sps:$4 sm:$0xff]  }
  0xd3   : > { %v1584_v47 = vld [vmem:[#allocation9 + $0x160] sm:$0xff] }
  0xd4   : > { %v1588_v0 = vld [vmem:[#allocation9 + $0x180] sm:$0xff] }
  0xd5   : > { %1229 = vmatpush1.bf16.msra.mxu0 %v7047_v21  ;;  %v1568_v21 = vld [vmem:[#allocation9 + $0xe0] sm:$0xff] }
  0xd6   : > { %1230 = vmatprep.subr.bf16.mxu0 %v7052_v22 }
  0xd8   : > { %5962 = vmatmul.mubr.msk.bf16.gmra.mrb[12].mxu0 %vm619_vm1, %v7027_v20  ;;  %v1564_v20 = vld [vmem:[#allocation9 + $0xc0] sm:$0xff] }
  0xd9   : > { %723 = vmatprep.mubr.bf16.mxu0 %v7596_v1  ;;  %1231 = vmatpush1.bf16.msra.mxu0 %v7050_v23 }
  0xda   : > { %1232 = vmatprep.subr.bf16.mxu0 %v7055_v24 }
  0xdd   : > { %1233 = vmatpush1.bf16.msra.mxu0 %v7053_v26  ;;  %v6047_v26 = vcombine.low %v1556_v7, %v1560_v10 }
  0xde   : > { %1234 = vmatprep.subr.bf16.mxu0 %v7058_v27 }
  0xe0   : > { %5963 = vmatmul.mubr.msk.bf16.gmra.mrb[16].mxu0 %vm619_vm1, %v7028_v25 }
  0xe1   : > { %733 = vmatprep.mubr.bf16.mxu0 %v7596_v1  ;;  %1235 = vmatpush1.bf16.msra.mxu0 %v7056_v28  ;;  %v7083_v28 = vld [vmem:[#allocation6 + $0x28] ss:$16 sps:$4 sm:$0xff]  }
  0xe2   : > { %1236 = vmatprep.subr.bf16.mxu0 %v7061_v29  ;;  %v6056_v29 = vcombine.high %v1564_v20, %v1568_v21 }
  0xe5   : > { %1237 = vmatpush1.bf16.msra.mxu0 %v7059_v31 }
  0xe6   : > { %1238 = vmatprep.subr.bf16.mxu0 %v7064_v32  ;;  %v7088_v32 = vld [vmem:[#allocation6 + $0x4c] ss:$16 sps:$4 sm:$0xff]  }
  0xe8   : > { %5964 = vmatmul.mubr.msk.bf16.gmra.mrb[20].mxu0 %vm619_vm1, %v7029_v30 }
  0xe9   : > { %743 = vmatprep.mubr.bf16.mxu0 %v7596_v1  ;;  %1239 = vmatpush1.bf16.msra.mxu0 %v7062_v33  ;;  %v1572_v33 = vld [vmem:[#allocation9 + $0x100] sm:$0xff] }
  0xea   : > { %1240 = vmatprep.subr.bf16.mxu0 %v7067_v34  ;;  %v1576_v34 = vld [vmem:[#allocation9 + $0x120] sm:$0xff] }
  0xed   : > { %1241 = vmatpush1.bf16.msra.mxu0 %v7065_v36 }
  0xee   : > { %1242 = vmatprep.subr.bf16.mxu0 %v7070_v37 }
  0xf0   : > { %5965 = vmatmul.mubr.msk.bf16.gmra.mrb[24].mxu0 %vm619_vm1, %v7030_v35 }
  0xf1   : > { %753 = vmatprep.mubr.bf16.mxu0 %v7596_v1  ;;  %1243 = vmatpush1.bf16.msra.mxu0 %v7068_v38  ;;  %v6031_v1 = vcombine.low %v1540_v61, %v1544_v62  ;;  %v6055_v38 = vcombine.low %v1564_v20, %v1568_v21 }
  0xf2   : > { %1244 = vmatprep.subr.bf16.mxu0 %v7073_v39 }
  0xf3   : > { %3119 = vmatpush1.bf16.msra.mxu1 %v6031_v1  ;;  %v1592_v1 = vld [vmem:[#allocation9 + $0x1a0] sm:$0xff] }
  0xf4   : > { %3120 = vmatprep.subr.bf16.mxu1 %v6040_v6  ;;  %v6079_v21 = vcombine.low %v1588_v0, %v1592_v1 }
  0xf5   : > { %1245 = vmatpush1.bf16.msra.mxu0 %v7071_v41  ;;  %v7086_v41 = vld [vmem:[#allocation6 + $0x48] ss:$16 sps:$4 sm:$0xff]  }
  0xf6   : > { %1246 = vmatprep.subr.bf16.mxu0 %v7076_v42  ;;  %v6064_v42 = vcombine.high %v1572_v33, %v1576_v34 }
  0xf7   : > { %3121 = vmatpush1.bf16.msra.mxu1 %v6039_v12 }
  0xf8   : > { %5966 = vmatmul.mubr.msk.bf16.gmra.mrb[28].mxu0 %vm619_vm1, %v7031_v40  ;;  %3122 = vmatprep.subr.bf16.mxu1 %v6048_v16  ;;  %v1600_v16 = vld [vmem:[#allocation9 + $0x1e0] sm:$0xff] }
  0xf9   : > { %1247 = vmatpush1.bf16.msra.mxu0 %v7074_v43 }
  0xfa   : > { %1248 = vmatprep.subr.bf16.mxu0 %v7079_v44 }
  0xfb   : > { %3123 = vmatpush1.bf16.msra.mxu1 %v6047_v26 }
  0xfc   : > { %3124 = vmatprep.subr.bf16.mxu1 %v6056_v29  ;;  %v1608_v29 = vld [vmem:[#allocation9 + $0x220] sm:$0xff] }
  0xfd   : > { %1249 = vmatpush1.bf16.msra.mxu0 %v7077_v45  ;;  %v7091_v45 = vld [vmem:[#allocation6 + $0x6c] ss:$16 sps:$4 sm:$0xff]  }
  0xfe   : > { %1331 = vmatprep.subr.bf16.mxu0 %v7082_v46  ;;  %v1580_v46 = vld [vmem:[#allocation9 + $0x140] sm:$0xff] }
  0xff   : > { %3125 = vmatpush1.bf16.msra.mxu1 %v6055_v38 }
 0x100   : > { %3126 = vmatprep.subr.bf16.mxu1 %v6064_v42  ;;  %v7103_v42 = vld [vmem:[#allocation6 + $0xec] ss:$16 sps:$4 sm:$0xff]  }
 0x193   : > { %v685_v54 = vpop.f32.mrb[0].mxu0 }
 0x194   : > { %v686_v55 = vadd.f32 %v685_v54, %v7927_v52  ;;  %v687_v56 = vpop.f32.mrb[1].mxu0 }
 0x195   : > { %v688_v57 = vadd.f32 %v687_v56, %v7930_v53  ;;  %v689_v58 = vpop.f32.mrb[2].mxu0 }
 0x196   : > { %v690_v59 = vadd.f32 %v689_v58, %v7927_v52  ;;  %v691_v60 = vpop.f32.mrb[3].mxu0  ;;  %v764_v4 = vmax.f32 %v686_v55, 0.0 }
 0x197   : > { %v692_v63 = vadd.f32 %v691_v60, %v7930_v53  ;;  %v765_v8 = vmax.f32 %v688_v57, 0.0  ;;  %v6063_v57 = vcombine.low %v1572_v33, %v1576_v34  ;;  %v6072_v60 = vcombine.high %v1580_v46, %v1584_v47 }
 0x198   : > { %v766_v5 = vmax.f32 %v690_v59, 0.0  ;;  %v7089_v59 = vld [vmem:[#allocation6 + $0x68] ss:$16 sps:$4 sm:$0xff]  }
 0x199   : > { %v767_v9 = vmax.f32 %v692_v63, 0.0  ;;  %v7094_v63 = vld [vmem:[#allocation6 + $0x8c] ss:$16 sps:$4 sm:$0xff]   ;;  %3127 = vmatpush1.bf16.msra.mxu1 %v6063_v57 }
 0x19a   : > { %v7936_v11 = vpack.c.bf16 %v766_v5, %v764_v4  ;;  %v6071_v5 = vcombine.low %v1580_v46, %v1584_v47  ;;  %3128 = vmatprep.subr.bf16.mxu1 %v6072_v60  ;;  %v7106_v60 = vld [vmem:[#allocation6 + $0x10c] ss:$16 sps:$4 sm:$0xff]  }
 0x19b   : > { %v7938_v13 = vpack.c.bf16 %v767_v9, %v765_v8  ;;  %v695_v14 = vpop.f32.mrb[4].mxu0  ;;  %v7092_v8 = vld [vmem:[#allocation6 + $0x88] ss:$16 sps:$4 sm:$0xff]   ;;  %v6080_v9 = vcombine.high %v1588_v0, %v1592_v1 }
 0x19c   : > { %v696_v17 = vadd.f32 %v695_v14, %v7927_v52  ;;  %v697_v18 = vpop.f32.mrb[5].mxu0  ;;  %v7097_v14 = vld [vmem:[#allocation6 + $0xac] ss:$16 sps:$4 sm:$0xff]  }
 0x19d   : > { %v698_v22 = vadd.f32 %v697_v18, %v7930_v53  ;;  %v699_v23 = vpop.f32.mrb[6].mxu0  ;;  %1250 = vmatprep.mubr.bf16.mxu0 %v7938_v13  ;;  %3129 = vmatpush1.bf16.msra.mxu1 %v6071_v5 }
 0x19e   : > { %v700_v24 = vadd.f32 %v699_v23, %v7927_v52  ;;  %v701_v25 = vpop.f32.mrb[7].mxu0  ;;  %1251 = vmatmul.mubr.bf16.vlgmr.msra.gmra.mrb[32].mxu0 %v7936_v11  ;;  %v768_v30 = vmax.f32 %v696_v17, 0.0  ;;  %v7095_v23 = vld [vmem:[#allocation6 + $0xa8] ss:$16 sps:$4 sm:$0xff]   ;;  %3130 = vmatprep.subr.bf16.mxu1 %v6080_v9 }
 0x19f   : > { %v702_v27 = vadd.f32 %v701_v25, %v7930_v53  ;;  %1332 = vmatpush1.bf16.msra.mxu0 %v7080_v15  ;;  %v769_v35 = vmax.f32 %v698_v22, 0.0  ;;  %v1596_v15 = vld [vmem:[#allocation9 + $0x1c0] sm:$0xff] }
 0x1a0   : > { %v770_v31 = vmax.f32 %v700_v24, 0.0  ;;  %1333 = vmatprep.subr.bf16.mxu0 %v7085_v19  ;;  %v6088_v24 = vcombine.high %v1596_v15, %v1600_v16  ;;  %v6087_v33 = vcombine.low %v1596_v15, %v1600_v16  ;;  %v1632_v15 = vld [vmem:[#allocation9 + $0x2e0] sm:$0xff] }
 0x1a1   : > { %v771_v36 = vmax.f32 %v702_v27, 0.0  ;;  %v7100_v27 = vld [vmem:[#allocation6 + $0xcc] ss:$16 sps:$4 sm:$0xff]   ;;  %3131 = vmatpush1.bf16.msra.mxu1 %v6079_v21 }
 0x1a2   : > { %v7946_v37 = vpack.c.bf16 %v770_v31, %v768_v30  ;;  %3132 = vmatprep.subr.bf16.mxu1 %v6088_v24 }
 0x1a3   : > { %v7948_v39 = vpack.c.bf16 %v771_v36, %v769_v35  ;;  %v705_v40 = vpop.f32.mrb[8].mxu0  ;;  %1334 = vmatpush1.bf16.msra.mxu0 %v7083_v28  ;;  %v1604_v28 = vld [vmem:[#allocation9 + $0x200] sm:$0xff] }
 0x1a4   : > { %v706_v43 = vadd.f32 %v705_v40, %v7927_v52  ;;  %v707_v44 = vpop.f32.mrb[9].mxu0  ;;  %1335 = vmatprep.subr.bf16.mxu0 %v7088_v32  ;;  %v7098_v36 = vld [vmem:[#allocation6 + $0xc8] ss:$16 sps:$4 sm:$0xff]   ;;  %v6096_v38 = vcombine.high %v1604_v28, %v1608_v29 }
 0x1a5   : > { %v708_v50 = vadd.f32 %v707_v44, %v7930_v53  ;;  %v709_v54 = vpop.f32.mrb[10].mxu0  ;;  %1260 = vmatprep.mubr.bf16.mxu0 %v7948_v39  ;;  %v1616_v44 = vld [vmem:[#allocation9 + $0x260] sm:$0xff]  ;;  %3133 = vmatpush1.bf16.msra.mxu1 %v6087_v33 }
 0x1a6   : > { %v710_v55 = vadd.f32 %v709_v54, %v7927_v52  ;;  %v711_v56 = vpop.f32.mrb[11].mxu0  ;;  %1261 = vmatmul.mubr.bf16.gmra.mrb[36].mxu0 %v7946_v37  ;;  %v772_v61 = vmax.f32 %v706_v43, 0.0  ;;  %v1612_v43 = vld [vmem:[#allocation9 + $0x240] sm:$0xff]  ;;  %v6095_v54 = vcombine.low %v1604_v28, %v1608_v29  ;;  %3134 = vmatprep.subr.bf16.mxu1 %v6096_v38 }
 0x1a7   : > { %v712_v58 = vadd.f32 %v711_v56, %v7930_v53  ;;  %1336 = vmatpush1.bf16.msra.mxu0 %v7086_v41  ;;  %v773_v2 = vmax.f32 %v708_v50, 0.0  ;;  %v7101_v56 = vld [vmem:[#allocation6 + $0xe8] ss:$16 sps:$4 sm:$0xff]   ;;  %v6104_v57 = vcombine.high %v1612_v43, %v1616_v44 }
 0x1a8   : > { %v774_v62 = vmax.f32 %v710_v55, 0.0  ;;  %1337 = vmatprep.subr.bf16.mxu0 %v7091_v45  ;;  %v1640_v28 = vld [vmem:[#allocation9 + $0x320] sm:$0xff] }
 0x1a9   : > { %v775_v3 = vmax.f32 %v712_v58, 0.0  ;;  %3135 = vmatpush1.bf16.msra.mxu1 %v6095_v54  ;;  %v7110_v38 = vld [vmem:[#allocation6 + $0x148] ss:$16 sps:$4 sm:$0xff]  }
 0x1aa   : > { %v7956_v4 = vpack.c.bf16 %v774_v62, %v772_v61  ;;  %v1620_v61 = vld [vmem:[#allocation9 + $0x280] sm:$0xff]  ;;  %3136 = vmatprep.subr.bf16.mxu1 %v6104_v57 }
 0x1ab   : > { %v7958_v6 = vpack.c.bf16 %v775_v3, %v773_v2  ;;  %v715_v7 = vpop.f32.mrb[12].mxu0  ;;  %1338 = vmatpush1.bf16.msra.mxu0 %v7089_v59  ;;  %v1624_v62 = vld [vmem:[#allocation9 + $0x2a0] sm:$0xff]  ;;  %v6103_v2 = vcombine.low %v1612_v43, %v1616_v44  ;;  %v7115_v43 = vld [vmem:[#allocation6 + $0x16c] ss:$16 sps:$4 sm:$0xff]  }
 0x1ac   : > { %v716_v10 = vadd.f32 %v715_v7, %v7927_v52  ;;  %v717_v12 = vpop.f32.mrb[13].mxu0  ;;  %1339 = vmatprep.subr.bf16.mxu0 %v7094_v63  ;;  %v7104_v7 = vld [vmem:[#allocation6 + $0x108] ss:$16 sps:$4 sm:$0xff]  }
 0x1ad   : > { %v718_v17 = vadd.f32 %v717_v12, %v7930_v53  ;;  %v719_v18 = vpop.f32.mrb[14].mxu0  ;;  %1270 = vmatprep.mubr.bf16.mxu0 %v7958_v6  ;;  %v7109_v12 = vld [vmem:[#allocation6 + $0x12c] ss:$16 sps:$4 sm:$0xff]   ;;  %3137 = vmatpush1.bf16.msra.mxu1 %v6103_v2  ;;  %v7991_v44 = vld [vmem:[#allocation9 + $0x340] sm:$0xff] }
 0x1ae   : > { %v720_v19 = vadd.f32 %v719_v18, %v7927_v52  ;;  %v721_v20 = vpop.f32.mrb[15].mxu0  ;;  %1271 = vmatmul.mubr.bf16.gmra.mrb[40].mxu0 %v7956_v4  ;;  %v776_v25 = vmax.f32 %v716_v10, 0.0  ;;  %v7113_v57 = vld [vmem:[#allocation6 + $0x168] ss:$16 sps:$4 sm:$0xff]  }
 0x1af   : > { %v722_v22 = vadd.f32 %v721_v20, %v7930_v53  ;;  %1340 = vmatpush1.bf16.msra.mxu0 %v7092_v8  ;;  %v777_v30 = vmax.f32 %v718_v17, 0.0  ;;  %v6112_v8 = vcombine.high %v1620_v61, %v1624_v62  ;;  %v6111_v20 = vcombine.low %v1620_v61, %v1624_v62  ;;  %v7118_v61 = vld [vmem:[#allocation6 + $0x18c] ss:$16 sps:$4 sm:$0xff]  }
 0x1b0   : > { %v778_v26 = vmax.f32 %v720_v19, 0.0  ;;  %1341 = vmatprep.subr.bf16.mxu0 %v7097_v14  ;;  %v1628_v14 = vld [vmem:[#allocation9 + $0x2c0] sm:$0xff] }
 0x1b1   : > { %v779_v31 = vmax.f32 %v722_v22, 0.0  ;;  %v7107_v22 = vld [vmem:[#allocation6 + $0x128] ss:$16 sps:$4 sm:$0xff]   ;;  %3138 = vmatprep.subr.bf16.mxu1 %v6112_v8  ;;  %v6119_v33 = vcombine.low %v1628_v14, %v1632_v15 }
 0x1b2   : > { %v7966_v32 = vpack.c.bf16 %v778_v26, %v776_v25  ;;  %v7112_v26 = vld [vmem:[#allocation6 + $0x14c] ss:$16 sps:$4 sm:$0xff]   ;;  %3139 = vmatpush1.bf16.msra.mxu1 %v6111_v20 }
 0x1b3   : > { %v7968_v34 = vpack.c.bf16 %v779_v31, %v777_v30  ;;  %v725_v35 = vpop.f32.mrb[16].mxu0  ;;  %1342 = vmatpush1.bf16.msra.mxu0 %v7095_v23  ;;  %v6120_v23 = vcombine.high %v1628_v14, %v1632_v15 }
 0x1b4   : > { %v726_v40 = vadd.f32 %v725_v35, %v7927_v52  ;;  %v727_v41 = vpop.f32.mrb[17].mxu0  ;;  %1343 = vmatprep.subr.bf16.mxu0 %v7100_v27  ;;  %v1636_v27 = vld [vmem:[#allocation9 + $0x300] sm:$0xff] }
 0x1b5   : > { %v728_v45 = vadd.f32 %v727_v41, %v7930_v53  ;;  %v729_v46 = vpop.f32.mrb[18].mxu0  ;;  %1280 = vmatprep.mubr.bf16.mxu0 %v7968_v34  ;;  %3140 = vmatprep.subr.bf16.mxu1 %v6120_v23 }
 0x1b6   : > { %v730_v47 = vadd.f32 %v729_v46, %v7927_v52  ;;  %v731_v50 = vpop.f32.mrb[19].mxu0  ;;  %1281 = vmatmul.mubr.bf16.gmra.mrb[44].mxu0 %v7966_v32  ;;  %v780_v58 = vmax.f32 %v726_v40, 0.0  ;;  %v6128_v40 = vcombine.high %v1636_v27, %v1640_v28  ;;  %3141 = vmatpush1.bf16.msra.mxu1 %v6119_v33  ;;  %v1553_v33 = vld [vmem:[#allocation9 + $0x68] sm:$0xff] }
 0x1b7   : > { %v732_v55 = vadd.f32 %v731_v50, %v7930_v53  ;;  %1344 = vmatpush1.bf16.msra.mxu0 %v7098_v36  ;;  %v781_v63 = vmax.f32 %v728_v45, 0.0  ;;  %v7993_v45 = vld [vmem:[#allocation9 + $0x360] sm:$0xff] }
 0x1b8   : > { %v782_v59 = vmax.f32 %v730_v47, 0.0  ;;  %1345 = vmatprep.subr.bf16.mxu0 %v7103_v42  ;;  %3142 = vmatprep.subr.bf16.mxu1 %v6128_v40  ;;  %v1557_v40 = vld [vmem:[#allocation9 + $0x88] sm:$0xff] }
 0x1b9   : > { %v783_v0 = vmax.f32 %v732_v55, 0.0  ;;  %v6127_v55 = vcombine.low %v1636_v27, %v1640_v28  ;;  %v1541_v27 = vld [vmem:[#allocation9 + $0x8] sm:$0xff]  ;;  %v7125_v28 = vld [vmem:[#allocation6 + $0x1e8] ss:$16 sps:$4 sm:$0xff]  }
 0x1ba   : > { %v7976_v1 = vpack.c.bf16 %v782_v59, %v780_v58  ;;  %v6136_v58 = vcombine.high %v7991_v44, %v7993_v45 }
 0x1bb   : > { %v7978_v3 = vpack.c.bf16 %v783_v0, %v781_v63  ;;  %v735_v5 = vpop.f32.mrb[20].mxu0  ;;  %1346 = vmatpush1.bf16.msra.mxu0 %v7101_v56  ;;  %3143 = vmatpush1.bf16.msra.mxu1 %v6127_v55  ;;  %v1577_v55 = vld [vmem:[#allocation9 + $0x128] sm:$0xff] }
 0x1bc   : > { %v736_v9 = vadd.f32 %v735_v5, %v7927_v52  ;;  %v737_v10 = vpop.f32.mrb[21].mxu0  ;;  %1347 = vmatprep.subr.bf16.mxu0 %v7106_v60  ;;  %3144 = vmatprep.subr.bf16.mxu1 %v6136_v58 }
 0x1bd   : > { %v738_v16 = vadd.f32 %v737_v10, %v7930_v53  ;;  %v739_v17 = vpop.f32.mrb[22].mxu0  ;;  %1290 = vmatprep.mubr.bf16.mxu0 %v7978_v3  ;;  %v7121_v10 = vld [vmem:[#allocation6 + $0x1ac] ss:$16 sps:$4 sm:$0xff]  }
 0x1be   : > { %v740_v18 = vadd.f32 %v739_v17, %v7927_v52  ;;  %v741_v19 = vpop.f32.mrb[23].mxu0  ;;  %1291 = vmatmul.mubr.bf16.gmra.mrb[48].mxu0 %v7976_v1  ;;  %v784_v24 = vmax.f32 %v736_v9, 0.0 }
 0x1bf   : > { %v742_v21 = vadd.f32 %v741_v19, %v7930_v53  ;;  %1348 = vmatpush1.bf16.msra.mxu0 %v7104_v7  ;;  %v785_v29 = vmax.f32 %v738_v16, 0.0  ;;  %v7116_v7 = vld [vmem:[#allocation6 + $0x188] ss:$16 sps:$4 sm:$0xff]  }
 0x1c0   : > { %v786_v25 = vmax.f32 %v740_v18, 0.0  ;;  %1349 = vmatprep.subr.bf16.mxu0 %v7109_v12  ;;  %v7119_v18 = vld [vmem:[#allocation6 + $0x1a8] ss:$16 sps:$4 sm:$0xff]  }
 0x1c1   : > { %v787_v30 = vmax.f32 %v742_v21, 0.0  ;;  %v7124_v21 = vld [vmem:[#allocation6 + $0x1cc] ss:$16 sps:$4 sm:$0xff]  }
 0x1c2   : > { %v7986_v31 = vpack.c.bf16 %v786_v25, %v784_v24 }
 0x1c3   : > { %v7988_v35 = vpack.c.bf16 %v787_v30, %v785_v29  ;;  %v745_v36 = vpop.f32.mrb[24].mxu0  ;;  %1350 = vmatpush1.bf16.msra.mxu0 %v7107_v22  ;;  %v1549_v30 = vld [vmem:[#allocation9 + $0x48] sm:$0xff] }
 0x1c4   : > { %v746_v41 = vadd.f32 %v745_v36, %v7927_v52  ;;  %v747_v42 = vpop.f32.mrb[25].mxu0  ;;  %1351 = vmatprep.subr.bf16.mxu0 %v7112_v26  ;;  %v7122_v26 = vld [vmem:[#allocation6 + $0x1c8] ss:$16 sps:$4 sm:$0xff]  }
 0x1c5   : > { %v748_v46 = vadd.f32 %v747_v42, %v7930_v53  ;;  %v749_v47 = vpop.f32.mrb[26].mxu0  ;;  %1300 = vmatprep.mubr.bf16.mxu0 %v7988_v35  ;;  %v6041_v42 = vcombine.low %v1549_v30, %v1553_v33 }
 0x1c6   : > { %v750_v50 = vadd.f32 %v749_v47, %v7927_v52  ;;  %v751_v54 = vpop.f32.mrb[27].mxu0  ;;  %1301 = vmatmul.mubr.bf16.gmra.mrb[52].mxu0 %v7986_v31  ;;  %v788_v59 = vmax.f32 %v746_v41, 0.0  ;;  %v1561_v41 = vld [vmem:[#allocation9 + $0xa8] sm:$0xff] }
 0x1c7   : > { %v752_v56 = vadd.f32 %v751_v54, %v7930_v53  ;;  %1352 = vmatpush1.bf16.msra.mxu0 %v7110_v38  ;;  %v789_v62 = vmax.f32 %v748_v46, 0.0  ;;  %v6042_v38 = vcombine.high %v1549_v30, %v1553_v33  ;;  %v1569_v46 = vld [vmem:[#allocation9 + $0xe8] sm:$0xff]  ;;  %v6049_v47 = vcombine.low %v1557_v40, %v1561_v41 }
 0x1c8   : > { %v790_v60 = vmax.f32 %v750_v50, 0.0  ;;  %1353 = vmatprep.subr.bf16.mxu0 %v7115_v43  ;;  %v6050_v43 = vcombine.high %v1557_v40, %v1561_v41  ;;  %v1573_v54 = vld [vmem:[#allocation9 + $0x108] sm:$0xff] }
 0x1c9   : > { %v791_v63 = vmax.f32 %v752_v56, 0.0  ;;  %v1581_v56 = vld [vmem:[#allocation9 + $0x148] sm:$0xff]  ;;  %v6065_v58 = vcombine.low %v1573_v54, %v1577_v55 }
 0x1ca   : > { %v8002_v0 = vpack.c.bf16 %v790_v60, %v788_v59  ;;  %v1589_v60 = vld [vmem:[#allocation9 + $0x188] sm:$0xff] }
 0x1cb   : > { %v8004_v2 = vpack.c.bf16 %v791_v63, %v789_v62  ;;  %v755_v5 = vpop.f32.mrb[28].mxu0  ;;  %1354 = vmatpush1.bf16.msra.mxu0 %v7113_v57  ;;  %v1585_v57 = vld [vmem:[#allocation9 + $0x168] sm:$0xff] }
 0x1cc   : > { %v756_v8 = vadd.f32 %v755_v5, %v7927_v52  ;;  %v757_v9 = vpop.f32.mrb[29].mxu0  ;;  %1355 = vmatprep.subr.bf16.mxu0 %v7118_v61  ;;  %v6074_v59 = vcombine.high %v1581_v56, %v1585_v57  ;;  %v1593_v61 = vld [vmem:[#allocation9 + $0x1a8] sm:$0xff] }
 0x1cd   : > { %v758_v12 = vadd.f32 %v757_v9, %v7930_v53  ;;  %v759_v14 = vpop.f32.mrb[30].mxu0  ;;  %1310 = vmatprep.mubr.bf16.mxu0 %v8004_v2  ;;  %v6082_v62 = vcombine.high %v1589_v60, %v1593_v61  ;;  %v1597_v63 = vld [vmem:[#allocation9 + $0x1c8] sm:$0xff] }
 0x1ce   : > { %v760_v15 = vadd.f32 %v759_v14, %v7927_v52  ;;  %v761_v16 = vpop.f32.mrb[31].mxu0  ;;  %1311 = vmatmul.mubr.bf16.gmra.mrb[56].mxu0 %v8002_v0  ;;  %v792_v19 = vmax.f32 %v756_v8, 0.0  ;;  %v7127_v52 = vld [vmem:[#allocation6 + $0x1ec] ss:$16 sps:$4 sm:$0xff]   ;;  %v1656_v8 = vld [vmem:[#allocation9 + $0x3a0] sm:$0xff] }
 0x1cf   : > { %v762_v17 = vadd.f32 %v761_v16, %v7930_v53  ;;  %1356 = vmatpush1.bf16.msra.mxu0 %v7116_v7  ;;  %v793_v22 = vmax.f32 %v758_v12, 0.0  ;;  %v1545_v53 = vld [vmem:[#allocation9 + $0x28] sm:$0xff]  ;;  %v1652_v7 = vld [vmem:[#allocation9 + $0x380] sm:$0xff] }
 0x1d0   : > { %v794_v20 = vmax.f32 %v760_v15, 0.0  ;;  %1357 = vmatprep.subr.bf16.mxu0 %v7121_v10  ;;  %v6034_v29 = vcombine.high %v1541_v27, %v1545_v53  ;;  %v6033_v36 = vcombine.low %v1541_v27, %v1545_v53  ;;  %v1601_v5 = vld [vmem:[#allocation9 + $0x1e8] sm:$0xff]  ;;  %v6144_v9 = vcombine.high %v1652_v7, %v1656_v8  ;;  %v1660_v15 = vld [vmem:[#allocation9 + $0x3c0] sm:$0xff] }
 0x1d1   : > { %v795_v23 = vmax.f32 %v762_v17, 0.0  ;;  %v6081_v10 = vcombine.low %v1589_v60, %v1593_v61  ;;  %v6143_v12 = vcombine.low %v1652_v7, %v1656_v8  ;;  %v1605_v14 = vld [vmem:[#allocation9 + $0x208] sm:$0xff]  ;;  %v1664_v16 = vld [vmem:[#allocation9 + $0x3e0] sm:$0xff] }
 0x1d2   : > { %v8012_v24 = vpack.c.bf16 %v794_v20, %v792_v19  ;;  %v6151_v17 = vcombine.low %v1660_v15, %v1664_v16  ;;  %v1613_v19 = vld [vmem:[#allocation9 + $0x248] sm:$0xff] }
 0x1d3   : > { %v8014_v25 = vpack.c.bf16 %v795_v23, %v793_v22  ;;  %1358 = vmatpush1.bf16.msra.mxu0 %v7119_v18  ;;  %v1617_v20 = vld [vmem:[#allocation9 + $0x268] sm:$0xff]  ;;  %v8031_v22 = vld [vmem:[#allocation9 + $0x420] sm:$0xff] }
 0x1d4   : > { %1359 = vmatprep.subr.bf16.mxu0 %v7124_v21  ;;  %v8029_v21 = vld [vmem:[#allocation9 + $0x400] sm:$0xff]  ;;  %v8033_v23 = vld [vmem:[#allocation9 + $0x408] sm:$0xff]  ;;  %v6106_v53 = vcombine.high %v1613_v19, %v1617_v20  ;;  %v6105_v30 = vcombine.low %v1613_v19, %v1617_v20 }
 0x1d5   : > { %1320 = vmatprep.mubr.bf16.mxu0 %v8014_v25 }
 0x1d6   : > { %1321 = vmatmul.mubr.bf16.gmra.mrb[60].mxu0 %v8012_v24 }
 0x1d7   : > { %1360 = vmatpush1.bf16.msra.mxu0 %v7122_v26  ;;  %1363 = vmatprep.mubr.bf16.mxu0 %v7938_v13  ;;  %v1565_v13 = vld [vmem:[#allocation9 + $0xc8] sm:$0xff] }
 0x1d8   : > { %1361 = vmatprep.subr.bf16.mxu0 %v7127_v52  ;;  %v6058_v50 = vcombine.high %v1565_v13, %v1569_v46  ;;  %v8037_v26 = vld [vmem:[#allocation9 + $0x428] sm:$0xff]  ;;  %v6159_v52 = vcombine.low %v8029_v21, %v8031_v22 }
 0x1d9   : > { %v6161_v27 = vcombine.low %v8033_v23, %v8037_v26 }
 0x1db   : > { %1362 = vmatpush1.bf16.msra.mxu0 %v7125_v28  ;;  %v1621_v28 = vld [vmem:[#allocation9 + $0x288] sm:$0xff] }
 0x1dc   : > { %3344 = vmatprep.subr.bf16.mxu0 %v6034_v29  ;;  %v1625_v29 = vld [vmem:[#allocation9 + $0x2a8] sm:$0xff] }
 0x1dd   : > { %v6114_v33 = vcombine.high %v1621_v28, %v1625_v29  ;;  %v6113_v40 = vcombine.low %v1621_v28, %v1625_v29  ;;  %v1688_v28 = vld [vmem:[#allocation9 + $0x4a0] sm:$0xff]  ;;  %v1685_v29 = vld [vmem:[#allocation9 + $0x488] sm:$0xff] }
 0x1de   : > { %1364 = vmatmul.mubr.bf16.vlgmr.msra.gmra.mrb[64].mxu0 %v7936_v11  ;;  %v6057_v11 = vcombine.low %v1565_v13, %v1569_v46  ;;  %v1645_v13 = vld [vmem:[#allocation9 + $0x348] sm:$0xff] }
 0x1df   : > { %1373 = vmatprep.mubr.bf16.mxu0 %v7948_v39  ;;  %3345 = vmatpush1.bf16.msra.mxu0 %v6033_v36  ;;  %v6066_v39 = vcombine.high %v1573_v54, %v1577_v55  ;;  %v1629_v36 = vld [vmem:[#allocation9 + $0x2c8] sm:$0xff] }
 0x1e0   : > { %3346 = vmatprep.subr.bf16.mxu0 %v6042_v38  ;;  %v1633_v38 = vld [vmem:[#allocation9 + $0x2e8] sm:$0xff] }
 0x1e1   : > { %v6122_v41 = vcombine.high %v1629_v36, %v1633_v38  ;;  %v1649_v46 = vld [vmem:[#allocation9 + $0x368] sm:$0xff] }
 0x1e2   : > { %v1653_v54 = vld [vmem:[#allocation9 + $0x388] sm:$0xff] }
 0x1e3   : > { %3347 = vmatpush1.bf16.msra.mxu0 %v6041_v42  ;;  %v1637_v42 = vld [vmem:[#allocation9 + $0x308] sm:$0xff] }
 0x1e4   : > { %3348 = vmatprep.subr.bf16.mxu0 %v6050_v43  ;;  %v1641_v43 = vld [vmem:[#allocation9 + $0x328] sm:$0xff] }
 0x1e5   : > { %v1657_v55 = vld [vmem:[#allocation9 + $0x3a8] sm:$0xff] }
 0x1e6   : > { %1374 = vmatmul.mubr.bf16.gmra.mrb[68].mxu0 %v7946_v37  ;;  %v6073_v37 = vcombine.low %v1581_v56, %v1585_v57  ;;  %v6145_v56 = vcombine.low %v1653_v54, %v1657_v55 }
 0x1e7   : > { %1383 = vmatprep.mubr.bf16.mxu0 %v7958_v6  ;;  %3349 = vmatpush1.bf16.msra.mxu0 %v6049_v47  ;;  %v6135_v6 = vcombine.low %v7991_v44, %v7993_v45  ;;  %v6152_v44 = vcombine.high %v1660_v15, %v1664_v16  ;;  %v6089_v45 = vcombine.low %v1597_v63, %v1601_v5  ;;  %v1681_v15 = vld [vmem:[#allocation9 + $0x468] sm:$0xff] }
 0x1e8   : > { %3350 = vmatprep.subr.bf16.mxu0 %v6058_v50  ;;  %v6129_v47 = vcombine.low %v1637_v42, %v1641_v43  ;;  %v6138_v50 = vcombine.high %v1645_v13, %v1649_v46 }
 0x1e9   : > { %3145 = vmatpush1.bf16.msra.mxu1 %v6135_v6 }
 0x1ea   : > { %3146 = vmatprep.subr.bf16.mxu1 %v6144_v9 }
 0x1eb   : > { %3351 = vmatpush1.bf16.msra.mxu0 %v6057_v11  ;;  %v1661_v11 = vld [vmem:[#allocation9 + $0x3c8] sm:$0xff] }
 0x1ec   : > { %3352 = vmatprep.subr.bf16.mxu0 %v6066_v39  ;;  %v1665_v39 = vld [vmem:[#allocation9 + $0x3e8] sm:$0xff] }
 0x1ed   : > { %3147 = vmatpush1.bf16.msra.mxu1 %v6143_v12  ;;  %v6154_v57 = vcombine.high %v1661_v11, %v1665_v39 }
 0x1ee   : > { %1384 = vmatmul.mubr.bf16.gmra.mrb[72].mxu0 %v7956_v4  ;;  %v6090_v4 = vcombine.high %v1597_v63, %v1601_v5  ;;  %3148 = vmatprep.subr.bf16.mxu1 %v6152_v44 }
 0x1ef   : > { %1393 = vmatprep.mubr.bf16.mxu0 %v7968_v34  ;;  %3353 = vmatpush1.bf16.msra.mxu0 %v6065_v58  ;;  %v1609_v34 = vld [vmem:[#allocation9 + $0x228] sm:$0xff]  ;;  %v6153_v58 = vcombine.low %v1661_v11, %v1665_v39  ;;  %v1700_v39 = vld [vmem:[#allocation9 + $0x500] sm:$0xff] }
 0x1f0   : > { %3354 = vmatprep.subr.bf16.mxu0 %v6074_v59  ;;  %v6098_v18 = vcombine.high %v1605_v14, %v1609_v34 }
 0x1f1   : > { %3149 = vmatpush1.bf16.msra.mxu1 %v6151_v17 }
 0x1f3   : > { %3355 = vmatpush1.bf16.msra.mxu0 %v6073_v37 }
 0x1f4   : > { %3356 = vmatprep.subr.bf16.mxu0 %v6082_v62 }
 0x1f6   : > { %1394 = vmatmul.mubr.bf16.gmra.mrb[76].mxu0 %v7966_v32  ;;  %v6160_v32 = vcombine.high %v8029_v21, %v8031_v22 }
 0x1f7   : > { %1403 = vmatprep.mubr.bf16.mxu0 %v7978_v3  ;;  %3357 = vmatpush1.bf16.msra.mxu0 %v6081_v10  ;;  %v6097_v3 = vcombine.low %v1605_v14, %v1609_v34  ;;  %v1676_v10 = vld [vmem:[#allocation9 + $0x440] sm:$0xff]  ;;  %v1677_v34 = vld [vmem:[#allocation9 + $0x448] sm:$0xff] }
 0x1f8   : > { %3358 = vmatprep.subr.bf16.mxu0 %v6090_v4  ;;  %3231 = vmatprep.subr.bf16.mxu1 %v6160_v32  ;;  %v1680_v14 = vld [vmem:[#allocation9 + $0x460] sm:$0xff]  ;;  %v6170_v20 = vcombine.high %v1677_v34, %v1681_v15 }
 0x1f9   : > { %v6168_v19 = vcombine.high %v1676_v10, %v1680_v14  ;;  %v1684_v32 = vld [vmem:[#allocation9 + $0x480] sm:$0xff] }
 0x1fb   : > { %3359 = vmatpush1.bf16.msra.mxu0 %v6089_v45 }
 0x1fc   : > { %3360 = vmatprep.subr.bf16.mxu0 %v6098_v18 }
 0x1fe   : > { %1404 = vmatmul.mubr.bf16.gmra.mrb[80].mxu0 %v7976_v1  ;;  %v6121_v1 = vcombine.low %v1629_v36, %v1633_v38 }
 0x1ff   : > { %1413 = vmatprep.mubr.bf16.mxu0 %v7988_v35  ;;  %3361 = vmatpush1.bf16.msra.mxu0 %v6097_v3  ;;  %v6130_v35 = vcombine.high %v1637_v42, %v1641_v43 }
 0x200   : > { %3362 = vmatprep.subr.bf16.mxu0 %v6106_v53 }
 0x203   : > { %3363 = vmatpush1.bf16.msra.mxu0 %v6105_v30  ;;  %v1689_v30 = vld [vmem:[#allocation9 + $0x4a8] sm:$0xff] }
 0x204   : > { %3364 = vmatprep.subr.bf16.mxu0 %v6114_v33 }
 0x206   : > { %1414 = vmatmul.mubr.bf16.gmra.mrb[84].mxu0 %v7986_v31  ;;  %v6137_v31 = vcombine.low %v1645_v13, %v1649_v46  ;;  %v1692_v13 = vld [vmem:[#allocation9 + $0x4c0] sm:$0xff] }
 0x207   : > { %1423 = vmatprep.mubr.bf16.mxu0 %v8004_v2  ;;  %3365 = vmatpush1.bf16.msra.mxu0 %v6113_v40  ;;  %v6146_v2 = vcombine.high %v1653_v54, %v1657_v55  ;;  %v6167_v40 = vcombine.low %v1676_v10, %v1680_v14  ;;  %v1693_v54 = vld [vmem:[#allocation9 + $0x4c8] sm:$0xff]  ;;  %v1708_v10 = vld [vmem:[#allocation9 + $0x540] sm:$0xff] }
 0x208   : > { %3366 = vmatprep.subr.bf16.mxu0 %v6122_v41  ;;  %v6169_v41 = vcombine.low %v1677_v34, %v1681_v15  ;;  %v1697_v55 = vld [vmem:[#allocation9 + $0x4e8] sm:$0xff]  ;;  %v1712_v14 = vld [vmem:[#allocation9 + $0x560] sm:$0xff] }
 0x209   : > { %v6186_v11 = vcombine.high %v1693_v54, %v1697_v55  ;;  %v1709_v34 = vld [vmem:[#allocation9 + $0x548] sm:$0xff] }
 0x20a   : > { %v1713_v15 = vld [vmem:[#allocation9 + $0x568] sm:$0xff] }
 0x20b   : > { %3367 = vmatpush1.bf16.msra.mxu0 %v6121_v1  ;;  %v6176_v1 = vcombine.high %v1684_v32, %v1688_v28 }
 0x20c   : > { %3368 = vmatprep.subr.bf16.mxu0 %v6130_v35  ;;  %v6178_v35 = vcombine.high %v1685_v29, %v1689_v30 }
 0x20e   : > { %1424 = vmatmul.mubr.bf16.gmra.mrb[88].mxu0 %v8002_v0  ;;  %v6162_v0 = vcombine.high %v8033_v23, %v8037_v26  ;;  %v6175_v26 = vcombine.low %v1684_v32, %v1688_v28  ;;  %v6202_v28 = vcombine.high %v1709_v34, %v1713_v15 }
 0x20f   : > { %1433 = vmatprep.mubr.bf16.mxu0 %v8014_v25  ;;  %3369 = vmatpush1.bf16.msra.mxu0 %v6129_v47  ;;  %v8052_v25 = vld [vmem:[#allocation8] sm:$0xf] }
 0x210   : > { %3370 = vmatprep.subr.bf16.mxu0 %v6138_v50  ;;  %v8056_v59 = vrot.slane %v8052_v25, %v7921_v49  ;;  %v8060_v60 = vrot.slane %v8052_v25, %v7924_v51  ;;  %v1696_v50 = vld [vmem:[#allocation9 + $0x4e0] sm:$0xff] }
 0x213   : > { %3371 = vmatpush1.bf16.msra.mxu0 %v6137_v31 }
 0x214   : > { %3372 = vmatprep.subr.bf16.mxu0 %v6146_v2  ;;  %v6184_v2 = vcombine.high %v1692_v13, %v1696_v50 }
 0x216   : > { %1434 = vmatmul.mubr.bf16.gmra.mrb[92].mxu0 %v8012_v24 }
 0x217   : > { %3373 = vmatpush1.bf16.msra.mxu0 %v6145_v56 }
 0x218   : > { %3374 = vmatprep.subr.bf16.mxu0 %v6154_v57 }
 0x21b   : > { %3375 = vmatpush1.bf16.msra.mxu0 %v6153_v58  ;;  %v1704_v58 = vld [vmem:[#allocation9 + $0x520] sm:$0xff] }
 0x21c   : > { %3457 = vmatprep.subr.bf16.mxu0 %v6162_v0  ;;  %v1701_v0 = vld [vmem:[#allocation9 + $0x508] sm:$0xff] }
 0x271   : > { %v1252_v61 = vpop.f32.mrb[32].mxu0 }
 0x272   : > { %v1253_v24 = vadd.f32 %v1252_v61, %v8056_v59  ;;  %v1254_v37 = vpop.f32.mrb[33].mxu0  ;;  %v1705_v61 = vld [vmem:[#allocation9 + $0x528] sm:$0xff] }
 0x273   : > { %v1255_v6 = vadd.f32 %v1254_v37, %v8060_v60  ;;  %v1256_v62 = vpop.f32.mrb[34].mxu0 }
 0x274   : > { %v1257_v63 = vadd.f32 %v1256_v62, %v8056_v59  ;;  %v1258_v5 = vpop.f32.mrb[35].mxu0  ;;  %v1444_v8 = vmax.f32 %v1253_v24, 0.0  ;;  %v6183_v62 = vcombine.low %v1692_v13, %v1696_v50 }
 0x275   : > { %v1259_v7 = vadd.f32 %v1258_v5, %v8060_v60  ;;  %v1445_v12 = vmax.f32 %v1255_v6, 0.0 }
 0x276   : > { %v1448_v9 = vmax.f32 %v1257_v63, 0.0  ;;  %v6185_v63 = vcombine.low %v1693_v54, %v1697_v55  ;;  %v1724_v54 = vld [vmem:[#allocation9 + $0x5c0] sm:$0xff] }
 0x277   : > { %v1449_v4 = vmax.f32 %v1259_v7, 0.0 }
 0x278   : > { %v8066_v16 = vpack.c.bf16 %v1448_v9, %v1444_v8  ;;  %v6192_v8 = vcombine.high %v1700_v39, %v1704_v58  ;;  %v6194_v9 = vcombine.high %v1701_v0, %v1705_v61 }
 0x279   : > { %v8068_v44 = vpack.c.bf16 %v1449_v4, %v1445_v12  ;;  %v1262_v45 = vpop.f32.mrb[36].mxu0 }
 0x27a   : > { %v1263_v17 = vadd.f32 %v1262_v45, %v8056_v59  ;;  %v1264_v18 = vpop.f32.mrb[37].mxu0 }
 0x27b   : > { %v1265_v3 = vadd.f32 %v1264_v18, %v8060_v60  ;;  %v1266_v53 = vpop.f32.mrb[38].mxu0  ;;  %3150 = vmatprep.mubr.bf16.mxu1 %v8068_v44  ;;  %3376 = vmatprep.mubr.bf16.mxu0 %v8068_v44 }
 0x27c   : > { %v1267_v33 = vadd.f32 %v1266_v53, %v8056_v59  ;;  %v1268_v36 = vpop.f32.mrb[39].mxu0  ;;  %3151 = vmatmul.mubr.bf16.vlgmr.msra.gmra.mrb[0].mxu1 %v8066_v16  ;;  %3377 = vmatmul.mubr.bf16.vlgmr.msra.gmra.mrb[96].mxu0 %v8066_v16  ;;  %v1452_v42 = vmax.f32 %v1263_v17, 0.0  ;;  %v6200_v53 = vcombine.high %v1708_v10, %v1712_v14 }
 0x27d   : > { %v1269_v38 = vadd.f32 %v1268_v36, %v8060_v60  ;;  %3232 = vmatpush1.bf16.msra.mxu1 %v6159_v52  ;;  %3458 = vmatpush1.bf16.msra.mxu0 %v6161_v27  ;;  %v1453_v46 = vmax.f32 %v1265_v3, 0.0  ;;  %v6177_v52 = vcombine.low %v1685_v29, %v1689_v30  ;;  %v1716_v29 = vld [vmem:[#allocation9 + $0x580] sm:$0xff] }
 0x27e   : > { %v1456_v43 = vmax.f32 %v1267_v33, 0.0  ;;  %3233 = vmatprep.subr.bf16.mxu1 %v6168_v19  ;;  %3459 = vmatprep.subr.bf16.mxu0 %v6170_v20  ;;  %v6191_v19 = vcombine.low %v1700_v39, %v1704_v58  ;;  %v6193_v20 = vcombine.low %v1701_v0, %v1705_v61  ;;  %v1720_v36 = vld [vmem:[#allocation9 + $0x5a0] sm:$0xff] }
 0x27f   : > { %v1457_v47 = vmax.f32 %v1269_v38, 0.0  ;;  %v1717_v38 = vld [vmem:[#allocation9 + $0x588] sm:$0xff]  ;;  %v6207_v39 = vcombine.low %v1716_v29, %v1720_v36 }
 0x280   : > { %v8084_v21 = vpack.c.bf16 %v1456_v43, %v1452_v42 }
 0x281   : > { %v8086_v22 = vpack.c.bf16 %v1457_v47, %v1453_v46  ;;  %v1272_v23 = vpop.f32.mrb[40].mxu0  ;;  %3234 = vmatpush1.bf16.msra.mxu1 %v6167_v40  ;;  %3460 = vmatpush1.bf16.msra.mxu0 %v6169_v41  ;;  %v1721_v40 = vld [vmem:[#allocation9 + $0x5a8] sm:$0xff]  ;;  %v6208_v47 = vcombine.high %v1716_v29, %v1720_v36 }
 0x282   : > { %v1273_v27 = vadd.f32 %v1272_v23, %v8056_v59  ;;  %v1274_v31 = vpop.f32.mrb[41].mxu0  ;;  %3235 = vmatprep.subr.bf16.mxu1 %v6176_v1  ;;  %3461 = vmatprep.subr.bf16.mxu0 %v6178_v35  ;;  %v6199_v1 = vcombine.low %v1708_v10, %v1712_v14  ;;  %v6201_v35 = vcombine.low %v1709_v34, %v1713_v15 }
 0x283   : > { %v1275_v56 = vadd.f32 %v1274_v31, %v8060_v60  ;;  %v1276_v57 = vpop.f32.mrb[42].mxu0  ;;  %3160 = vmatprep.mubr.bf16.mxu1 %v8086_v22  ;;  %3386 = vmatprep.mubr.bf16.mxu0 %v8086_v22  ;;  %v6210_v50 = vcombine.high %v1717_v38, %v1721_v40 }
 0x284   : > { %v1277_v24 = vadd.f32 %v1276_v57, %v8056_v59  ;;  %v1278_v37 = vpop.f32.mrb[43].mxu0  ;;  %3161 = vmatmul.mubr.bf16.gmra.mrb[4].mxu1 %v8084_v21  ;;  %3387 = vmatmul.mubr.bf16.gmra.mrb[100].mxu0 %v8084_v21  ;;  %v1460_v5 = vmax.f32 %v1273_v27, 0.0  ;;  %v1729_v27 = vld [vmem:[#allocation9 + $0x5e8] sm:$0xff] }
 0x285   : > { %v1279_v6 = vadd.f32 %v1278_v37, %v8060_v60  ;;  %3236 = vmatpush1.bf16.msra.mxu1 %v6175_v26  ;;  %3462 = vmatpush1.bf16.msra.mxu0 %v6177_v52  ;;  %v1461_v12 = vmax.f32 %v1275_v56, 0.0  ;;  %v1728_v26 = vld [vmem:[#allocation9 + $0x5e0] sm:$0xff]  ;;  %v1725_v52 = vld [vmem:[#allocation9 + $0x5c8] sm:$0xff]  ;;  %v6209_v56 = vcombine.low %v1717_v38, %v1721_v40 }
 0x286   : > { %v1464_v7 = vmax.f32 %v1277_v24, 0.0  ;;  %3237 = vmatprep.subr.bf16.mxu1 %v6184_v2  ;;  %3463 = vmatprep.subr.bf16.mxu0 %v6186_v11  ;;  %v6216_v0 = vcombine.high %v1724_v54, %v1728_v26  ;;  %v6218_v61 = vcombine.high %v1725_v52, %v1729_v27  ;;  %v1732_v24 = vld [vmem:[#allocation9 + $0x600] sm:$0xff]  ;;  %v6215_v10 = vcombine.low %v1724_v54, %v1728_v26 }
 0x287   : > { %v1465_v4 = vmax.f32 %v1279_v6, 0.0 }
 0x288   : > { %v8096_v45 = vpack.c.bf16 %v1464_v7, %v1460_v5  ;;  %v1737_v5 = vld [vmem:[#allocation9 + $0x628] sm:$0xff] }
 0x289   : > { %v8098_v17 = vpack.c.bf16 %v1465_v4, %v1461_v12  ;;  %v1282_v18 = vpop.f32.mrb[44].mxu0  ;;  %3238 = vmatpush1.bf16.msra.mxu1 %v6183_v62  ;;  %3464 = vmatpush1.bf16.msra.mxu0 %v6185_v63  ;;  %v1736_v62 = vld [vmem:[#allocation9 + $0x620] sm:$0xff]  ;;  %v1733_v63 = vld [vmem:[#allocation9 + $0x608] sm:$0xff]  ;;  %v6217_v12 = vcombine.low %v1725_v52, %v1729_v27 }
 0x28a   : > { %v1283_v32 = vadd.f32 %v1282_v18, %v8056_v59  ;;  %v1284_v3 = vpop.f32.mrb[45].mxu0  ;;  %3239 = vmatprep.subr.bf16.mxu1 %v6192_v8  ;;  %3465 = vmatprep.subr.bf16.mxu0 %v6194_v9  ;;  %v6224_v34 = vcombine.high %v1732_v24, %v1736_v62  ;;  %v6226_v15 = vcombine.high %v1733_v63, %v1737_v5  ;;  %v1740_v18 = vld [vmem:[#allocation9 + $0x640] sm:$0xff] }
 0x28b   : > { %v1285_v30 = vadd.f32 %v1284_v3, %v8060_v60  ;;  %v1286_v33 = vpop.f32.mrb[46].mxu0  ;;  %3170 = vmatprep.mubr.bf16.mxu1 %v8098_v17  ;;  %3396 = vmatprep.mubr.bf16.mxu0 %v8098_v17  ;;  %v1741_v3 = vld [vmem:[#allocation9 + $0x648] sm:$0xff]  ;;  %v6225_v36 = vcombine.low %v1733_v63, %v1737_v5 }
 0x28c   : > { %v1287_v41 = vadd.f32 %v1286_v33, %v8056_v59  ;;  %v1288_v42 = vpop.f32.mrb[47].mxu0  ;;  %3171 = vmatmul.mubr.bf16.gmra.mrb[8].mxu1 %v8096_v45  ;;  %3397 = vmatmul.mubr.bf16.gmra.mrb[104].mxu0 %v8096_v45  ;;  %v1468_v13 = vmax.f32 %v1283_v32, 0.0  ;;  %v1744_v32 = vld [vmem:[#allocation9 + $0x660] sm:$0xff]  ;;  %v6223_v33 = vcombine.low %v1732_v24, %v1736_v62  ;;  %v1761_v24 = vld [vmem:[#allocation9 + $0x6e8] sm:$0xff] }
 0x28d   : > { %v1289_v43 = vadd.f32 %v1288_v42, %v8060_v60  ;;  %3240 = vmatpush1.bf16.msra.mxu1 %v6191_v19  ;;  %3466 = vmatpush1.bf16.msra.mxu0 %v6193_v20  ;;  %v1469_v55 = vmax.f32 %v1285_v30, 0.0 }
 0x28e   : > { %v1472_v46 = vmax.f32 %v1287_v41, 0.0  ;;  %3241 = vmatprep.subr.bf16.mxu1 %v6200_v53  ;;  %3467 = vmatprep.subr.bf16.mxu0 %v6202_v28  ;;  %v1745_v53 = vld [vmem:[#allocation9 + $0x668] sm:$0xff]  ;;  %v6232_v41 = vcombine.high %v1740_v18, %v1744_v32 }
 0x28f   : > { %v1473_v23 = vmax.f32 %v1289_v43, 0.0  ;;  %v6234_v42 = vcombine.high %v1741_v3, %v1745_v53  ;;  %v1748_v43 = vld [vmem:[#allocation9 + $0x680] sm:$0xff]  ;;  %v6233_v26 = vcombine.low %v1741_v3, %v1745_v53 }
 0x290   : > { %v8108_v31 = vpack.c.bf16 %v1472_v46, %v1468_v13  ;;  %v1752_v13 = vld [vmem:[#allocation9 + $0x6a0] sm:$0xff]  ;;  %v1749_v46 = vld [vmem:[#allocation9 + $0x688] sm:$0xff] }
 0x291   : > { %v8110_v2 = vpack.c.bf16 %v1473_v23, %v1469_v55  ;;  %v1292_v11 = vpop.f32.mrb[48].mxu0  ;;  %3242 = vmatpush1.bf16.msra.mxu1 %v6199_v1  ;;  %3468 = vmatpush1.bf16.msra.mxu0 %v6201_v35  ;;  %v6231_v23 = vcombine.low %v1740_v18, %v1744_v32  ;;  %v6239_v63 = vcombine.low %v1748_v43, %v1752_v13  ;;  %v1769_v18 = vld [vmem:[#allocation9 + $0x728] sm:$0xff] }
 0x292   : > { %v1293_v57 = vadd.f32 %v1292_v11, %v8056_v59  ;;  %v1294_v58 = vpop.f32.mrb[49].mxu0  ;;  %3243 = vmatprep.subr.bf16.mxu1 %v6208_v47  ;;  %3469 = vmatprep.subr.bf16.mxu0 %v6210_v50  ;;  %v1753_v47 = vld [vmem:[#allocation9 + $0x6a8] sm:$0xff]  ;;  %v6240_v11 = vcombine.high %v1748_v43, %v1752_v13  ;;  %v1776_v43 = vld [vmem:[#allocation9 + $0x760] sm:$0xff] }
 0x293   : > { %v1295_v37 = vadd.f32 %v1294_v58, %v8060_v60  ;;  %v1296_v6 = vpop.f32.mrb[50].mxu0  ;;  %3180 = vmatprep.mubr.bf16.mxu1 %v8110_v2  ;;  %3406 = vmatprep.mubr.bf16.mxu0 %v8110_v2  ;;  %v6241_v5 = vcombine.low %v1749_v46, %v1753_v47 }
 0x294   : > { %v1297_v7 = vadd.f32 %v1296_v6, %v8056_v59  ;;  %v1298_v8 = vpop.f32.mrb[51].mxu0  ;;  %3181 = vmatmul.mubr.bf16.gmra.mrb[12].mxu1 %v8108_v31  ;;  %3407 = vmatmul.mubr.bf16.gmra.mrb[108].mxu0 %v8108_v31  ;;  %v1476_v4 = vmax.f32 %v1293_v57, 0.0 }
 0x295   : > { %v1299_v9 = vadd.f32 %v1298_v8, %v8060_v60  ;;  %3244 = vmatpush1.bf16.msra.mxu1 %v6207_v39  ;;  %3470 = vmatpush1.bf16.msra.mxu0 %v6209_v56  ;;  %v1477_v19 = vmax.f32 %v1295_v37, 0.0  ;;  %v6242_v39 = vcombine.high %v1749_v46, %v1753_v47  ;;  %v1756_v56 = vld [vmem:[#allocation9 + $0x6c0] sm:$0xff] }
 0x296   : > { %v1480_v14 = vmax.f32 %v1297_v7, 0.0  ;;  %3245 = vmatprep.subr.bf16.mxu1 %v6216_v0  ;;  %3471 = vmatprep.subr.bf16.mxu0 %v6218_v61  ;;  %v1760_v0 = vld [vmem:[#allocation9 + $0x6e0] sm:$0xff]  ;;  %v1757_v61 = vld [vmem:[#allocation9 + $0x6c8] sm:$0xff] }
 0x297   : > { %v1481_v20 = vmax.f32 %v1299_v9, 0.0  ;;  %v6248_v9 = vcombine.high %v1756_v56, %v1760_v0  ;;  %v6247_v3 = vcombine.low %v1756_v56, %v1760_v0  ;;  %v6249_v53 = vcombine.low %v1757_v61, %v1761_v24  ;;  %v1781_v0 = vld [vmem:[#allocation9 + $0x788] sm:$0xff] }
 0x298   : > { %v8120_v28 = vpack.c.bf16 %v1480_v14, %v1476_v4 }
 0x299   : > { %v8122_v29 = vpack.c.bf16 %v1481_v20, %v1477_v19  ;;  %v1302_v30 = vpop.f32.mrb[52].mxu0  ;;  %3246 = vmatpush1.bf16.msra.mxu1 %v6215_v10  ;;  %3472 = vmatpush1.bf16.msra.mxu0 %v6217_v12  ;;  %v6250_v10 = vcombine.high %v1757_v61, %v1761_v24  ;;  %v1764_v12 = vld [vmem:[#allocation9 + $0x700] sm:$0xff]  ;;  %v1785_v61 = vld [vmem:[#allocation9 + $0x7a8] sm:$0xff] }
 0x29a   : > { %v1303_v38 = vadd.f32 %v1302_v30, %v8056_v59  ;;  %v1304_v40 = vpop.f32.mrb[53].mxu0  ;;  %3247 = vmatprep.subr.bf16.mxu1 %v6224_v34  ;;  %3473 = vmatprep.subr.bf16.mxu0 %v6226_v15  ;;  %v1768_v34 = vld [vmem:[#allocation9 + $0x720] sm:$0xff]  ;;  %v1765_v15 = vld [vmem:[#allocation9 + $0x708] sm:$0xff] }
 0x29b   : > { %v1305_v1 = vadd.f32 %v1304_v40, %v8060_v60  ;;  %v1306_v35 = vpop.f32.mrb[54].mxu0  ;;  %3190 = vmatprep.mubr.bf16.mxu1 %v8122_v29  ;;  %3416 = vmatprep.mubr.bf16.mxu0 %v8122_v29  ;;  %v1772_v40 = vld [vmem:[#allocation9 + $0x740] sm:$0xff] }
 0x29c   : > { %v1307_v50 = vadd.f32 %v1306_v35, %v8056_v59  ;;  %v1308_v54 = vpop.f32.mrb[55].mxu0  ;;  %3191 = vmatmul.mubr.bf16.gmra.mrb[16].mxu1 %v8120_v28  ;;  %3417 = vmatmul.mubr.bf16.gmra.mrb[112].mxu0 %v8120_v28  ;;  %v1484_v52 = vmax.f32 %v1303_v38, 0.0  ;;  %v6258_v38 = vcombine.high %v1765_v15, %v1769_v18  ;;  %v1777_v35 = vld [vmem:[#allocation9 + $0x768] sm:$0xff] }
 0x29d   : > { %v1309_v55 = vadd.f32 %v1308_v54, %v8060_v60  ;;  %3248 = vmatpush1.bf16.msra.mxu1 %v6223_v33  ;;  %3474 = vmatpush1.bf16.msra.mxu0 %v6225_v36  ;;  %v1485_v57 = vmax.f32 %v1305_v1, 0.0  ;;  %v6256_v36 = vcombine.high %v1764_v12, %v1768_v34  ;;  %v1773_v1 = vld [vmem:[#allocation9 + $0x748] sm:$0xff]  ;;  %v6257_v54 = vcombine.low %v1765_v15, %v1769_v18  ;;  %v1792_v15 = vld [vmem:[#allocation9 + $0x7e0] sm:$0xff] }
 0x29e   : > { %v1488_v27 = vmax.f32 %v1307_v50, 0.0  ;;  %3249 = vmatprep.subr.bf16.mxu1 %v6232_v41  ;;  %3475 = vmatprep.subr.bf16.mxu0 %v6234_v42  ;;  %v6255_v50 = vcombine.low %v1764_v12, %v1768_v34  ;;  %v6274_v12 = vcombine.high %v1781_v0, %v1785_v61  ;;  %v1789_v18 = vld [vmem:[#allocation9 + $0x7c8] sm:$0xff] }
 0x29f   : > { %v1489_v58 = vmax.f32 %v1309_v55, 0.0  ;;  %v8782_v55 = vsub.s32 2, %v7918_v48 }
 0x2a0   : > { %v8132_v37 = vpack.c.bf16 %v1488_v27, %v1484_v52  ;;  %v6264_v52 = vcombine.high %v1772_v40, %v1776_v43  ;;  %v6266_v27 = vcombine.high %v1773_v1, %v1777_v35 }
 0x2a1   : > { %v8134_v6 = vpack.c.bf16 %v1489_v58, %v1485_v57  ;;  %v1312_v62 = vpop.f32.mrb[56].mxu0  ;;  %3250 = vmatpush1.bf16.msra.mxu1 %v6231_v23  ;;  %3476 = vmatpush1.bf16.msra.mxu0 %v6233_v26  ;;  %v8781_v57 = vsub.s32 3, %v7918_v48  ;;  %v1784_v58 = vld [vmem:[#allocation9 + $0x7a0] sm:$0xff] }
 0x2a2   : > { %v1313_v7 = vadd.f32 %v1312_v62, %v8056_v59  ;;  %v1314_v8 = vpop.f32.mrb[57].mxu0  ;;  %3251 = vmatprep.subr.bf16.mxu1 %v6240_v11  ;;  %3477 = vmatprep.subr.bf16.mxu0 %v6242_v39  ;;  %v1780_v11 = vld [vmem:[#allocation9 + $0x780] sm:$0xff] }
 0x2a3   : > { %v1315_v4 = vadd.f32 %v1314_v8, %v8060_v60  ;;  %v1316_v14 = vpop.f32.mrb[58].mxu0  ;;  %3200 = vmatprep.mubr.bf16.mxu1 %v8134_v6  ;;  %3426 = vmatprep.mubr.bf16.mxu0 %v8134_v6  ;;  %v8161_v8 = vrot.slane %v8052_v25, %v8782_v55 }
 0x2a4   : > { %v1317_v19 = vadd.f32 %v1316_v14, %v8056_v59  ;;  %v1318_v20 = vpop.f32.mrb[59].mxu0  ;;  %3201 = vmatmul.mubr.bf16.gmra.mrb[20].mxu1 %v8132_v37  ;;  %3427 = vmatmul.mubr.bf16.gmra.mrb[116].mxu0 %v8132_v37  ;;  %v1492_v30 = vmax.f32 %v1313_v7, 0.0  ;;  %v6265_v7 = vcombine.low %v1773_v1, %v1777_v35  ;;  %v1543_v1 = vld [vmem:[#allocation9 + $0x18] sm:$0xff] }
 0x2a5   : > { %v1319_v32 = vadd.f32 %v1318_v20, %v8060_v60  ;;  %3252 = vmatpush1.bf16.msra.mxu1 %v6239_v63  ;;  %3478 = vmatpush1.bf16.msra.mxu0 %v6241_v5  ;;  %v1493_v41 = vmax.f32 %v1315_v4, 0.0  ;;  %v6263_v63 = vcombine.low %v1772_v40, %v1776_v43  ;;  %v1788_v4 = vld [vmem:[#allocation9 + $0x7c0] sm:$0xff]  ;;  %v1542_v40 = vld [vmem:[#allocation9 + $0x10] sm:$0xff]  ;;  %v1547_v35 = vld [vmem:[#allocation9 + $0x38] sm:$0xff] }
 0x2a6   : > { %v1496_v33 = vmax.f32 %v1317_v19, 0.0  ;;  %3253 = vmatprep.subr.bf16.mxu1 %v6248_v9  ;;  %3479 = vmatprep.subr.bf16.mxu0 %v6250_v10  ;;  %v1793_v19 = vld [vmem:[#allocation9 + $0x7e8] sm:$0xff]  ;;  %v1546_v43 = vld [vmem:[#allocation9 + $0x30] sm:$0xff] }
 0x2a7   : > { %v1497_v42 = vmax.f32 %v1319_v32, 0.0 }
 0x2a8   : > { %v8144_v13 = vpack.c.bf16 %v1496_v33, %v1492_v30  ;;  %v6273_v30 = vcombine.low %v1781_v0, %v1785_v61  ;;  %v1554_v61 = vld [vmem:[#allocation9 + $0x70] sm:$0xff] }
 0x2a9   : > { %v8146_v46 = vpack.c.bf16 %v1497_v42, %v1493_v41  ;;  %v1322_v47 = vpop.f32.mrb[60].mxu0  ;;  %3254 = vmatpush1.bf16.msra.mxu1 %v6247_v3  ;;  %3480 = vmatpush1.bf16.msra.mxu0 %v6249_v53  ;;  %v6271_v53 = vcombine.low %v1780_v11, %v1784_v58 }
 0x2aa   : > { %v1323_v23 = vadd.f32 %v1322_v47, %v8056_v59  ;;  %v1324_v26 = vpop.f32.mrb[61].mxu0  ;;  %3255 = vmatprep.subr.bf16.mxu1 %v6256_v36  ;;  %3481 = vmatprep.subr.bf16.mxu0 %v6258_v38  ;;  %v6280_v38 = vcombine.high %v1788_v4, %v1792_v15 }
 0x2ab   : > { %v1325_v39 = vadd.f32 %v1324_v26, %v8060_v60  ;;  %v1326_v56 = vpop.f32.mrb[62].mxu0  ;;  %3210 = vmatprep.mubr.bf16.mxu1 %v8146_v46  ;;  %3436 = vmatprep.mubr.bf16.mxu0 %v8146_v46  ;;  %v6281_v26 = vcombine.low %v1789_v18, %v1793_v19 }
 0x2ac   : > { %v1327_v24 = vadd.f32 %v1326_v56, %v8056_v59  ;;  %v1328_v62 = vpop.f32.mrb[63].mxu0  ;;  %3211 = vmatmul.mubr.bf16.gmra.mrb[24].mxu1 %v8144_v13  ;;  %3437 = vmatmul.mubr.bf16.gmra.mrb[120].mxu0 %v8144_v13  ;;  %v1500_v9 = vmax.f32 %v1323_v23, 0.0  ;;  %v6272_v59 = vcombine.high %v1780_v11, %v1784_v58  ;;  %v6279_v23 = vcombine.low %v1788_v4, %v1792_v15  ;;  %v1550_v56 = vld [vmem:[#allocation9 + $0x50] sm:$0xff] }
 0x2ad   : > { %v1329_v5 = vadd.f32 %v1328_v62, %v8060_v60  ;;  %3256 = vmatpush1.bf16.msra.mxu1 %v6255_v50  ;;  %3482 = vmatpush1.bf16.msra.mxu0 %v6257_v54  ;;  %v1501_v14 = vmax.f32 %v1325_v39, 0.0  ;;  %v8166_v60 = vrot.slane %v8052_v25, %v8781_v57  ;;  %v6282_v25 = vcombine.high %v1789_v18, %v1793_v19  ;;  %v1555_v62 = vld [vmem:[#allocation9 + $0x78] sm:$0xff]  ;;  %v1562_v19 = vld [vmem:[#allocation9 + $0xb0] sm:$0xff] }
 0x2ae   : > { %v1504_v10 = vmax.f32 %v1327_v24, 0.0  ;;  %3257 = vmatprep.subr.bf16.mxu1 %v6264_v52  ;;  %3483 = vmatprep.subr.bf16.mxu0 %v6266_v27  ;;  %v6036_v11 = vcombine.high %v1542_v40, %v1546_v43  ;;  %v6038_v39 = vcombine.high %v1543_v1, %v1547_v35  ;;  %v1551_v24 = vld [vmem:[#allocation9 + $0x58] sm:$0xff]  ;;  %v6044_v4 = vcombine.high %v1550_v56, %v1554_v61 }
 0x2af   : > { %v1505_v34 = vmax.f32 %v1329_v5, 0.0 }
 0x2b0   : > { %v8168_v20 = vpack.c.bf16 %v1504_v10, %v1500_v9  ;;  %v6035_v9 = vcombine.low %v1542_v40, %v1546_v43  ;;  %v6037_v10 = vcombine.low %v1543_v1, %v1547_v35  ;;  %v1566_v1 = vld [vmem:[#allocation9 + $0xd0] sm:$0xff] }
 0x2b1   : > { %v8170_v32 = vpack.c.bf16 %v1505_v34, %v1501_v14  ;;  %v1365_v3 = vpop.f32.mrb[64].mxu0  ;;  %3258 = vmatpush1.bf16.msra.mxu1 %v6263_v63  ;;  %3484 = vmatpush1.bf16.msra.mxu0 %v6265_v7  ;;  %v6046_v14 = vcombine.high %v1551_v24, %v1555_v62  ;;  %v1558_v34 = vld [vmem:[#allocation9 + $0x90] sm:$0xff] }
 0x2b2   : > { %v1366_v33 = vadd.f32 %v1365_v3, %v8161_v8  ;;  %v1367_v36 = vpop.f32.mrb[65].mxu0  ;;  %3259 = vmatprep.subr.bf16.mxu1 %v6272_v59  ;;  %3485 = vmatprep.subr.bf16.mxu0 %v6274_v12  ;;  %v1559_v3 = vld [vmem:[#allocation9 + $0x98] sm:$0xff] }
 0x2b3   : > { %v1368_v41 = vadd.f32 %v1367_v36, %v8166_v60  ;;  %v1369_v42 = vpop.f32.mrb[66].mxu0  ;;  %3220 = vmatprep.mubr.bf16.mxu1 %v8170_v32  ;;  %3446 = vmatprep.mubr.bf16.mxu0 %v8170_v32 }
 0x2b4   : > { %v1370_v47 = vadd.f32 %v1369_v42, %v8161_v8  ;;  %v1371_v50 = vpop.f32.mrb[67].mxu0  ;;  %3221 = vmatmul.mubr.bf16.gmra.mrb[28].mxu1 %v8168_v20  ;;  %3447 = vmatmul.mubr.bf16.gmra.mrb[124].mxu0 %v8168_v20  ;;  %v1446_v52 = vmax.f32 %v1366_v33, 0.0  ;;  %v6052_v42 = vcombine.high %v1558_v34, %v1562_v19 }
 0x2b5   : > { %v1372_v54 = vadd.f32 %v1371_v50, %v8166_v60  ;;  %3260 = vmatpush1.bf16.msra.mxu1 %v6271_v53  ;;  %3486 = vmatpush1.bf16.msra.mxu0 %v6273_v30  ;;  %v1447_v58 = vmax.f32 %v1368_v41, 0.0  ;;  %v1563_v53 = vld [vmem:[#allocation9 + $0xb8] sm:$0xff]  ;;  %v1570_v50 = vld [vmem:[#allocation9 + $0xf0] sm:$0xff] }
 0x2b6   : > { %v1450_v27 = vmax.f32 %v1370_v47, 0.0  ;;  %3261 = vmatprep.subr.bf16.mxu1 %v6280_v38  ;;  %3487 = vmatprep.subr.bf16.mxu0 %v6282_v25  ;;  %v6043_v38 = vcombine.low %v1550_v56, %v1554_v61  ;;  %v6045_v25 = vcombine.low %v1551_v24, %v1555_v62  ;;  %v6054_v43 = vcombine.high %v1559_v3, %v1563_v53  ;;  %v1574_v24 = vld [vmem:[#allocation9 + $0x110] sm:$0xff] }
 0x2b7   : > { %v1451_v0 = vmax.f32 %v1372_v54, 0.0  ;;  %v1567_v54 = vld [vmem:[#allocation9 + $0xd8] sm:$0xff] }
 0x2b8   : > { %v8180_v63 = vpack.c.bf16 %v1450_v27, %v1446_v52 }
 0x2b9   : > { %v8182_v5 = vpack.c.bf16 %v1451_v0, %v1447_v58  ;;  %v1375_v7 = vpop.f32.mrb[68].mxu0  ;;  %3262 = vmatpush1.bf16.msra.mxu1 %v6279_v23  ;;  %3488 = vmatpush1.bf16.msra.mxu0 %v6281_v26  ;;  %v1571_v23 = vld [vmem:[#allocation9 + $0xf8] sm:$0xff]  ;;  %v6060_v0 = vcombine.high %v1566_v1, %v1570_v50 }
 0x2ba   : > { %v1376_v59 = vadd.f32 %v1375_v7, %v8161_v8  ;;  %v1377_v12 = vpop.f32.mrb[69].mxu0  ;;  %3570 = vmatprep.subr.bf16.mxu1 %v6036_v11  ;;  %3796 = vmatprep.subr.bf16.mxu0 %v6038_v39  ;;  %v6051_v11 = vcombine.low %v1558_v34, %v1562_v19  ;;  %v6053_v39 = vcombine.low %v1559_v3, %v1563_v53 }
 0x2bb   : > { %v1378_v15 = vadd.f32 %v1377_v12, %v8166_v60  ;;  %v1379_v18 = vpop.f32.mrb[70].mxu0  ;;  %3263 = vmatprep.mubr.bf16.mxu1 %v8182_v5  ;;  %3489 = vmatprep.mubr.bf16.mxu0 %v8182_v5  ;;  %v6062_v61 = vcombine.high %v1567_v54, %v1571_v23  ;;  %v6059_v34 = vcombine.low %v1566_v1, %v1570_v50 }
 0x2bc   : > { %v1380_v30 = vadd.f32 %v1379_v18, %v8161_v8  ;;  %v1381_v33 = vpop.f32.mrb[71].mxu0  ;;  %3264 = vmatmul.mubr.bf16.vlgmr.msra.gmra.mrb[0].mxu1 %v8180_v63  ;;  %3490 = vmatmul.mubr.bf16.vlgmr.msra.gmra.mrb[96].mxu0 %v8180_v63  ;;  %v1454_v40 = vmax.f32 %v1376_v59, 0.0  ;;  %v1579_v59 = vld [vmem:[#allocation9 + $0x138] sm:$0xff] }
 0x2bd   : > { %v1382_v36 = vadd.f32 %v1381_v33, %v8166_v60  ;;  %3571 = vmatpush1.bf16.msra.mxu1 %v6035_v9  ;;  %3797 = vmatpush1.bf16.msra.mxu0 %v6037_v10  ;;  %v1455_v35 = vmax.f32 %v1378_v15, 0.0  ;;  %v1578_v9 = vld [vmem:[#allocation9 + $0x130] sm:$0xff]  ;;  %v1575_v10 = vld [vmem:[#allocation9 + $0x118] sm:$0xff]  ;;  %v6061_v15 = vcombine.low %v1567_v54, %v1571_v23 }
 0x2be   : > { %v1458_v41 = vmax.f32 %v1380_v30, 0.0  ;;  %3572 = vmatprep.subr.bf16.mxu1 %v6044_v4  ;;  %3798 = vmatprep.subr.bf16.mxu0 %v6046_v14  ;;  %v6068_v3 = vcombine.high %v1574_v24, %v1578_v9  ;;  %v6070_v53 = vcombine.high %v1575_v10, %v1579_v59  ;;  %v1582_v30 = vld [vmem:[#allocation9 + $0x150] sm:$0xff]  ;;  %v6067_v1 = vcombine.low %v1574_v24, %v1578_v9 }
 0x2bf   : > { %v1459_v47 = vmax.f32 %v1382_v36, 0.0 }
 0x2c0   : > { %v8192_v26 = vpack.c.bf16 %v1458_v41, %v1454_v40  ;;  %v1587_v40 = vld [vmem:[#allocation9 + $0x178] sm:$0xff] }
 0x2c1   : > { %v8194_v52 = vpack.c.bf16 %v1459_v47, %v1455_v35  ;;  %v1385_v27 = vpop.f32.mrb[72].mxu0  ;;  %3573 = vmatpush1.bf16.msra.mxu1 %v6043_v38  ;;  %3799 = vmatpush1.bf16.msra.mxu0 %v6045_v25  ;;  %v1586_v38 = vld [vmem:[#allocation9 + $0x170] sm:$0xff]  ;;  %v1583_v25 = vld [vmem:[#allocation9 + $0x158] sm:$0xff]  ;;  %v6069_v35 = vcombine.low %v1575_v10, %v1579_v59 }
 0x2c2   : > { %v1386_v56 = vadd.f32 %v1385_v27, %v8161_v8  ;;  %v1387_v58 = vpop.f32.mrb[73].mxu0  ;;  %3574 = vmatprep.subr.bf16.mxu1 %v6052_v42  ;;  %3800 = vmatprep.subr.bf16.mxu0 %v6054_v43  ;;  %v6076_v54 = vcombine.high %v1582_v30, %v1586_v38  ;;  %v6078_v23 = vcombine.high %v1583_v25, %v1587_v40  ;;  %v1590_v27 = vld [vmem:[#allocation9 + $0x190] sm:$0xff] }
 0x2c3   : > { %v1388_v62 = vadd.f32 %v1387_v58, %v8166_v60  ;;  %v1389_v7 = vpop.f32.mrb[74].mxu0  ;;  %3273 = vmatprep.mubr.bf16.mxu1 %v8194_v52  ;;  %3499 = vmatprep.mubr.bf16.mxu0 %v8194_v52  ;;  %v1591_v58 = vld [vmem:[#allocation9 + $0x198] sm:$0xff]  ;;  %v6077_v9 = vcombine.low %v1583_v25, %v1587_v40 }
 0x2c4   : > { %v1390_v12 = vadd.f32 %v1389_v7, %v8161_v8  ;;  %v1391_v4 = vpop.f32.mrb[75].mxu0  ;;  %3274 = vmatmul.mubr.bf16.gmra.mrb[4].mxu1 %v8192_v26  ;;  %3500 = vmatmul.mubr.bf16.gmra.mrb[100].mxu0 %v8192_v26  ;;  %v1462_v18 = vmax.f32 %v1386_v56, 0.0  ;;  %v1594_v56 = vld [vmem:[#allocation9 + $0x1b0] sm:$0xff]  ;;  %v6075_v7 = vcombine.low %v1582_v30, %v1586_v38 }
 0x2c5   : > { %v1392_v14 = vadd.f32 %v1391_v4, %v8166_v60  ;;  %3575 = vmatpush1.bf16.msra.mxu1 %v6051_v11  ;;  %3801 = vmatpush1.bf16.msra.mxu0 %v6053_v39  ;;  %v1463_v33 = vmax.f32 %v1388_v62, 0.0  ;;  %v6083_v30 = vcombine.low %v1590_v27, %v1594_v56 }
 0x2c6   : > { %v1466_v19 = vmax.f32 %v1390_v12, 0.0  ;;  %3576 = vmatprep.subr.bf16.mxu1 %v6060_v0  ;;  %3802 = vmatprep.subr.bf16.mxu0 %v6062_v61  ;;  %v1595_v0 = vld [vmem:[#allocation9 + $0x1b8] sm:$0xff]  ;;  %v6084_v12 = vcombine.high %v1590_v27, %v1594_v56 }
 0x2c7   : > { %v1467_v36 = vmax.f32 %v1392_v14, 0.0  ;;  %v6086_v4 = vcombine.high %v1591_v58, %v1595_v0  ;;  %v1598_v14 = vld [vmem:[#allocation9 + $0x1d0] sm:$0xff]  ;;  %v6085_v38 = vcombine.low %v1591_v58, %v1595_v0 }
 0x2c8   : > { %v8204_v41 = vpack.c.bf16 %v1466_v19, %v1462_v18  ;;  %v1602_v18 = vld [vmem:[#allocation9 + $0x1f0] sm:$0xff]  ;;  %v1599_v19 = vld [vmem:[#allocation9 + $0x1d8] sm:$0xff] }
 0x2c9   : > { %v8206_v42 = vpack.c.bf16 %v1467_v36, %v1463_v33  ;;  %v1395_v43 = vpop.f32.mrb[76].mxu0  ;;  %3577 = vmatpush1.bf16.msra.mxu1 %v6059_v34  ;;  %3803 = vmatpush1.bf16.msra.mxu0 %v6061_v15  ;;  %v6091_v58 = vcombine.low %v1598_v14, %v1602_v18 }
 0x2ca   : > { %v1396_v47 = vadd.f32 %v1395_v43, %v8161_v8  ;;  %v1397_v50 = vpop.f32.mrb[77].mxu0  ;;  %3578 = vmatprep.subr.bf16.mxu1 %v6068_v3  ;;  %3804 = vmatprep.subr.bf16.mxu0 %v6070_v53  ;;  %v1603_v3 = vld [vmem:[#allocation9 + $0x1f8] sm:$0xff]  ;;  %v6092_v43 = vcombine.high %v1598_v14, %v1602_v18 }
 0x2cb   : > { %v1398_v11 = vadd.f32 %v1397_v50, %v8166_v60  ;;  %v1399_v39 = vpop.f32.mrb[78].mxu0  ;;  %3283 = vmatprep.mubr.bf16.mxu1 %v8206_v42  ;;  %3509 = vmatprep.mubr.bf16.mxu0 %v8206_v42  ;;  %v6093_v0 = vcombine.low %v1599_v19, %v1603_v3 }
 0x2cc   : > { %v1400_v61 = vadd.f32 %v1399_v39, %v8161_v8  ;;  %v1401_v24 = vpop.f32.mrb[79].mxu0  ;;  %3284 = vmatmul.mubr.bf16.gmra.mrb[8].mxu1 %v8204_v41  ;;  %3510 = vmatmul.mubr.bf16.gmra.mrb[104].mxu0 %v8204_v41  ;;  %v1470_v10 = vmax.f32 %v1396_v47, 0.0 }
 0x2cd   : > { %v1402_v62 = vadd.f32 %v1401_v24, %v8166_v60  ;;  %3579 = vmatpush1.bf16.msra.mxu1 %v6067_v1  ;;  %3805 = vmatpush1.bf16.msra.mxu0 %v6069_v35  ;;  %v1471_v34 = vmax.f32 %v1398_v11, 0.0  ;;  %v6094_v1 = vcombine.high %v1599_v19, %v1603_v3  ;;  %v1606_v35 = vld [vmem:[#allocation9 + $0x210] sm:$0xff]  ;;  %v1611_v11 = vld [vmem:[#allocation9 + $0x238] sm:$0xff] }
 0x2ce   : > { %v1474_v59 = vmax.f32 %v1400_v61, 0.0  ;;  %3580 = vmatprep.subr.bf16.mxu1 %v6076_v54  ;;  %3806 = vmatprep.subr.bf16.mxu0 %v6078_v23  ;;  %v1610_v54 = vld [vmem:[#allocation9 + $0x230] sm:$0xff]  ;;  %v1607_v23 = vld [vmem:[#allocation9 + $0x218] sm:$0xff] }
 0x2cf   : > { %v1475_v15 = vmax.f32 %v1402_v62, 0.0  ;;  %v6100_v62 = vcombine.high %v1606_v35, %v1610_v54  ;;  %v6099_v14 = vcombine.low %v1606_v35, %v1610_v54  ;;  %v6101_v18 = vcombine.low %v1607_v23, %v1611_v11 }
 0x2d0   : > { %v8216_v53 = vpack.c.bf16 %v1474_v59, %v1470_v10 }
 0x2d1   : > { %v8218_v33 = vpack.c.bf16 %v1475_v15, %v1471_v34  ;;  %v1405_v36 = vpop.f32.mrb[80].mxu0  ;;  %3581 = vmatpush1.bf16.msra.mxu1 %v6075_v7  ;;  %3807 = vmatpush1.bf16.msra.mxu0 %v6077_v9  ;;  %v6102_v7 = vcombine.high %v1607_v23, %v1611_v11  ;;  %v1614_v9 = vld [vmem:[#allocation9 + $0x250] sm:$0xff]  ;;  %v1619_v34 = vld [vmem:[#allocation9 + $0x278] sm:$0xff] }
 0x2d2   : > { %v1406_v25 = vadd.f32 %v1405_v36, %v8161_v8  ;;  %v1407_v40 = vpop.f32.mrb[81].mxu0  ;;  %3582 = vmatprep.subr.bf16.mxu1 %v6084_v12  ;;  %3808 = vmatprep.subr.bf16.mxu0 %v6086_v4  ;;  %v1618_v12 = vld [vmem:[#allocation9 + $0x270] sm:$0xff]  ;;  %v1615_v4 = vld [vmem:[#allocation9 + $0x258] sm:$0xff] }
 0x2d3   : > { %v1408_v47 = vadd.f32 %v1407_v40, %v8166_v60  ;;  %v1409_v50 = vpop.f32.mrb[82].mxu0  ;;  %3293 = vmatprep.mubr.bf16.mxu1 %v8218_v33  ;;  %3519 = vmatprep.mubr.bf16.mxu0 %v8218_v33  ;;  %v1622_v40 = vld [vmem:[#allocation9 + $0x290] sm:$0xff]  ;;  %v6107_v11 = vcombine.low %v1614_v9, %v1618_v12 }
 0x2d4   : > { %v1410_v27 = vadd.f32 %v1409_v50, %v8161_v8  ;;  %v1411_v39 = vpop.f32.mrb[83].mxu0  ;;  %3294 = vmatmul.mubr.bf16.gmra.mrb[12].mxu1 %v8216_v53  ;;  %3520 = vmatmul.mubr.bf16.gmra.mrb[108].mxu0 %v8216_v53  ;;  %v1478_v61 = vmax.f32 %v1406_v25, 0.0  ;;  %v6110_v25 = vcombine.high %v1615_v4, %v1619_v34  ;;  %v1623_v50 = vld [vmem:[#allocation9 + $0x298] sm:$0xff] }
 0x2d5   : > { %v1412_v56 = vadd.f32 %v1411_v39, %v8166_v60  ;;  %3583 = vmatpush1.bf16.msra.mxu1 %v6083_v30  ;;  %3809 = vmatpush1.bf16.msra.mxu0 %v6085_v38  ;;  %v1479_v10 = vmax.f32 %v1408_v47, 0.0  ;;  %v6108_v38 = vcombine.high %v1614_v9, %v1618_v12  ;;  %v1626_v47 = vld [vmem:[#allocation9 + $0x2b0] sm:$0xff]  ;;  %v6109_v39 = vcombine.low %v1615_v4, %v1619_v34 }
 0x2d6   : > { %v1482_v24 = vmax.f32 %v1410_v27, 0.0  ;;  %3584 = vmatprep.subr.bf16.mxu1 %v6092_v43  ;;  %3810 = vmatprep.subr.bf16.mxu0 %v6094_v1  ;;  %v1627_v27 = vld [vmem:[#allocation9 + $0x2b8] sm:$0xff]  ;;  %v6115_v9 = vcombine.low %v1622_v40, %v1626_v47 }
 0x2d7   : > { %v1483_v59 = vmax.f32 %v1412_v56, 0.0  ;;  %v6117_v12 = vcombine.low %v1623_v50, %v1627_v27 }
 0x2d8   : > { %v8228_v15 = vpack.c.bf16 %v1482_v24, %v1478_v61  ;;  %v6118_v61 = vcombine.high %v1623_v50, %v1627_v27  ;;  %v1630_v24 = vld [vmem:[#allocation9 + $0x2d0] sm:$0xff] }
 0x2d9   : > { %v8230_v36 = vpack.c.bf16 %v1483_v59, %v1479_v10  ;;  %v1415_v30 = vpop.f32.mrb[84].mxu0  ;;  %3585 = vmatpush1.bf16.msra.mxu1 %v6091_v58  ;;  %3811 = vmatpush1.bf16.msra.mxu0 %v6093_v0  ;;  %v6116_v0 = vcombine.high %v1622_v40, %v1626_v47  ;;  %v1634_v10 = vld [vmem:[#allocation9 + $0x2f0] sm:$0xff]  ;;  %v1631_v59 = vld [vmem:[#allocation9 + $0x2d8] sm:$0xff] }
 0x2da   : > { %v1416_v19 = vadd.f32 %v1415_v30, %v8161_v8  ;;  %v1417_v3 = vpop.f32.mrb[85].mxu0  ;;  %3586 = vmatprep.subr.bf16.mxu1 %v6100_v62  ;;  %3812 = vmatprep.subr.bf16.mxu0 %v6102_v7  ;;  %v1635_v30 = vld [vmem:[#allocation9 + $0x2f8] sm:$0xff]  ;;  %v6123_v27 = vcombine.low %v1630_v24, %v1634_v10 }
 0x2db   : > { %v1418_v43 = vadd.f32 %v1417_v3, %v8166_v60  ;;  %v1419_v1 = vpop.f32.mrb[86].mxu0  ;;  %3303 = vmatprep.mubr.bf16.mxu1 %v8230_v36  ;;  %3529 = vmatprep.mubr.bf16.mxu0 %v8230_v36 }
 0x2dc   : > { %v1420_v35 = vadd.f32 %v1419_v1, %v8161_v8  ;;  %v1421_v54 = vpop.f32.mrb[87].mxu0  ;;  %3304 = vmatmul.mubr.bf16.gmra.mrb[16].mxu1 %v8228_v15  ;;  %3530 = vmatmul.mubr.bf16.gmra.mrb[112].mxu0 %v8228_v15  ;;  %v1486_v56 = vmax.f32 %v1416_v19, 0.0  ;;  %v6126_v19 = vcombine.high %v1631_v59, %v1635_v30 }
 0x2dd   : > { %v1422_v23 = vadd.f32 %v1421_v54, %v8166_v60  ;;  %3587 = vmatpush1.bf16.msra.mxu1 %v6099_v14  ;;  %3813 = vmatpush1.bf16.msra.mxu0 %v6101_v18  ;;  %v1487_v62 = vmax.f32 %v1418_v43, 0.0  ;;  %v6124_v18 = vcombine.high %v1630_v24, %v1634_v10  ;;  %v1639_v54 = vld [vmem:[#allocation9 + $0x318] sm:$0xff] }
 0x2de   : > { %v1490_v58 = vmax.f32 %v1420_v35, 0.0  ;;  %3588 = vmatprep.subr.bf16.mxu1 %v6108_v38  ;;  %3814 = vmatprep.subr.bf16.mxu0 %v6110_v25  ;;  %v1638_v38 = vld [vmem:[#allocation9 + $0x310] sm:$0xff] }
 0x2df   : > { %v1491_v7 = vmax.f32 %v1422_v23, 0.0  ;;  %v1642_v35 = vld [vmem:[#allocation9 + $0x330] sm:$0xff]  ;;  %v1643_v23 = vld [vmem:[#allocation9 + $0x338] sm:$0xff] }
 0x2e0   : > { %v8240_v3 = vpack.c.bf16 %v1490_v58, %v1486_v56  ;;  %v6132_v58 = vcombine.high %v1638_v38, %v1642_v35  ;;  %v6131_v24 = vcombine.low %v1638_v38, %v1642_v35  ;;  %v6133_v10 = vcombine.low %v1639_v54, %v1643_v23 }
 0x2e1   : > { %v8242_v1 = vpack.c.bf16 %v1491_v7, %v1487_v62  ;;  %v1425_v14 = vpop.f32.mrb[88].mxu0  ;;  %3589 = vmatpush1.bf16.msra.mxu1 %v6107_v11  ;;  %3815 = vmatpush1.bf16.msra.mxu0 %v6109_v39  ;;  %v6125_v11 = vcombine.low %v1631_v59, %v1635_v30 }
 0x2e2   : > { %v1426_v4 = vadd.f32 %v1425_v14, %v8161_v8  ;;  %v1427_v34 = vpop.f32.mrb[89].mxu0  ;;  %3590 = vmatprep.subr.bf16.mxu1 %v6116_v0  ;;  %3816 = vmatprep.subr.bf16.mxu0 %v6118_v61  ;;  %v6134_v0 = vcombine.high %v1639_v54, %v1643_v23  ;;  %v1646_v61 = vld [vmem:[#allocation9 + $0x350] sm:$0xff] }
 0x2e3   : > { %v1428_v25 = vadd.f32 %v1427_v34, %v8166_v60  ;;  %v1429_v43 = vpop.f32.mrb[90].mxu0  ;;  %3313 = vmatprep.mubr.bf16.mxu1 %v8242_v1  ;;  %3539 = vmatprep.mubr.bf16.mxu0 %v8242_v1  ;;  %v1650_v14 = vld [vmem:[#allocation9 + $0x370] sm:$0xff]  ;;  %v1647_v34 = vld [vmem:[#allocation9 + $0x358] sm:$0xff] }
 0x2e4   : > { %v1430_v40 = vadd.f32 %v1429_v43, %v8161_v8  ;;  %v1431_v47 = vpop.f32.mrb[91].mxu0  ;;  %3314 = vmatmul.mubr.bf16.gmra.mrb[20].mxu1 %v8240_v3  ;;  %3540 = vmatmul.mubr.bf16.gmra.mrb[116].mxu0 %v8240_v3  ;;  %v1494_v39 = vmax.f32 %v1426_v4, 0.0  ;;  %v1651_v43 = vld [vmem:[#allocation9 + $0x378] sm:$0xff]  ;;  %v6139_v23 = vcombine.low %v1646_v61, %v1650_v14 }
 0x2e5   : > { %v1432_v50 = vadd.f32 %v1431_v47, %v8166_v60  ;;  %3591 = vmatpush1.bf16.msra.mxu1 %v6115_v9  ;;  %3817 = vmatpush1.bf16.msra.mxu0 %v6117_v12  ;;  %v1495_v62 = vmax.f32 %v1428_v25, 0.0  ;;  %v6140_v12 = vcombine.high %v1646_v61, %v1650_v14  ;;  %v6142_v4 = vcombine.high %v1647_v34, %v1651_v43  ;;  %v1655_v47 = vld [vmem:[#allocation9 + $0x398] sm:$0xff] }
 0x2e6   : > { %v1498_v56 = vmax.f32 %v1430_v40, 0.0  ;;  %3592 = vmatprep.subr.bf16.mxu1 %v6124_v18  ;;  %3818 = vmatprep.subr.bf16.mxu0 %v6126_v19  ;;  %v1654_v18 = vld [vmem:[#allocation9 + $0x390] sm:$0xff] }
 0x2e7   : > { %v1499_v7 = vmax.f32 %v1432_v50, 0.0  ;;  %v1658_v40 = vld [vmem:[#allocation9 + $0x3b0] sm:$0xff]  ;;  %v1659_v50 = vld [vmem:[#allocation9 + $0x3b8] sm:$0xff] }
 0x2e8   : > { %v8252_v57 = vpack.c.bf16 %v1498_v56, %v1494_v39  ;;  %v6148_v56 = vcombine.high %v1654_v18, %v1658_v40  ;;  %v6149_v61 = vcombine.low %v1655_v47, %v1659_v50 }
 0x2e9   : > { %v8254_v55 = vpack.c.bf16 %v1499_v7, %v1495_v62  ;;  %v1435_v9 = vpop.f32.mrb[92].mxu0  ;;  %3593 = vmatpush1.bf16.msra.mxu1 %v6123_v27  ;;  %3819 = vmatpush1.bf16.msra.mxu0 %v6125_v11  ;;  %v6141_v27 = vcombine.low %v1647_v34, %v1651_v43  ;;  %v1670_v43 = vld [vmem:[#allocation9 + $0x410] sm:$0xff] }
 0x2ea   : > { %v1436_v59 = vadd.f32 %v1435_v9, %v8161_v8  ;;  %v1437_v30 = vpop.f32.mrb[93].mxu0  ;;  %3594 = vmatprep.subr.bf16.mxu1 %v6132_v58  ;;  %3820 = vmatprep.subr.bf16.mxu0 %v6134_v0  ;;  %v6150_v58 = vcombine.high %v1655_v47, %v1659_v50  ;;  %v1666_v9 = vld [vmem:[#allocation9 + $0x3f0] sm:$0xff]  ;;  %v1679_v50 = vld [vmem:[#allocation9 + $0x458] sm:$0xff] }
 0x2eb   : > { %v1438_v19 = vadd.f32 %v1437_v30, %v8166_v60  ;;  %v1439_v25 = vpop.f32.mrb[94].mxu0  ;;  %3323 = vmatprep.mubr.bf16.mxu1 %v8254_v55  ;;  %3549 = vmatprep.mubr.bf16.mxu0 %v8254_v55  ;;  %v1663_v30 = vld [vmem:[#allocation9 + $0x3d8] sm:$0xff]  ;;  %v1682_v47 = vld [vmem:[#allocation9 + $0x470] sm:$0xff] }
 0x2ec   : > { %v1440_v38 = vadd.f32 %v1439_v25, %v8161_v8  ;;  %v1441_v35 = vpop.f32.mrb[95].mxu0  ;;  %3324 = vmatmul.mubr.bf16.gmra.mrb[24].mxu1 %v8252_v57  ;;  %3550 = vmatmul.mubr.bf16.gmra.mrb[120].mxu0 %v8252_v57  ;;  %v1502_v11 = vmax.f32 %v1436_v59, 0.0  ;;  %v1662_v8 = vld [vmem:[#allocation9 + $0x3d0] sm:$0xff]  ;;  %v1667_v25 = vld [vmem:[#allocation9 + $0x3f8] sm:$0xff] }
 0x2ed   : > { %v1442_v54 = vadd.f32 %v1441_v35, %v8166_v60  ;;  %3595 = vmatpush1.bf16.msra.mxu1 %v6131_v24  ;;  %3821 = vmatpush1.bf16.msra.mxu0 %v6133_v10  ;;  %v1503_v0 = vmax.f32 %v1438_v19, 0.0  ;;  %v6147_v60 = vcombine.low %v1654_v18, %v1658_v40  ;;  %v6156_v14 = vcombine.high %v1662_v8, %v1666_v9  ;;  %v1674_v24 = vld [vmem:[#allocation9 + $0x430] sm:$0xff]  ;;  %v1671_v10 = vld [vmem:[#allocation9 + $0x418] sm:$0xff] }
 0x2ee   : > { %v1506_v39 = vmax.f32 %v1440_v38, 0.0  ;;  %3596 = vmatprep.subr.bf16.mxu1 %v6140_v12  ;;  %3822 = vmatprep.subr.bf16.mxu0 %v6142_v4  ;;  %v6158_v34 = vcombine.high %v1663_v30, %v1667_v25  ;;  %v1675_v59 = vld [vmem:[#allocation9 + $0x438] sm:$0xff]  ;;  %v6155_v12 = vcombine.low %v1662_v8, %v1666_v9  ;;  %v6157_v4 = vcombine.low %v1663_v30, %v1667_v25  ;;  %v1678_v40 = vld [vmem:[#allocation9 + $0x450] sm:$0xff] }
 0x2ef   : > { %v1507_v62 = vmax.f32 %v1442_v54, 0.0  ;;  %v6164_v18 = vcombine.high %v1670_v43, %v1674_v24  ;;  %v6166_v19 = vcombine.high %v1671_v10, %v1675_v59  ;;  %v1683_v38 = vld [vmem:[#allocation9 + $0x478] sm:$0xff]  ;;  %v6163_v35 = vcombine.low %v1670_v43, %v1674_v24  ;;  %v1694_v9 = vld [vmem:[#allocation9 + $0x4d0] sm:$0xff] }
 0x2f0   : > { %v8264_v7 = vpack.c.bf16 %v1506_v39, %v1502_v11  ;;  %v6165_v54 = vcombine.low %v1671_v10, %v1675_v59  ;;  %v1690_v11 = vld [vmem:[#allocation9 + $0x4b0] sm:$0xff]  ;;  %v1687_v39 = vld [vmem:[#allocation9 + $0x498] sm:$0xff] }
 0x2f1   : > { %v8266_v51 = vpack.c.bf16 %v1507_v62, %v1503_v0  ;;  %3597 = vmatpush1.bf16.msra.mxu1 %v6139_v23  ;;  %3823 = vmatpush1.bf16.msra.mxu0 %v6141_v27  ;;  %v6172_v23 = vcombine.high %v1678_v40, %v1682_v47  ;;  %v6174_v27 = vcombine.high %v1679_v50, %v1683_v38  ;;  %v1698_v30 = vld [vmem:[#allocation9 + $0x4f0] sm:$0xff]  ;;  %v1695_v25 = vld [vmem:[#allocation9 + $0x4d8] sm:$0xff] }
 0x2f2   : > { %3598 = vmatprep.subr.bf16.mxu1 %v6148_v56  ;;  %3824 = vmatprep.subr.bf16.mxu0 %v6150_v58  ;;  %v1691_v56 = vld [vmem:[#allocation9 + $0x4b8] sm:$0xff]  ;;  %v6171_v58 = vcombine.low %v1678_v40, %v1682_v47  ;;  %v6173_v0 = vcombine.low %v1679_v50, %v1683_v38  ;;  %v1706_v43 = vld [vmem:[#allocation9 + $0x530] sm:$0xff]  ;;  %v6187_v59 = vcombine.low %v1694_v9, %v1698_v30 }
 0x2f3   : > { %3333 = vmatprep.mubr.bf16.mxu1 %v8266_v51  ;;  %3559 = vmatprep.mubr.bf16.mxu0 %v8266_v51  ;;  %v6182_v8 = vcombine.high %v1687_v39, %v1691_v56  ;;  %v1703_v24 = vld [vmem:[#allocation9 + $0x518] sm:$0xff]  ;;  %v1714_v40 = vld [vmem:[#allocation9 + $0x570] sm:$0xff] }
 0x2f4   : > { %3334 = vmatmul.mubr.bf16.gmra.mrb[28].mxu1 %v8264_v7  ;;  %3560 = vmatmul.mubr.bf16.gmra.mrb[124].mxu0 %v8264_v7  ;;  %v1707_v10 = vld [vmem:[#allocation9 + $0x538] sm:$0xff] }
 0x2f5   : > { %3599 = vmatpush1.bf16.msra.mxu1 %v6147_v60  ;;  %3602 = vmatprep.mubr.bf16.mxu1 %v8068_v44  ;;  %v1699_v60 = vld [vmem:[#allocation9 + $0x4f8] sm:$0xff]  ;;  %v6197_v38 = vcombine.low %v1703_v24, %v1707_v10 }
 0x2f6   : > { %3825 = vmatpush1.bf16.msra.mxu0 %v6149_v61  ;;  %3828 = vmatprep.mubr.bf16.mxu0 %v8068_v44  ;;  %v1686_v44 = vld [vmem:[#allocation9 + $0x490] sm:$0xff]  ;;  %v6181_v61 = vcombine.low %v1687_v39, %v1691_v56  ;;  %v1711_v47 = vld [vmem:[#allocation9 + $0x558] sm:$0xff] }
 0x2f7   : > { %3600 = vmatprep.subr.bf16.mxu1 %v6156_v14  ;;  %3826 = vmatprep.subr.bf16.mxu0 %v6158_v34  ;;  %v6180_v62 = vcombine.high %v1686_v44, %v1690_v11  ;;  %v6188_v14 = vcombine.high %v1694_v9, %v1698_v30  ;;  %v1702_v34 = vld [vmem:[#allocation9 + $0x510] sm:$0xff]  ;;  %v1715_v50 = vld [vmem:[#allocation9 + $0x578] sm:$0xff] }
 0x2f8   : > { %v6205_v39 = vcombine.low %v1711_v47, %v1715_v50  ;;  %v1731_v9 = vld [vmem:[#allocation9 + $0x5f8] sm:$0xff] }
 0x2f9   : > { %3601 = vmatpush1.bf16.msra.mxu1 %v6155_v12  ;;  %v6189_v12 = vcombine.low %v1695_v25, %v1699_v60 }
 0x2fa   : > { %3827 = vmatpush1.bf16.msra.mxu0 %v6157_v4  ;;  %3683 = vmatprep.subr.bf16.mxu1 %v6164_v18  ;;  %v6196_v4 = vcombine.high %v1702_v34, %v1706_v43  ;;  %v6198_v18 = vcombine.high %v1703_v24, %v1707_v10  ;;  %v1742_v10 = vld [vmem:[#allocation9 + $0x650] sm:$0xff] }
 0x2fb   : > { %3909 = vmatprep.subr.bf16.mxu0 %v6166_v19  ;;  %v1710_v19 = vld [vmem:[#allocation9 + $0x550] sm:$0xff] }
 0x2fc   : > { %3603 = vmatmul.mubr.bf16.vlgmr.msra.gmra.mrb[32].mxu1 %v8066_v16 }
 0x2fd   : > { %3829 = vmatmul.mubr.bf16.vlgmr.msra.gmra.mrb[128].mxu0 %v8066_v16  ;;  %3612 = vmatprep.mubr.bf16.mxu1 %v8086_v22  ;;  %v6179_v16 = vcombine.low %v1686_v44, %v1690_v11  ;;  %v1723_v44 = vld [vmem:[#allocation9 + $0x5b8] sm:$0xff]  ;;  %v6203_v11 = vcombine.low %v1710_v19, %v1714_v40 }
 0x2fe   : > { %3684 = vmatpush1.bf16.msra.mxu1 %v6163_v35  ;;  %3838 = vmatprep.mubr.bf16.mxu0 %v8086_v22  ;;  %v6190_v22 = vcombine.high %v1695_v25, %v1699_v60  ;;  %v6204_v35 = vcombine.high %v1710_v19, %v1714_v40  ;;  %v1734_v60 = vld [vmem:[#allocation9 + $0x610] sm:$0xff] }
 0x2ff   : > { %3910 = vmatpush1.bf16.msra.mxu0 %v6165_v54  ;;  %3685 = vmatprep.subr.bf16.mxu1 %v6172_v23  ;;  %v1718_v54 = vld [vmem:[#allocation9 + $0x590] sm:$0xff] }
 0x300   : > { %3911 = vmatprep.subr.bf16.mxu0 %v6174_v27  ;;  %v1722_v23 = vld [vmem:[#allocation9 + $0x5b0] sm:$0xff]  ;;  %v1719_v27 = vld [vmem:[#allocation9 + $0x598] sm:$0xff] }
 0x301   : > { %v6212_v56 = vcombine.high %v1718_v54, %v1722_v23  ;;  %v6213_v30 = vcombine.low %v1719_v27, %v1723_v44  ;;  %v1750_v40 = vld [vmem:[#allocation9 + $0x690] sm:$0xff] }
 0x302   : > { %3686 = vmatpush1.bf16.msra.mxu1 %v6171_v58  ;;  %v6214_v58 = vcombine.high %v1719_v27, %v1723_v44  ;;  %v1762_v27 = vld [vmem:[#allocation9 + $0x6f0] sm:$0xff]  ;;  %v1759_v44 = vld [vmem:[#allocation9 + $0x6d8] sm:$0xff] }
 0x303   : > { %3912 = vmatpush1.bf16.msra.mxu0 %v6173_v0  ;;  %3687 = vmatprep.subr.bf16.mxu1 %v6180_v62  ;;  %v1726_v0 = vld [vmem:[#allocation9 + $0x5d0] sm:$0xff] }
 0x304   : > { %3613 = vmatmul.mubr.bf16.gmra.mrb[36].mxu1 %v8084_v21  ;;  %3913 = vmatprep.subr.bf16.mxu0 %v6182_v8  ;;  %v1730_v62 = vld [vmem:[#allocation9 + $0x5f0] sm:$0xff]  ;;  %v1727_v8 = vld [vmem:[#allocation9 + $0x5d8] sm:$0xff] }
 0x305   : > { %3839 = vmatmul.mubr.bf16.gmra.mrb[132].mxu0 %v8084_v21  ;;  %3622 = vmatprep.mubr.bf16.mxu1 %v8098_v17  ;;  %v6195_v21 = vcombine.low %v1702_v34, %v1706_v43  ;;  %v6220_v25 = vcombine.high %v1726_v0, %v1730_v62  ;;  %v6221_v34 = vcombine.low %v1727_v8, %v1731_v9 }
 0x306   : > { %3688 = vmatpush1.bf16.msra.mxu1 %v6179_v16  ;;  %3848 = vmatprep.mubr.bf16.mxu0 %v8098_v17  ;;  %v6206_v17 = vcombine.high %v1711_v47, %v1715_v50  ;;  %v1738_v16 = vld [vmem:[#allocation9 + $0x630] sm:$0xff]  ;;  %v1751_v50 = vld [vmem:[#allocation9 + $0x698] sm:$0xff] }
 0x307   : > { %3914 = vmatpush1.bf16.msra.mxu0 %v6181_v61  ;;  %3689 = vmatprep.subr.bf16.mxu1 %v6188_v14  ;;  %v1735_v61 = vld [vmem:[#allocation9 + $0x618] sm:$0xff]  ;;  %v6228_v43 = vcombine.high %v1734_v60, %v1738_v16  ;;  %v1754_v47 = vld [vmem:[#allocation9 + $0x6b0] sm:$0xff] }
 0x308   : > { %3915 = vmatprep.subr.bf16.mxu0 %v6190_v22  ;;  %v1739_v14 = vld [vmem:[#allocation9 + $0x638] sm:$0xff]  ;;  %v6219_v22 = vcombine.low %v1726_v0, %v1730_v62  ;;  %v1770_v0 = vld [vmem:[#allocation9 + $0x730] sm:$0xff] }
 0x309   : > { %v6230_v24 = vcombine.high %v1735_v61, %v1739_v14  ;;  %v1767_v62 = vld [vmem:[#allocation9 + $0x718] sm:$0xff] }
 0x30a   : > { %3690 = vmatpush1.bf16.msra.mxu1 %v6187_v59  ;;  %v1746_v59 = vld [vmem:[#allocation9 + $0x670] sm:$0xff] }
 0x30b   : > { %3916 = vmatpush1.bf16.msra.mxu0 %v6189_v12  ;;  %3691 = vmatprep.subr.bf16.mxu1 %v6196_v4  ;;  %v1743_v12 = vld [vmem:[#allocation9 + $0x658] sm:$0xff]  ;;  %v6236_v19 = vcombine.high %v1742_v10, %v1746_v59 }
 0x30c   : > { %3623 = vmatmul.mubr.bf16.gmra.mrb[40].mxu1 %v8096_v45  ;;  %3917 = vmatprep.subr.bf16.mxu0 %v6198_v18  ;;  %v1747_v4 = vld [vmem:[#allocation9 + $0x678] sm:$0xff]  ;;  %v6229_v18 = vcombine.low %v1735_v61, %v1739_v14 }
 0x30d   : > { %3849 = vmatmul.mubr.bf16.gmra.mrb[136].mxu0 %v8096_v45  ;;  %3632 = vmatprep.mubr.bf16.mxu1 %v8110_v2  ;;  %v6211_v45 = vcombine.low %v1718_v54, %v1722_v23  ;;  %v1758_v23 = vld [vmem:[#allocation9 + $0x6d0] sm:$0xff]  ;;  %v1779_v61 = vld [vmem:[#allocation9 + $0x778] sm:$0xff] }
 0x30e   : > { %3692 = vmatpush1.bf16.msra.mxu1 %v6195_v21  ;;  %3858 = vmatprep.mubr.bf16.mxu0 %v8110_v2  ;;  %v6222_v2 = vcombine.high %v1727_v8, %v1731_v9  ;;  %v1755_v21 = vld [vmem:[#allocation9 + $0x6b8] sm:$0xff]  ;;  %v6251_v9 = vcombine.low %v1758_v23, %v1762_v27 }
 0x30f   : > { %3918 = vmatpush1.bf16.msra.mxu0 %v6197_v38  ;;  %3693 = vmatprep.subr.bf16.mxu1 %v6204_v35  ;;  %v6235_v38 = vcombine.low %v1742_v10, %v1746_v59  ;;  %v6237_v35 = vcombine.low %v1743_v12, %v1747_v4  ;;  %v6246_v54 = vcombine.high %v1751_v50, %v1755_v21  ;;  %v1771_v8 = vld [vmem:[#allocation9 + $0x738] sm:$0xff] }
 0x310   : > { %3919 = vmatprep.subr.bf16.mxu0 %v6206_v17  ;;  %v6244_v17 = vcombine.high %v1750_v40, %v1754_v47  ;;  %v6261_v14 = vcombine.low %v1767_v62, %v1771_v8  ;;  %v1787_v10 = vld [vmem:[#allocation9 + $0x7b8] sm:$0xff] }
 0x312   : > { %3694 = vmatpush1.bf16.msra.mxu1 %v6203_v11  ;;  %v1763_v11 = vld [vmem:[#allocation9 + $0x6f8] sm:$0xff] }
 0x313   : > { %3920 = vmatpush1.bf16.msra.mxu0 %v6205_v39  ;;  %3695 = vmatprep.subr.bf16.mxu1 %v6212_v56  ;;  %v6245_v39 = vcombine.low %v1751_v50, %v1755_v21  ;;  %v6252_v56 = vcombine.high %v1758_v23, %v1762_v27  ;;  %v7134_v23 = vld [vmem:[#allocation11 + $0x20] ss:$8 sps:$4 sm:$0xff]   ;;  %v7139_v27 = vld [vmem:[#allocation11 + $0x34] ss:$8 sps:$4 sm:$0xff]  }
 0x314   : > { %3633 = vmatmul.mubr.bf16.gmra.mrb[44].mxu1 %v8108_v31  ;;  %3921 = vmatprep.subr.bf16.mxu0 %v6214_v58  ;;  %v1766_v58 = vld [vmem:[#allocation9 + $0x710] sm:$0xff] }
 0x315   : > { %3859 = vmatmul.mubr.bf16.gmra.mrb[140].mxu0 %v8108_v31  ;;  %3642 = vmatprep.mubr.bf16.mxu1 %v8122_v29  ;;  %v6227_v31 = vcombine.low %v1734_v60, %v1738_v16  ;;  %v1778_v60 = vld [vmem:[#allocation9 + $0x770] sm:$0xff]  ;;  %v1775_v16 = vld [vmem:[#allocation9 + $0x758] sm:$0xff] }
 0x316   : > { %3696 = vmatpush1.bf16.msra.mxu1 %v6211_v45  ;;  %3868 = vmatprep.mubr.bf16.mxu0 %v8122_v29  ;;  %v6238_v29 = vcombine.high %v1743_v12, %v1747_v4  ;;  %v6253_v45 = vcombine.low %v1759_v44, %v1763_v11  ;;  %v6269_v12 = vcombine.low %v1775_v16, %v1779_v61 }
 0x317   : > { %3922 = vmatpush1.bf16.msra.mxu0 %v6213_v30  ;;  %3697 = vmatprep.subr.bf16.mxu1 %v6220_v25  ;;  %v6260_v30 = vcombine.high %v1766_v58, %v1770_v0  ;;  %v6262_v25 = vcombine.high %v1767_v62, %v1771_v8  ;;  %v7164_v62 = vld [vmem:[#allocation11 + $0xc0] ss:$8 sps:$4 sm:$0xff]   ;;  %v7169_v8 = vld [vmem:[#allocation11 + $0xd4] ss:$8 sps:$4 sm:$0xff]  }
 0x318   : > { %3923 = vmatprep.subr.bf16.mxu0 %v6222_v2  ;;  %v1774_v2 = vld [vmem:[#allocation9 + $0x750] sm:$0xff] }
 0x319   : > { %v6267_v59 = vcombine.low %v1774_v2, %v1778_v60 }
 0x31a   : > { %3698 = vmatpush1.bf16.msra.mxu1 %v6219_v22  ;;  %v6268_v22 = vcombine.high %v1774_v2, %v1778_v60  ;;  %v8809_v2 = vsub.s32 2, %v7918_v48 }
 0x31b   : > { %3924 = vmatpush1.bf16.msra.mxu0 %v6221_v34  ;;  %3699 = vmatprep.subr.bf16.mxu1 %v6228_v43  ;;  %v1782_v34 = vld [vmem:[#allocation9 + $0x790] sm:$0xff] }
 0x31c   : > { %3643 = vmatmul.mubr.bf16.gmra.mrb[48].mxu1 %v8120_v28  ;;  %3925 = vmatprep.subr.bf16.mxu0 %v6230_v24  ;;  %v1786_v43 = vld [vmem:[#allocation9 + $0x7b0] sm:$0xff]  ;;  %v1783_v24 = vld [vmem:[#allocation9 + $0x798] sm:$0xff] }
 0x31d   : > { %3869 = vmatmul.mubr.bf16.gmra.mrb[144].mxu0 %v8120_v28  ;;  %3652 = vmatprep.mubr.bf16.mxu1 %v8134_v6  ;;  %v6243_v28 = vcombine.low %v1750_v40, %v1754_v47  ;;  %v6276_v4 = vcombine.high %v1782_v34, %v1786_v43  ;;  %v1795_v40 = vld [vmem:[#allocation9 + $0x7f8] sm:$0xff]  ;;  %v6277_v47 = vcombine.low %v1783_v24, %v1787_v10 }
 0x31e   : > { %3700 = vmatpush1.bf16.msra.mxu1 %v6227_v31  ;;  %3878 = vmatprep.mubr.bf16.mxu0 %v8134_v6  ;;  %v6254_v6 = vcombine.high %v1759_v44, %v1763_v11  ;;  %v6278_v31 = vcombine.high %v1783_v24, %v1787_v10  ;;  %v7140_v44 = vld [vmem:[#allocation11 + $0x40] ss:$8 sps:$4 sm:$0xff]   ;;  %v7145_v11 = vld [vmem:[#allocation11 + $0x54] ss:$8 sps:$4 sm:$0xff]  }
 0x31f   : > { %3926 = vmatpush1.bf16.msra.mxu0 %v6229_v18  ;;  %3701 = vmatprep.subr.bf16.mxu1 %v6236_v19  ;;  %v1790_v18 = vld [vmem:[#allocation9 + $0x7d0] sm:$0xff] }
 0x320   : > { %3927 = vmatprep.subr.bf16.mxu0 %v6238_v29  ;;  %v1794_v19 = vld [vmem:[#allocation9 + $0x7f0] sm:$0xff]  ;;  %v1791_v29 = vld [vmem:[#allocation9 + $0x7d8] sm:$0xff] }
 0x321   : > { %v6284_v50 = vcombine.high %v1790_v18, %v1794_v19  ;;  %v6283_v21 = vcombine.low %v1790_v18, %v1794_v19 }
 0x322   : > { %3702 = vmatpush1.bf16.msra.mxu1 %v6235_v38  ;;  %v6285_v38 = vcombine.low %v1791_v29, %v1795_v40 }
 0x323   : > { %3928 = vmatpush1.bf16.msra.mxu0 %v6237_v35  ;;  %3703 = vmatprep.subr.bf16.mxu1 %v6244_v17  ;;  %v7130_v35 = vld [vmem:[#allocation11 + $0x4] ss:$8 sps:$4 sm:$0xff]   ;;  %v7128_v17 = vld [vmem:[#allocation11] ss:$8 sps:$4 sm:$0xff]  }
 0x324   : > { %3653 = vmatmul.mubr.bf16.gmra.mrb[52].mxu1 %v8132_v37  ;;  %3929 = vmatprep.subr.bf16.mxu0 %v6246_v54  ;;  %v7133_v54 = vld [vmem:[#allocation11 + $0x14] ss:$8 sps:$4 sm:$0xff]  }
 0x325   : > { %3879 = vmatmul.mubr.bf16.gmra.mrb[148].mxu0 %v8132_v37  ;;  %3662 = vmatprep.mubr.bf16.mxu1 %v8146_v46  ;;  %v6259_v37 = vcombine.low %v1766_v58, %v1770_v0  ;;  %v7158_v58 = vld [vmem:[#allocation11 + $0xa0] ss:$8 sps:$4 sm:$0xff]   ;;  %v7163_v0 = vld [vmem:[#allocation11 + $0xb4] ss:$8 sps:$4 sm:$0xff]  }
 0x326   : > { %3704 = vmatpush1.bf16.msra.mxu1 %v6243_v28  ;;  %3888 = vmatprep.mubr.bf16.mxu0 %v8146_v46  ;;  %v6270_v46 = vcombine.high %v1775_v16, %v1779_v61  ;;  %v7146_v28 = vld [vmem:[#allocation11 + $0x60] ss:$8 sps:$4 sm:$0xff]   ;;  %v8811_v61 = vsub.s32 3, %v7918_v48 }
 0x327   : > { %3930 = vmatpush1.bf16.msra.mxu0 %v6245_v39  ;;  %3705 = vmatprep.subr.bf16.mxu1 %v6252_v56  ;;  %v7151_v39 = vld [vmem:[#allocation11 + $0x74] ss:$8 sps:$4 sm:$0xff]   ;;  %v7152_v56 = vld [vmem:[#allocation11 + $0x80] ss:$8 sps:$4 sm:$0xff]  }
 0x328   : > { %3931 = vmatprep.subr.bf16.mxu0 %v6254_v6  ;;  %v7157_v6 = vld [vmem:[#allocation11 + $0x94] ss:$8 sps:$4 sm:$0xff]  }
 0x32a   : > { %3706 = vmatpush1.bf16.msra.mxu1 %v6251_v9  ;;  %v7170_v9 = vld [vmem:[#allocation11 + $0xe0] ss:$8 sps:$4 sm:$0xff]  }
 0x32b   : > { %3932 = vmatpush1.bf16.msra.mxu0 %v6253_v45  ;;  %3707 = vmatprep.subr.bf16.mxu1 %v6260_v30  ;;  %v7175_v45 = vld [vmem:[#allocation11 + $0xf4] ss:$8 sps:$4 sm:$0xff]   ;;  %v7173_v30 = vld [vmem:[#allocation11 + $0xf0] ss:$8 sps:$4 sm:$0xff]  }
 0x32c   : > { %3663 = vmatmul.mubr.bf16.gmra.mrb[56].mxu1 %v8144_v13  ;;  %3933 = vmatprep.subr.bf16.mxu0 %v6262_v25 }
 0x32d   : > { %3889 = vmatmul.mubr.bf16.gmra.mrb[152].mxu0 %v8144_v13  ;;  %3672 = vmatprep.mubr.bf16.mxu1 %v8170_v32  ;;  %v6275_v13 = vcombine.low %v1782_v34, %v1786_v43 }
 0x32e   : > { %3708 = vmatpush1.bf16.msra.mxu1 %v6259_v37  ;;  %3898 = vmatprep.mubr.bf16.mxu0 %v8170_v32  ;;  %v6286_v32 = vcombine.high %v1791_v29, %v1795_v40 }
 0x32f   : > { %3934 = vmatpush1.bf16.msra.mxu0 %v6261_v14  ;;  %3709 = vmatprep.subr.bf16.mxu1 %v6268_v22 }
 0x330   : > { %3935 = vmatprep.subr.bf16.mxu0 %v6270_v46 }
 0x332   : > { %3710 = vmatpush1.bf16.msra.mxu1 %v6267_v59 }
 0x333   : > { %3936 = vmatpush1.bf16.msra.mxu0 %v6269_v12  ;;  %3711 = vmatprep.subr.bf16.mxu1 %v6276_v4 }
 0x334   : > { %3673 = vmatmul.mubr.bf16.gmra.mrb[60].mxu1 %v8168_v20  ;;  %3937 = vmatprep.subr.bf16.mxu0 %v6278_v31 }
 0x335   : > { %3899 = vmatmul.mubr.bf16.gmra.mrb[156].mxu0 %v8168_v20  ;;  %3715 = vmatprep.mubr.bf16.mxu1 %v8182_v5  ;;  %v7131_v20 = vld [vmem:[#allocation11 + $0x10] ss:$8 sps:$4 sm:$0xff]  }
 0x336   : > { %3712 = vmatpush1.bf16.msra.mxu1 %v6275_v13  ;;  %3941 = vmatprep.mubr.bf16.mxu0 %v8182_v5  ;;  %v7136_v5 = vld [vmem:[#allocation11 + $0x24] ss:$8 sps:$4 sm:$0xff]  }
 0x337   : > { %3938 = vmatpush1.bf16.msra.mxu0 %v6277_v47  ;;  %3713 = vmatprep.subr.bf16.mxu1 %v6284_v50 }
 0x338   : > { %3939 = vmatprep.subr.bf16.mxu0 %v6286_v32 }
 0x33a   : > { %3714 = vmatpush1.bf16.msra.mxu1 %v6283_v21 }
 0x33b   : > { %3940 = vmatpush1.bf16.msra.mxu0 %v6285_v38  ;;  %4994 = vmatprep.subr.bf16.mxu1 %v7130_v35 }
 0x33d   : > { %3716 = vmatmul.mubr.bf16.vlgmr.msra.gmra.mrb[32].mxu1 %v8180_v63 }
 0x33e   : > { %3942 = vmatmul.mubr.bf16.vlgmr.msra.gmra.mrb[128].mxu0 %v8180_v63  ;;  %3725 = vmatprep.mubr.bf16.mxu1 %v8194_v52  ;;  %v7137_v63 = vld [vmem:[#allocation11 + $0x30] ss:$8 sps:$4 sm:$0xff]  }
 0x33f   : > { %3951 = vmatprep.mubr.bf16.mxu0 %v8194_v52  ;;  %4995 = vmatpush1.bf16.msra.mxu1 %v7128_v17  ;;  %v7142_v52 = vld [vmem:[#allocation11 + $0x44] ss:$8 sps:$4 sm:$0xff]  }
 0x340   : > { %4996 = vmatprep.subr.bf16.mxu1 %v7133_v54 }
 0x343   : > { %4997 = vmatpush1.bf16.msra.mxu1 %v7131_v20 }
 0x344   : > { %4998 = vmatprep.subr.bf16.mxu1 %v7136_v5 }
 0x345   : > { %3726 = vmatmul.mubr.bf16.gmra.mrb[36].mxu1 %v8192_v26 }
 0x346   : > { %3952 = vmatmul.mubr.bf16.gmra.mrb[132].mxu0 %v8192_v26  ;;  %3735 = vmatprep.mubr.bf16.mxu1 %v8206_v42  ;;  %v7143_v26 = vld [vmem:[#allocation11 + $0x50] ss:$8 sps:$4 sm:$0xff]  }
 0x347   : > { %3961 = vmatprep.mubr.bf16.mxu0 %v8206_v42  ;;  %4999 = vmatpush1.bf16.msra.mxu1 %v7134_v23  ;;  %v7148_v42 = vld [vmem:[#allocation11 + $0x64] ss:$8 sps:$4 sm:$0xff]  }
 0x348   : > { %5000 = vmatprep.subr.bf16.mxu1 %v7139_v27 }
 0x34b   : > { %5001 = vmatpush1.bf16.msra.mxu1 %v7137_v63 }
 0x34c   : > { %5002 = vmatprep.subr.bf16.mxu1 %v7142_v52 }
 0x34d   : > { %3736 = vmatmul.mubr.bf16.gmra.mrb[40].mxu1 %v8204_v41 }
 0x34e   : > { %3962 = vmatmul.mubr.bf16.gmra.mrb[136].mxu0 %v8204_v41  ;;  %3745 = vmatprep.mubr.bf16.mxu1 %v8218_v33  ;;  %v7149_v41 = vld [vmem:[#allocation11 + $0x70] ss:$8 sps:$4 sm:$0xff]  }
 0x34f   : > { %3971 = vmatprep.mubr.bf16.mxu0 %v8218_v33  ;;  %5003 = vmatpush1.bf16.msra.mxu1 %v7140_v44  ;;  %v7154_v33 = vld [vmem:[#allocation11 + $0x84] ss:$8 sps:$4 sm:$0xff]   ;;  %v7176_v44 = vld [vmem:[#allocation11 + $0x100] ss:$8 sps:$4 sm:$0xff]  }
 0x350   : > { %5004 = vmatprep.subr.bf16.mxu1 %v7145_v11 }
 0x353   : > { %5005 = vmatpush1.bf16.msra.mxu1 %v7143_v26 }
 0x354   : > { %5006 = vmatprep.subr.bf16.mxu1 %v7148_v42 }
 0x355   : > { %3746 = vmatmul.mubr.bf16.gmra.mrb[44].mxu1 %v8216_v53 }
 0x356   : > { %3972 = vmatmul.mubr.bf16.gmra.mrb[140].mxu0 %v8216_v53  ;;  %3755 = vmatprep.mubr.bf16.mxu1 %v8230_v36  ;;  %v7155_v53 = vld [vmem:[#allocation11 + $0x90] ss:$8 sps:$4 sm:$0xff]  }
 0x357   : > { %3981 = vmatprep.mubr.bf16.mxu0 %v8230_v36  ;;  %5007 = vmatpush1.bf16.msra.mxu1 %v7146_v28  ;;  %v7160_v36 = vld [vmem:[#allocation11 + $0xa4] ss:$8 sps:$4 sm:$0xff]  }
 0x358   : > { %5008 = vmatprep.subr.bf16.mxu1 %v7151_v39  ;;  %v7181_v39 = vld [vmem:[#allocation11 + $0x114] ss:$8 sps:$4 sm:$0xff]  }
 0x35b   : > { %5009 = vmatpush1.bf16.msra.mxu1 %v7149_v41 }
 0x35c   : > { %5010 = vmatprep.subr.bf16.mxu1 %v7154_v33 }
 0x35d   : > { %3756 = vmatmul.mubr.bf16.gmra.mrb[48].mxu1 %v8228_v15 }
 0x35e   : > { %3982 = vmatmul.mubr.bf16.gmra.mrb[144].mxu0 %v8228_v15  ;;  %3765 = vmatprep.mubr.bf16.mxu1 %v8242_v1  ;;  %v7161_v15 = vld [vmem:[#allocation11 + $0xb0] ss:$8 sps:$4 sm:$0xff]  }
 0x35f   : > { %3991 = vmatprep.mubr.bf16.mxu0 %v8242_v1  ;;  %5011 = vmatpush1.bf16.msra.mxu1 %v7152_v56  ;;  %v7166_v1 = vld [vmem:[#allocation11 + $0xc4] ss:$8 sps:$4 sm:$0xff]  }
 0x360   : > { %5012 = vmatprep.subr.bf16.mxu1 %v7157_v6 }
 0x363   : > { %5013 = vmatpush1.bf16.msra.mxu1 %v7155_v53 }
 0x364   : > { %5014 = vmatprep.subr.bf16.mxu1 %v7160_v36 }
 0x365   : > { %3766 = vmatmul.mubr.bf16.gmra.mrb[52].mxu1 %v8240_v3 }
 0x366   : > { %3992 = vmatmul.mubr.bf16.gmra.mrb[148].mxu0 %v8240_v3  ;;  %3775 = vmatprep.mubr.bf16.mxu1 %v8254_v55  ;;  %v7167_v3 = vld [vmem:[#allocation11 + $0xd0] ss:$8 sps:$4 sm:$0xff]  }
 0x367   : > { %4001 = vmatprep.mubr.bf16.mxu0 %v8254_v55  ;;  %5015 = vmatpush1.bf16.msra.mxu1 %v7158_v58  ;;  %v7172_v55 = vld [vmem:[#allocation11 + $0xe4] ss:$8 sps:$4 sm:$0xff]  }
 0x368   : > { %5016 = vmatprep.subr.bf16.mxu1 %v7163_v0 }
 0x36b   : > { %5017 = vmatpush1.bf16.msra.mxu1 %v7161_v15 }
 0x36c   : > { %5018 = vmatprep.subr.bf16.mxu1 %v7166_v1 }
 0x36d   : > { %3776 = vmatmul.mubr.bf16.gmra.mrb[56].mxu1 %v8252_v57 }
 0x36e   : > { %4002 = vmatmul.mubr.bf16.gmra.mrb[152].mxu0 %v8252_v57  ;;  %3785 = vmatprep.mubr.bf16.mxu1 %v8266_v51  ;;  %v7178_v57 = vld [vmem:[#allocation11 + $0x104] ss:$8 sps:$4 sm:$0xff]  }
 0x36f   : > { %4011 = vmatprep.mubr.bf16.mxu0 %v8266_v51  ;;  %5019 = vmatpush1.bf16.msra.mxu1 %v7164_v62  ;;  %v8339_v51 = vld [vmem:[%s8763_s6] sm:$0xff] }
 0x370   : > { %5020 = vmatprep.subr.bf16.mxu1 %v7169_v8  ;;  %v8343_v25 = vrot.slane %v8339_v51, %v7921_v49  ;;  %v8348_v60 = vrot.slane %v8339_v51, %v8809_v2  ;;  %v8357_v37 = vrot.slane %v8339_v51, %v8811_v61  ;;  %v7179_v62 = vld [vmem:[#allocation11 + $0x110] ss:$8 sps:$4 sm:$0xff]  }
 0x373   : > { %5021 = vmatpush1.bf16.msra.mxu1 %v7167_v3 }
 0x374   : > { %5022 = vmatprep.subr.bf16.mxu1 %v7172_v55 }
 0x375   : > { %3786 = vmatmul.mubr.bf16.gmra.mrb[60].mxu1 %v8264_v7 }
 0x376   : > { %4012 = vmatmul.mubr.bf16.gmra.mrb[156].mxu0 %v8264_v7  ;;  %v8810_v7 = vld [vmem:[#allocation26_spill] sm:$0xff] }
 0x377   : > { %5023 = vmatpush1.bf16.msra.mxu1 %v7170_v9  ;;  %v8352_v16 = vrot.slane %v8339_v51, %v8810_v7 }
 0x378   : > { %5024 = vmatprep.subr.bf16.mxu1 %v7175_v45  ;;  %v7184_v45 = vld [vmem:[#allocation11 + $0x124] ss:$8 sps:$4 sm:$0xff]  }
 0x37b   : > { %5025 = vmatpush1.bf16.msra.mxu1 %v7173_v30 }
 0x37c   : > { %5107 = vmatprep.subr.bf16.mxu1 %v7178_v57 }
 0x38f   : > { %v3265_v14 = vpop.f32.mrb[0].mxu1  ;;  %v3491_v22 = vpop.f32.mrb[96].mxu0 }
 0x390   : > { %v6528_v46 = vadd.f32 %v3265_v14, %v8343_v25  ;;  %v6560_v34 = vadd.f32 %v3491_v22, %v8348_v60  ;;  %v3267_v43 = vpop.f32.mrb[1].mxu1  ;;  %v3493_v24 = vpop.f32.mrb[97].mxu0 }
 0x391   : > { %v6529_v10 = vadd.f32 %v3267_v43, %v8352_v16  ;;  %v6561_v59 = vadd.f32 %v3493_v24, %v8357_v37  ;;  %v3269_v12 = vpop.f32.mrb[2].mxu1  ;;  %v3495_v4 = vpop.f32.mrb[98].mxu0 }
 0x392   : > { %v6530_v31 = vadd.f32 %v3269_v12, %v8343_v25  ;;  %v6562_v18 = vadd.f32 %v3495_v4, %v8348_v60  ;;  %v3271_v19 = vpop.f32.mrb[3].mxu1  ;;  %v3497_v29 = vpop.f32.mrb[99].mxu0  ;;  %v4022_v47 = vmax.f32 %v6528_v46, 0.0  ;;  %v4024_v50 = vmax.f32 %v6560_v34, 0.0 }
 0x393   : > { %v6531_v40 = vadd.f32 %v3271_v19, %v8352_v16  ;;  %v6563_v13 = vadd.f32 %v3497_v29, %v8357_v37  ;;  %v4023_v38 = vmax.f32 %v6529_v10, 0.0  ;;  %v4025_v35 = vmax.f32 %v6561_v59, 0.0  ;;  %v7182_v10 = vld [vmem:[#allocation11 + $0x120] ss:$8 sps:$4 sm:$0xff]  }
 0x394   : > { %v4030_v32 = vmax.f32 %v6530_v31, 0.0  ;;  %v4032_v21 = vmax.f32 %v6562_v18, 0.0  ;;  %v7187_v18 = vld [vmem:[#allocation11 + $0x134] ss:$8 sps:$4 sm:$0xff]  }
 0x395   : > { %v4031_v17 = vmax.f32 %v6531_v40, 0.0  ;;  %v4033_v54 = vmax.f32 %v6563_v13, 0.0 }
 0x396   : > { %v4150_v20 = vpack.c.bf16 %v4030_v32, %v4022_v47  ;;  %v8367_v5 = vpack.c.bf16 %v4032_v21, %v4024_v50 }
 0x397   : > { %v4151_v23 = vpack.c.bf16 %v4031_v17, %v4023_v38  ;;  %v8369_v27 = vpack.c.bf16 %v4033_v54, %v4025_v35  ;;  %v3275_v63 = vpop.f32.mrb[4].mxu1  ;;  %v3501_v52 = vpop.f32.mrb[100].mxu0  ;;  %v7185_v17 = vld [vmem:[#allocation11 + $0x130] ss:$8 sps:$4 sm:$0xff]  }
 0x398   : > { %v6532_v11 = vadd.f32 %v3275_v63, %v8343_v25  ;;  %v6564_v26 = vadd.f32 %v3501_v52, %v8348_v60  ;;  %v3277_v42 = vpop.f32.mrb[5].mxu1  ;;  %v3503_v28 = vpop.f32.mrb[101].mxu0  ;;  %v7190_v52 = vld [vmem:[#allocation11 + $0x144] ss:$8 sps:$4 sm:$0xff]  }
 0x399   : > { %v6533_v41 = vadd.f32 %v3277_v42, %v8352_v16  ;;  %v6565_v33 = vadd.f32 %v3503_v28, %v8357_v37  ;;  %v3279_v56 = vpop.f32.mrb[6].mxu1  ;;  %v3505_v6 = vpop.f32.mrb[102].mxu0  ;;  %5026 = vmatprep.mubr.bf16.mxu1 %v4151_v23 }
 0x39a   : > { %v6534_v53 = vadd.f32 %v3279_v56, %v8343_v25  ;;  %v6566_v36 = vadd.f32 %v3505_v6, %v8348_v60  ;;  %v3281_v58 = vpop.f32.mrb[7].mxu1  ;;  %v3507_v0 = vpop.f32.mrb[103].mxu0  ;;  %5027 = vmatmul.mubr.bf16.vlgmr.msra.gmra.mrb[64].mxu1 %v4150_v20  ;;  %v4038_v8 = vmax.f32 %v6532_v11, 0.0  ;;  %v4040_v3 = vmax.f32 %v6564_v26, 0.0 }
 0x39b   : > { %v6535_v15 = vadd.f32 %v3281_v58, %v8352_v16  ;;  %v6567_v1 = vadd.f32 %v3507_v0, %v8357_v37  ;;  %5108 = vmatpush1.bf16.msra.mxu1 %v7176_v44  ;;  %v4039_v30 = vmax.f32 %v6533_v41, 0.0  ;;  %v4041_v57 = vmax.f32 %v6565_v33, 0.0 }
 0x39c   : > { %v4046_v55 = vmax.f32 %v6534_v53, 0.0  ;;  %v4048_v9 = vmax.f32 %v6566_v36, 0.0  ;;  %5109 = vmatprep.subr.bf16.mxu1 %v7181_v39  ;;  %v7188_v53 = vld [vmem:[#allocation11 + $0x140] ss:$8 sps:$4 sm:$0xff]  }
 0x39d   : > { %v4047_v2 = vmax.f32 %v6535_v15, 0.0  ;;  %v4049_v61 = vmax.f32 %v6567_v1, 0.0  ;;  %v7193_v1 = vld [vmem:[#allocation11 + $0x154] ss:$8 sps:$4 sm:$0xff]  }
 0x39e   : > { %v4158_v14 = vpack.c.bf16 %v4046_v55, %v4038_v8  ;;  %v8379_v22 = vpack.c.bf16 %v4048_v9, %v4040_v3 }
 0x39f   : > { %v4159_v46 = vpack.c.bf16 %v4047_v2, %v4039_v30  ;;  %v8381_v34 = vpack.c.bf16 %v4049_v61, %v4041_v57  ;;  %v3285_v43 = vpop.f32.mrb[8].mxu1  ;;  %v3511_v24 = vpop.f32.mrb[104].mxu0  ;;  %5110 = vmatpush1.bf16.msra.mxu1 %v7179_v62 }
 0x3a0   : > { %v6536_v59 = vadd.f32 %v3285_v43, %v8343_v25  ;;  %v6568_v12 = vadd.f32 %v3511_v24, %v8348_v60  ;;  %v3287_v4 = vpop.f32.mrb[9].mxu1  ;;  %v3513_v31 = vpop.f32.mrb[105].mxu0  ;;  %5111 = vmatprep.subr.bf16.mxu1 %v7184_v45 }
 0x3a1   : > { %v6537_v19 = vadd.f32 %v3287_v4, %v8352_v16  ;;  %v6569_v29 = vadd.f32 %v3513_v31, %v8357_v37  ;;  %v3289_v40 = vpop.f32.mrb[10].mxu1  ;;  %v3515_v13 = vpop.f32.mrb[106].mxu0  ;;  %5036 = vmatprep.mubr.bf16.mxu1 %v4159_v46 }
 0x3a2   : > { %v6538_v47 = vadd.f32 %v3289_v40, %v8343_v25  ;;  %v6570_v50 = vadd.f32 %v3515_v13, %v8348_v60  ;;  %v3291_v32 = vpop.f32.mrb[11].mxu1  ;;  %v3517_v21 = vpop.f32.mrb[107].mxu0  ;;  %5037 = vmatmul.mubr.bf16.gmra.mrb[68].mxu1 %v4158_v14  ;;  %v4054_v54 = vmax.f32 %v6536_v59, 0.0  ;;  %v4056_v20 = vmax.f32 %v6568_v12, 0.0  ;;  %v7191_v14 = vld [vmem:[#allocation11 + $0x150] ss:$8 sps:$4 sm:$0xff]  }
 0x3a3   : > { %v6539_v38 = vadd.f32 %v3291_v32, %v8352_v16  ;;  %v6571_v35 = vadd.f32 %v3517_v21, %v8357_v37  ;;  %5112 = vmatpush1.bf16.msra.mxu1 %v7182_v10  ;;  %v4055_v44 = vmax.f32 %v6537_v19, 0.0  ;;  %v4057_v11 = vmax.f32 %v6569_v29, 0.0  ;;  %v7196_v59 = vld [vmem:[#allocation11 + $0x164] ss:$8 sps:$4 sm:$0xff]   ;;  %v7194_v32 = vld [vmem:[#allocation11 + $0x160] ss:$8 sps:$4 sm:$0xff]  }
 0x3a4   : > { %v4062_v23 = vmax.f32 %v6538_v47, 0.0  ;;  %v4064_v63 = vmax.f32 %v6570_v50, 0.0  ;;  %5113 = vmatprep.subr.bf16.mxu1 %v7187_v18 }
 0x3a5   : > { %v4063_v26 = vmax.f32 %v6539_v38, 0.0  ;;  %v4065_v42 = vmax.f32 %v6571_v35, 0.0 }
 0x3a6   : > { %v4166_v28 = vpack.c.bf16 %v4062_v23, %v4054_v54  ;;  %v8391_v39 = vpack.c.bf16 %v4064_v63, %v4056_v20  ;;  %v7199_v54 = vld [vmem:[#allocation11 + $0x174] ss:$8 sps:$4 sm:$0xff]  }
 0x3a7   : > { %v4167_v41 = vpack.c.bf16 %v4063_v26, %v4055_v44  ;;  %v8393_v33 = vpack.c.bf16 %v4065_v42, %v4057_v11  ;;  %v3295_v56 = vpop.f32.mrb[12].mxu1  ;;  %v3521_v6 = vpop.f32.mrb[108].mxu0  ;;  %5114 = vmatpush1.bf16.msra.mxu1 %v7185_v17 }
 0x3a8   : > { %v6540_v36 = vadd.f32 %v3295_v56, %v8343_v25  ;;  %v6572_v58 = vadd.f32 %v3521_v6, %v8348_v60  ;;  %v3297_v0 = vpop.f32.mrb[13].mxu1  ;;  %v3523_v15 = vpop.f32.mrb[109].mxu0  ;;  %5115 = vmatprep.subr.bf16.mxu1 %v7190_v52  ;;  %v7197_v56 = vld [vmem:[#allocation11 + $0x170] ss:$8 sps:$4 sm:$0xff]  }
 0x3a9   : > { %v6541_v62 = vadd.f32 %v3297_v0, %v8352_v16  ;;  %v6573_v8 = vadd.f32 %v3523_v15, %v8357_v37  ;;  %v3299_v3 = vpop.f32.mrb[14].mxu1  ;;  %v3525_v55 = vpop.f32.mrb[110].mxu0  ;;  %5046 = vmatprep.mubr.bf16.mxu1 %v4167_v41  ;;  %v7202_v0 = vld [vmem:[#allocation11 + $0x184] ss:$8 sps:$4 sm:$0xff]  }
 0x3aa   : > { %v6542_v9 = vadd.f32 %v3299_v3, %v8343_v25  ;;  %v6574_v45 = vadd.f32 %v3525_v55, %v8348_v60  ;;  %v3301_v30 = vpop.f32.mrb[15].mxu1  ;;  %v3527_v57 = vpop.f32.mrb[111].mxu0  ;;  %5047 = vmatmul.mubr.bf16.gmra.mrb[72].mxu1 %v4166_v28  ;;  %v4070_v46 = vmax.f32 %v6540_v36, 0.0  ;;  %v4072_v43 = vmax.f32 %v6572_v58, 0.0 }
 0x3ab   : > { %v6543_v2 = vadd.f32 %v3301_v30, %v8352_v16  ;;  %v6575_v61 = vadd.f32 %v3527_v57, %v8357_v37  ;;  %5116 = vmatpush1.bf16.msra.mxu1 %v7188_v53  ;;  %v4071_v12 = vmax.f32 %v6541_v62, 0.0  ;;  %v4073_v4 = vmax.f32 %v6573_v8, 0.0 }
 0x3ac   : > { %v4078_v24 = vmax.f32 %v6542_v9, 0.0  ;;  %v4080_v10 = vmax.f32 %v6574_v45, 0.0  ;;  %5117 = vmatprep.subr.bf16.mxu1 %v7193_v1 }
 0x3ad   : > { %v4079_v31 = vmax.f32 %v6543_v2, 0.0  ;;  %v4081_v18 = vmax.f32 %v6575_v61, 0.0  ;;  %v7200_v2 = vld [vmem:[#allocation11 + $0x180] ss:$8 sps:$4 sm:$0xff]  }
 0x3ae   : > { %v4174_v19 = vpack.c.bf16 %v4078_v24, %v4070_v46  ;;  %v8403_v29 = vpack.c.bf16 %v4080_v10, %v4072_v43  ;;  %v7205_v24 = vld [vmem:[#allocation11 + $0x194] ss:$8 sps:$4 sm:$0xff]  }
 0x3af   : > { %v4175_v40 = vpack.c.bf16 %v4079_v31, %v4071_v12  ;;  %v8405_v13 = vpack.c.bf16 %v4081_v18, %v4073_v4  ;;  %v3305_v47 = vpop.f32.mrb[16].mxu1  ;;  %v3531_v50 = vpop.f32.mrb[112].mxu0  ;;  %5118 = vmatpush1.bf16.msra.mxu1 %v7191_v14 }
 0x3b0   : > { %v6544_v21 = vadd.f32 %v3305_v47, %v8343_v25  ;;  %v6576_v38 = vadd.f32 %v3531_v50, %v8348_v60  ;;  %v3307_v35 = vpop.f32.mrb[17].mxu1  ;;  %v3533_v17 = vpop.f32.mrb[113].mxu0  ;;  %5119 = vmatprep.subr.bf16.mxu1 %v7196_v59 }
 0x3b1   : > { %v6545_v20 = vadd.f32 %v3307_v35, %v8352_v16  ;;  %v6577_v23 = vadd.f32 %v3533_v17, %v8357_v37  ;;  %v3309_v63 = vpop.f32.mrb[18].mxu1  ;;  %v3535_v52 = vpop.f32.mrb[114].mxu0  ;;  %5056 = vmatprep.mubr.bf16.mxu1 %v4175_v40 }
 0x3b2   : > { %v6546_v44 = vadd.f32 %v3309_v63, %v8343_v25  ;;  %v6578_v11 = vadd.f32 %v3535_v52, %v8348_v60  ;;  %v3311_v26 = vpop.f32.mrb[19].mxu1  ;;  %v3537_v42 = vpop.f32.mrb[115].mxu0  ;;  %5057 = vmatmul.mubr.bf16.gmra.mrb[76].mxu1 %v4174_v19  ;;  %v4086_v6 = vmax.f32 %v6544_v21, 0.0  ;;  %v4088_v53 = vmax.f32 %v6576_v38, 0.0 }
 0x3b3   : > { %v6547_v28 = vadd.f32 %v3311_v26, %v8352_v16  ;;  %v6579_v41 = vadd.f32 %v3537_v42, %v8357_v37  ;;  %5120 = vmatpush1.bf16.msra.mxu1 %v7194_v32  ;;  %v4087_v15 = vmax.f32 %v6545_v20, 0.0  ;;  %v4089_v1 = vmax.f32 %v6577_v23, 0.0  ;;  %v7203_v32 = vld [vmem:[#allocation11 + $0x190] ss:$8 sps:$4 sm:$0xff]  }
 0x3b4   : > { %v4094_v36 = vmax.f32 %v6546_v44, 0.0  ;;  %v4096_v58 = vmax.f32 %v6578_v11, 0.0  ;;  %5121 = vmatprep.subr.bf16.mxu1 %v7199_v54  ;;  %v7208_v54 = vld [vmem:[#allocation11 + $0x1a4] ss:$8 sps:$4 sm:$0xff]  }
 0x3b5   : > { %v4095_v62 = vmax.f32 %v6547_v28, 0.0  ;;  %v4097_v8 = vmax.f32 %v6579_v41, 0.0 }
 0x3b6   : > { %v4182_v3 = vpack.c.bf16 %v4094_v36, %v4086_v6  ;;  %v8415_v55 = vpack.c.bf16 %v4096_v58, %v4088_v53 }
 0x3b7   : > { %v4183_v9 = vpack.c.bf16 %v4095_v62, %v4087_v15  ;;  %v8417_v45 = vpack.c.bf16 %v4097_v8, %v4089_v1  ;;  %v3315_v30 = vpop.f32.mrb[20].mxu1  ;;  %v3541_v57 = vpop.f32.mrb[116].mxu0  ;;  %5122 = vmatpush1.bf16.msra.mxu1 %v7197_v56  ;;  %v7206_v56 = vld [vmem:[#allocation11 + $0x1a0] ss:$8 sps:$4 sm:$0xff]  }
 0x3b8   : > { %v6548_v61 = vadd.f32 %v3315_v30, %v8343_v25  ;;  %v6580_v14 = vadd.f32 %v3541_v57, %v8348_v60  ;;  %v3317_v46 = vpop.f32.mrb[21].mxu1  ;;  %v3543_v43 = vpop.f32.mrb[117].mxu0  ;;  %5123 = vmatprep.subr.bf16.mxu1 %v7202_v0  ;;  %v7211_v0 = vld [vmem:[#allocation11 + $0x1b4] ss:$8 sps:$4 sm:$0xff]  }
 0x3b9   : > { %v6549_v10 = vadd.f32 %v3317_v46, %v8352_v16  ;;  %v6581_v59 = vadd.f32 %v3543_v43, %v8357_v37  ;;  %v3319_v12 = vpop.f32.mrb[22].mxu1  ;;  %v3545_v4 = vpop.f32.mrb[118].mxu0  ;;  %5066 = vmatprep.mubr.bf16.mxu1 %v4183_v9 }
 0x3ba   : > { %v6550_v31 = vadd.f32 %v3319_v12, %v8343_v25  ;;  %v6582_v18 = vadd.f32 %v3545_v4, %v8348_v60  ;;  %v3321_v19 = vpop.f32.mrb[23].mxu1  ;;  %v3547_v40 = vpop.f32.mrb[119].mxu0  ;;  %5067 = vmatmul.mubr.bf16.gmra.mrb[80].mxu1 %v4182_v3  ;;  %v4102_v21 = vmax.f32 %v6548_v61, 0.0  ;;  %v4104_v38 = vmax.f32 %v6580_v14, 0.0  ;;  %v7209_v14 = vld [vmem:[#allocation11 + $0x1b0] ss:$8 sps:$4 sm:$0xff]  }
 0x3bb   : > { %v6551_v47 = vadd.f32 %v3321_v19, %v8352_v16  ;;  %v6583_v50 = vadd.f32 %v3547_v40, %v8357_v37  ;;  %5124 = vmatpush1.bf16.msra.mxu1 %v7200_v2  ;;  %v4103_v20 = vmax.f32 %v6549_v10, 0.0  ;;  %v4105_v23 = vmax.f32 %v6581_v59, 0.0  ;;  %v7214_v59 = vld [vmem:[#allocation11 + $0x1c4] ss:$8 sps:$4 sm:$0xff]  }
 0x3bc   : > { %v4110_v35 = vmax.f32 %v6550_v31, 0.0  ;;  %v4112_v17 = vmax.f32 %v6582_v18, 0.0  ;;  %5125 = vmatprep.subr.bf16.mxu1 %v7205_v24 }
 0x3bd   : > { %v4111_v63 = vmax.f32 %v6551_v47, 0.0  ;;  %v4113_v52 = vmax.f32 %v6583_v50, 0.0 }
 0x3be   : > { %v4190_v44 = vpack.c.bf16 %v4110_v35, %v4102_v21  ;;  %v8427_v11 = vpack.c.bf16 %v4112_v17, %v4104_v38  ;;  %v7212_v38 = vld [vmem:[#allocation11 + $0x1c0] ss:$8 sps:$4 sm:$0xff]  }
 0x3bf   : > { %v4191_v26 = vpack.c.bf16 %v4111_v63, %v4103_v20  ;;  %v8429_v42 = vpack.c.bf16 %v4113_v52, %v4105_v23  ;;  %v3325_v28 = vpop.f32.mrb[24].mxu1  ;;  %v3551_v41 = vpop.f32.mrb[120].mxu0  ;;  %5126 = vmatpush1.bf16.msra.mxu1 %v7203_v32  ;;  %v7217_v23 = vld [vmem:[#allocation11 + $0x1d4] ss:$8 sps:$4 sm:$0xff]  }
 0x3c0   : > { %v6552_v6 = vadd.f32 %v3325_v28, %v8343_v25  ;;  %v6584_v53 = vadd.f32 %v3551_v41, %v8348_v60  ;;  %v3327_v36 = vpop.f32.mrb[25].mxu1  ;;  %v3553_v58 = vpop.f32.mrb[121].mxu0  ;;  %5127 = vmatprep.subr.bf16.mxu1 %v7208_v54 }
 0x3c1   : > { %v6553_v15 = vadd.f32 %v3327_v36, %v8352_v16  ;;  %v6585_v1 = vadd.f32 %v3553_v58, %v8357_v37  ;;  %v3329_v62 = vpop.f32.mrb[26].mxu1  ;;  %v3555_v8 = vpop.f32.mrb[122].mxu0  ;;  %5076 = vmatprep.mubr.bf16.mxu1 %v4191_v26  ;;  %v7215_v58 = vld [vmem:[#allocation11 + $0x1d0] ss:$8 sps:$4 sm:$0xff]  }
 0x3c2   : > { %v6554_v3 = vadd.f32 %v3329_v62, %v8343_v25  ;;  %v6586_v9 = vadd.f32 %v3555_v8, %v8348_v60  ;;  %v3331_v30 = vpop.f32.mrb[27].mxu1  ;;  %v3557_v57 = vpop.f32.mrb[123].mxu0  ;;  %5077 = vmatmul.mubr.bf16.gmra.mrb[84].mxu1 %v4190_v44  ;;  %v4118_v46 = vmax.f32 %v6552_v6, 0.0  ;;  %v4120_v43 = vmax.f32 %v6584_v53, 0.0  ;;  %v7220_v8 = vld [vmem:[#allocation11 + $0x1e4] ss:$8 sps:$4 sm:$0xff]  }
 0x3c3   : > { %v6555_v2 = vadd.f32 %v3331_v30, %v8352_v16  ;;  %v6587_v61 = vadd.f32 %v3557_v57, %v8357_v37  ;;  %5128 = vmatpush1.bf16.msra.mxu1 %v7206_v56  ;;  %v4119_v12 = vmax.f32 %v6553_v15, 0.0  ;;  %v4121_v4 = vmax.f32 %v6585_v1, 0.0 }
 0x3c4   : > { %v4126_v24 = vmax.f32 %v6554_v3, 0.0  ;;  %v4128_v10 = vmax.f32 %v6586_v9, 0.0  ;;  %5129 = vmatprep.subr.bf16.mxu1 %v7211_v0 }
 0x3c5   : > { %v4127_v31 = vmax.f32 %v6555_v2, 0.0  ;;  %v4129_v18 = vmax.f32 %v6587_v61, 0.0 }
 0x3c6   : > { %v4198_v19 = vpack.c.bf16 %v4126_v24, %v4118_v46  ;;  %v8439_v40 = vpack.c.bf16 %v4128_v10, %v4120_v43  ;;  %v7226_v46 = vld [vmem:[#allocation11 + $0x204] ss:$8 sps:$4 sm:$0xff]   ;;  %v7224_v43 = vld [vmem:[#allocation11 + $0x200] ss:$8 sps:$4 sm:$0xff]   ;;  %v7229_v24 = vld [vmem:[#allocation11 + $0x214] ss:$8 sps:$4 sm:$0xff]  }
 0x3c7   : > { %v4199_v47 = vpack.c.bf16 %v4127_v31, %v4119_v12  ;;  %v8441_v50 = vpack.c.bf16 %v4129_v18, %v4121_v4  ;;  %v3335_v32 = vpop.f32.mrb[28].mxu1  ;;  %v3561_v21 = vpop.f32.mrb[124].mxu0  ;;  %5130 = vmatpush1.bf16.msra.mxu1 %v7209_v14  ;;  %v7221_v14 = vld [vmem:[#allocation11 + $0x1f0] ss:$8 sps:$4 sm:$0xff]   ;;  %v7230_v12 = vld [vmem:[#allocation11 + $0x220] ss:$8 sps:$4 sm:$0xff]  }
 0x3c8   : > { %v6556_v35 = vadd.f32 %v3335_v32, %v8343_v25  ;;  %v6588_v17 = vadd.f32 %v3561_v21, %v8348_v60  ;;  %v3337_v54 = vpop.f32.mrb[29].mxu1  ;;  %v3563_v20 = vpop.f32.mrb[125].mxu0  ;;  %5131 = vmatprep.subr.bf16.mxu1 %v7214_v59  ;;  %v7227_v10 = vld [vmem:[#allocation11 + $0x210] ss:$8 sps:$4 sm:$0xff]   ;;  %v7232_v59 = vld [vmem:[#allocation11 + $0x224] ss:$8 sps:$4 sm:$0xff]  }
 0x3c9   : > { %v6557_v63 = vadd.f32 %v3337_v54, %v8352_v16  ;;  %v6589_v52 = vadd.f32 %v3563_v20, %v8357_v37  ;;  %v3339_v44 = vpop.f32.mrb[30].mxu1  ;;  %v3565_v26 = vpop.f32.mrb[126].mxu0  ;;  %5086 = vmatprep.mubr.bf16.mxu1 %v4199_v47  ;;  %v7235_v4 = vld [vmem:[#allocation11 + $0x234] ss:$8 sps:$4 sm:$0xff]   ;;  %v7238_v31 = vld [vmem:[#allocation11 + $0x244] ss:$8 sps:$4 sm:$0xff]  }
 0x3ca   : > { %v6558_v28 = vadd.f32 %v3339_v44, %v8343_v25  ;;  %v6590_v41 = vadd.f32 %v3565_v26, %v8348_v60  ;;  %v3341_v56 = vpop.f32.mrb[31].mxu1  ;;  %v3567_v6 = vpop.f32.mrb[127].mxu0  ;;  %5087 = vmatmul.mubr.bf16.gmra.mrb[88].mxu1 %v4198_v19  ;;  %v4134_v0 = vmax.f32 %v6556_v35, 0.0  ;;  %v4136_v15 = vmax.f32 %v6588_v17, 0.0  ;;  %v7239_v18 = vld [vmem:[#allocation11 + $0x250] ss:$8 sps:$4 sm:$0xff]  }
 0x3cb   : > { %v6559_v53 = vadd.f32 %v3341_v56, %v8352_v16  ;;  %v6591_v36 = vadd.f32 %v3567_v6, %v8357_v37  ;;  %5132 = vmatpush1.bf16.msra.mxu1 %v7212_v38  ;;  %v4135_v3 = vmax.f32 %v6557_v63, 0.0  ;;  %v4137_v9 = vmax.f32 %v6589_v52, 0.0  ;;  %v7218_v16 = vld [vmem:[#allocation11 + $0x1e0] ss:$8 sps:$4 sm:$0xff]   ;;  %v7223_v37 = vld [vmem:[#allocation11 + $0x1f4] ss:$8 sps:$4 sm:$0xff]  }
 0x3cc   : > { %v4142_v1 = vmax.f32 %v6558_v28, 0.0  ;;  %v4144_v62 = vmax.f32 %v6590_v41, 0.0  ;;  %5133 = vmatprep.subr.bf16.mxu1 %v7217_v23  ;;  %v7244_v19 = vld [vmem:[#allocation11 + $0x264] ss:$8 sps:$4 sm:$0xff]   ;;  %v7245_v47 = vld [vmem:[#allocation11 + $0x270] ss:$8 sps:$4 sm:$0xff]  }
 0x3cd   : > { %v4143_v25 = vmax.f32 %v6559_v53, 0.0  ;;  %v4145_v30 = vmax.f32 %v6591_v36, 0.0  ;;  %v7250_v32 = vld [vmem:[#allocation11 + $0x284] ss:$8 sps:$4 sm:$0xff]   ;;  %v7251_v21 = vld [vmem:[#allocation11 + $0x290] ss:$8 sps:$4 sm:$0xff]  }
 0x3ce   : > { %v4206_v60 = vpack.c.bf16 %v4142_v1, %v4134_v0  ;;  %v8451_v57 = vpack.c.bf16 %v4144_v62, %v4136_v15  ;;  %v7256_v38 = vld [vmem:[#allocation11 + $0x2a4] ss:$8 sps:$4 sm:$0xff]   ;;  %v7257_v35 = vld [vmem:[#allocation11 + $0x2b0] ss:$8 sps:$4 sm:$0xff]   ;;  %v1816_v54 = vsub.s32 4, %v7918_v48  ;;  %v1824_v20 = vsub.s32 6, %v7918_v48 }
 0x3cf   : > { %v4207_v2 = vpack.c.bf16 %v4143_v25, %v4135_v3  ;;  %v8453_v61 = vpack.c.bf16 %v4145_v30, %v4137_v9  ;;  %5134 = vmatpush1.bf16.msra.mxu1 %v7215_v58  ;;  %v7262_v17 = vld [vmem:[#allocation11 + $0x2c4] ss:$8 sps:$4 sm:$0xff]   ;;  %v1820_v23 = vsub.s32 5, %v7918_v48  ;;  %v7266_v28 = vld [vmem:[#allocation11 + $0x2e0] ss:$8 sps:$4 sm:$0xff]  }
 0x3d0   : > { %5135 = vmatprep.subr.bf16.mxu1 %v7220_v8  ;;  %v7268_v63 = vld [vmem:[#allocation11 + $0x2e4] ss:$8 sps:$4 sm:$0xff]   ;;  %v8475_v52 = vrot.slane %v8339_v51, %v1816_v54  ;;  %v8478_v44 = vrot.slane %v8339_v51, %v1824_v20  ;;  %v7271_v56 = vld [vmem:[#allocation11 + $0x2f4] ss:$8 sps:$4 sm:$0xff]   ;;  %v7269_v1 = vld [vmem:[#allocation11 + $0x2f0] ss:$8 sps:$4 sm:$0xff]  }
 0x3d1   : > { %5096 = vmatprep.mubr.bf16.mxu1 %v4207_v2  ;;  %v7320_v9 = vld [vmem:[%s8766_s9 + $0x40] sm:$0xff]   ;;  %v7322_v30 = vld [vmem:[%s8766_s9 + $0x48] sm:$0xff]   ;;  %v7326_v54 = vld [vmem:[%s8766_s9 + $0x58] sm:$0xff]  }
 0x3d2   : > { %5097 = vmatmul.mubr.bf16.gmra.mrb[92].mxu1 %v4206_v60  ;;  %v7321_v25 = vld [vmem:[%s8766_s9] sm:$0xff]   ;;  %6435 = vmatprep.subr.bf16.mxu0 %v7320_v9 }
 0x3d3   : > { %5136 = vmatpush1.bf16.msra.mxu1 %v7218_v16  ;;  %5139 = vmatprep.mubr.bf16.mxu1 %v8369_v27  ;;  %v7233_v27 = vld [vmem:[#allocation11 + $0x230] ss:$8 sps:$4 sm:$0xff]   ;;  %v7278_v9 = vld [vmem:[#allocation11 + $0x320] ss:$8 sps:$4 sm:$0xff]  }
 0x3d4   : > { %5137 = vmatprep.subr.bf16.mxu1 %v7223_v37  ;;  %6436 = vmatpush3.bf16.msra.mxu0 %v7321_v25 }
 0x3d5   : > { %6437 = vmatprep.subr.bf16.mxu0 %v7322_v30 }
 0x3d7   : > { %5138 = vmatpush1.bf16.msra.mxu1 %v7221_v14 }
 0x3d8   : > { %5220 = vmatprep.subr.bf16.mxu1 %v7226_v46 }
 0x3da   : > { %5140 = vmatmul.mubr.bf16.vlgmr.msra.gmra.mrb[64].mxu1 %v8367_v5  ;;  %v7236_v5 = vld [vmem:[#allocation11 + $0x240] ss:$8 sps:$4 sm:$0xff]  }
 0x3db   : > { %5149 = vmatprep.mubr.bf16.mxu1 %v8381_v34  ;;  %5221 = vmatpush1.bf16.msra.mxu1 %v7224_v43  ;;  %v7241_v34 = vld [vmem:[#allocation11 + $0x254] ss:$8 sps:$4 sm:$0xff]  }
 0x3dc   : > { %5222 = vmatprep.subr.bf16.mxu1 %v7229_v24 }
 0x3df   : > { %5223 = vmatpush1.bf16.msra.mxu1 %v7227_v10 }
 0x3e0   : > { %5224 = vmatprep.subr.bf16.mxu1 %v7232_v59  ;;  %v7323_v59 = vld [vmem:[%s8766_s9 + $0x8] sm:$0xff]  }
 0x3e1   : > { %6438 = vmatpush3.bf16.msra.mxu0 %v7323_v59 }
 0x3e2   : > { %5150 = vmatmul.mubr.bf16.gmra.mrb[68].mxu1 %v8379_v22  ;;  %v7242_v22 = vld [vmem:[#allocation11 + $0x260] ss:$8 sps:$4 sm:$0xff]  }
 0x3e3   : > { %5159 = vmatprep.mubr.bf16.mxu1 %v8393_v33  ;;  %5225 = vmatpush1.bf16.msra.mxu1 %v7230_v12  ;;  %v7247_v33 = vld [vmem:[#allocation11 + $0x274] ss:$8 sps:$4 sm:$0xff]  }
 0x3e4   : > { %5226 = vmatprep.subr.bf16.mxu1 %v7235_v4 }
 0x3e7   : > { %5227 = vmatpush1.bf16.msra.mxu1 %v7233_v27 }
 0x3e8   : > { %5228 = vmatprep.subr.bf16.mxu1 %v7238_v31  ;;  %v7324_v31 = vld [vmem:[%s8766_s9 + $0x50] sm:$0xff]  }
 0x3e9   : > { %6439 = vmatprep.subr.bf16.mxu0 %v7324_v31 }
 0x3ea   : > { %5160 = vmatmul.mubr.bf16.gmra.mrb[72].mxu1 %v8391_v39  ;;  %v7248_v39 = vld [vmem:[#allocation11 + $0x280] ss:$8 sps:$4 sm:$0xff]  }
 0x3eb   : > { %5169 = vmatprep.mubr.bf16.mxu1 %v8405_v13  ;;  %5229 = vmatpush1.bf16.msra.mxu1 %v7236_v5  ;;  %v7253_v13 = vld [vmem:[#allocation11 + $0x294] ss:$8 sps:$4 sm:$0xff]  }
 0x3ec   : > { %5230 = vmatprep.subr.bf16.mxu1 %v7241_v34 }
 0x3ef   : > { %5231 = vmatpush1.bf16.msra.mxu1 %v7239_v18 }
 0x3f0   : > { %5232 = vmatprep.subr.bf16.mxu1 %v7244_v19  ;;  %v7272_v19 = vld [vmem:[#allocation11 + $0x300] ss:$8 sps:$4 sm:$0xff]  }
 0x3f2   : > { %5170 = vmatmul.mubr.bf16.gmra.mrb[76].mxu1 %v8403_v29  ;;  %v7254_v29 = vld [vmem:[#allocation11 + $0x2a0] ss:$8 sps:$4 sm:$0xff]  }
 0x3f3   : > { %5179 = vmatprep.mubr.bf16.mxu1 %v8417_v45  ;;  %5233 = vmatpush1.bf16.msra.mxu1 %v7242_v22  ;;  %v7259_v45 = vld [vmem:[#allocation11 + $0x2b4] ss:$8 sps:$4 sm:$0xff]  }
 0x3f4   : > { %5234 = vmatprep.subr.bf16.mxu1 %v7247_v33 }
 0x3f7   : > { %5235 = vmatpush1.bf16.msra.mxu1 %v7245_v47 }
 0x3f8   : > { %5236 = vmatprep.subr.bf16.mxu1 %v7250_v32 }
 0x3fa   : > { %5180 = vmatmul.mubr.bf16.gmra.mrb[80].mxu1 %v8415_v55  ;;  %v7260_v55 = vld [vmem:[#allocation11 + $0x2c0] ss:$8 sps:$4 sm:$0xff]  }
 0x3fb   : > { %5189 = vmatprep.mubr.bf16.mxu1 %v8429_v42  ;;  %5237 = vmatpush1.bf16.msra.mxu1 %v7248_v39  ;;  %v7265_v42 = vld [vmem:[#allocation11 + $0x2d4] ss:$8 sps:$4 sm:$0xff]  }
 0x3fc   : > { %5238 = vmatprep.subr.bf16.mxu1 %v7253_v13  ;;  %v7277_v39 = vld [vmem:[#allocation11 + $0x314] ss:$8 sps:$4 sm:$0xff]  }
 0x3ff   : > { %5239 = vmatpush1.bf16.msra.mxu1 %v7251_v21 }
 0x400   : > { %5240 = vmatprep.subr.bf16.mxu1 %v7256_v38 }
 0x402   : > { %5190 = vmatmul.mubr.bf16.gmra.mrb[84].mxu1 %v8427_v11  ;;  %v7263_v11 = vld [vmem:[#allocation11 + $0x2d0] ss:$8 sps:$4 sm:$0xff]  }
 0x403   : > { %5199 = vmatprep.mubr.bf16.mxu1 %v8441_v50  ;;  %5241 = vmatpush1.bf16.msra.mxu1 %v7254_v29  ;;  %v1828_v50 = vsub.s32 7, %v7918_v48 }
 0x404   : > { %5242 = vmatprep.subr.bf16.mxu1 %v7259_v45  ;;  %v7325_v45 = vld [vmem:[%s8766_s9 + $0x10] sm:$0xff]  }
 0x405   : > { %v8484_v26 = vrot.slane %v8339_v51, %v1828_v50  ;;  %v7275_v50 = vld [vmem:[#allocation11 + $0x310] ss:$8 sps:$4 sm:$0xff]   ;;  %6440 = vmatpush3.bf16.msra.mxu0 %v7325_v45 }
 0x406   : > { %6441 = vmatprep.subr.bf16.mxu0 %v7326_v54 }
 0x407   : > { %5243 = vmatpush1.bf16.msra.mxu1 %v7257_v35 }
 0x408   : > { %5244 = vmatprep.subr.bf16.mxu1 %v7262_v17 }
 0x40a   : > { %5200 = vmatmul.mubr.bf16.gmra.mrb[88].mxu1 %v8439_v40  ;;  %v8481_v40 = vrot.slane %v8339_v51, %v1820_v23 }
 0x40b   : > { %5209 = vmatprep.mubr.bf16.mxu1 %v8453_v61  ;;  %5245 = vmatpush1.bf16.msra.mxu1 %v7260_v55  ;;  %v7274_v61 = vld [vmem:[#allocation11 + $0x304] ss:$8 sps:$4 sm:$0xff]  }
 0x40c   : > { %5246 = vmatprep.subr.bf16.mxu1 %v7265_v42 }
 0x40f   : > { %5247 = vmatpush1.bf16.msra.mxu1 %v7263_v11 }
 0x410   : > { %v3717_v41 = vpop.f32.mrb[32].mxu1  ;;  %5248 = vmatprep.subr.bf16.mxu1 %v7268_v63 }
 0x411   : > { %v6592_v48 = vadd.f32 %v3717_v41, %v8475_v52  ;;  %v3943_v6 = vpop.f32.mrb[128].mxu0  ;;  %v3719_v53 = vpop.f32.mrb[33].mxu1 }
 0x412   : > { %v6624_v36 = vadd.f32 %v3943_v6, %v8478_v44  ;;  %v6593_v58 = vadd.f32 %v3719_v53, %v8481_v40  ;;  %v3945_v0 = vpop.f32.mrb[129].mxu0  ;;  %v3721_v15 = vpop.f32.mrb[34].mxu1  ;;  %5210 = vmatmul.mubr.bf16.gmra.mrb[92].mxu1 %v8451_v57 }
 0x413   : > { %v6625_v51 = vadd.f32 %v3945_v0, %v8484_v26  ;;  %v6594_v62 = vadd.f32 %v3721_v15, %v8475_v52  ;;  %v3947_v8 = vpop.f32.mrb[130].mxu0  ;;  %v3723_v3 = vpop.f32.mrb[35].mxu1  ;;  %5249 = vmatpush1.bf16.msra.mxu1 %v7266_v28  ;;  %v4026_v16 = vmax.f32 %v6592_v48, 0.0 }
 0x414   : > { %v6626_v60 = vadd.f32 %v3947_v8, %v8478_v44  ;;  %v6595_v57 = vadd.f32 %v3723_v3, %v8481_v40  ;;  %v3949_v2 = vpop.f32.mrb[131].mxu0  ;;  %5250 = vmatprep.subr.bf16.mxu1 %v7271_v56  ;;  %v4028_v46 = vmax.f32 %v6624_v36, 0.0  ;;  %v4027_v43 = vmax.f32 %v6593_v58, 0.0  ;;  %v7280_v56 = vld [vmem:[#allocation11 + $0x324] ss:$8 sps:$4 sm:$0xff]   ;;  %v7327_v58 = vld [vmem:[%s8766_s9 + $0x18] sm:$0xff]  }
 0x415   : > { %v4034_v37 = vmax.f32 %v6594_v62, 0.0  ;;  %v6627_v14 = vadd.f32 %v3949_v2, %v8484_v26  ;;  %v4029_v12 = vmax.f32 %v6625_v51, 0.0  ;;  %v7328_v51 = vld [vmem:[%s8766_s9 + $0x60] sm:$0xff]   ;;  %6442 = vmatpush3.bf16.msra.mxu0 %v7327_v58 }
 0x416   : > { %v4036_v24 = vmax.f32 %v6626_v60, 0.0  ;;  %v4035_v10 = vmax.f32 %v6595_v57, 0.0  ;;  %v7283_v2 = vld [vmem:[#allocation11 + $0x334] ss:$8 sps:$4 sm:$0xff]   ;;  %6443 = vmatprep.subr.bf16.mxu0 %v7328_v51 }
 0x417   : > { %v4154_v4 = vpack.c.bf16 %v4034_v37, %v4026_v16  ;;  %v4037_v27 = vmax.f32 %v6627_v14, 0.0  ;;  %5251 = vmatpush1.bf16.msra.mxu1 %v7269_v1 }
 0x418   : > { %v8510_v5 = vpack.c.bf16 %v4036_v24, %v4028_v46  ;;  %v4155_v34 = vpack.c.bf16 %v4035_v10, %v4027_v43  ;;  %v3727_v18 = vpop.f32.mrb[36].mxu1  ;;  %5333 = vmatprep.subr.bf16.mxu1 %v7274_v61  ;;  %v7329_v46 = vld [vmem:[%s8766_s9 + $0x20] sm:$0xff]  }
 0x419   : > { %v8512_v22 = vpack.c.bf16 %v4037_v27, %v4029_v12  ;;  %v6596_v33 = vadd.f32 %v3727_v18, %v8475_v52  ;;  %v3953_v47 = vpop.f32.mrb[132].mxu0  ;;  %v3729_v32 = vpop.f32.mrb[37].mxu1  ;;  %v7330_v12 = vld [vmem:[%s8766_s9 + $0x68] sm:$0xff]   ;;  %6444 = vmatpush3.bf16.msra.mxu0 %v7329_v46 }
 0x41a   : > { %v6628_v13 = vadd.f32 %v3953_v47, %v8478_v44  ;;  %v6597_v21 = vadd.f32 %v3729_v32, %v8481_v40  ;;  %v3955_v38 = vpop.f32.mrb[133].mxu0  ;;  %v3731_v29 = vpop.f32.mrb[38].mxu1  ;;  %5252 = vmatprep.mubr.bf16.mxu1 %v4155_v34  ;;  %v7281_v34 = vld [vmem:[#allocation11 + $0x330] ss:$8 sps:$4 sm:$0xff]   ;;  %v7286_v47 = vld [vmem:[#allocation11 + $0x344] ss:$8 sps:$4 sm:$0xff]   ;;  %6445 = vmatprep.subr.bf16.mxu0 %v7330_v12 }
 0x41b   : > { %v6629_v35 = vadd.f32 %v3955_v38, %v8484_v26  ;;  %v6598_v17 = vadd.f32 %v3731_v29, %v8475_v52  ;;  %v3957_v55 = vpop.f32.mrb[134].mxu0  ;;  %v3733_v42 = vpop.f32.mrb[39].mxu1  ;;  %5253 = vmatmul.mubr.bf16.vlgmr.msra.gmra.mrb[64].mxu1 %v4154_v4  ;;  %v4042_v63 = vmax.f32 %v6596_v33, 0.0  ;;  %v7331_v38 = vld [vmem:[%s8766_s9 + $0x28] sm:$0xff]  }
 0x41c   : > { %v6630_v20 = vadd.f32 %v3957_v55, %v8478_v44  ;;  %v6599_v23 = vadd.f32 %v3733_v42, %v8481_v40  ;;  %v3959_v11 = vpop.f32.mrb[135].mxu0  ;;  %5334 = vmatpush1.bf16.msra.mxu1 %v7272_v19  ;;  %v4044_v48 = vmax.f32 %v6628_v13, 0.0  ;;  %v4043_v6 = vmax.f32 %v6597_v21, 0.0  ;;  %v7290_v12 = vld [vmem:[#allocation11 + $0x360] ss:$8 sps:$4 sm:$0xff]  }
 0x41d   : > { %v4050_v28 = vmax.f32 %v6598_v17, 0.0  ;;  %v6631_v41 = vadd.f32 %v3959_v11, %v8484_v26  ;;  %5335 = vmatprep.subr.bf16.mxu1 %v7277_v39  ;;  %v4045_v0 = vmax.f32 %v6629_v35, 0.0  ;;  %v7332_v17 = vld [vmem:[%s8766_s9 + $0x70] sm:$0xff]   ;;  %6446 = vmatpush3.bf16.msra.mxu0 %v7331_v38 }
 0x41e   : > { %v4052_v53 = vmax.f32 %v6630_v20, 0.0  ;;  %v4051_v36 = vmax.f32 %v6599_v23, 0.0  ;;  %v7284_v20 = vld [vmem:[#allocation11 + $0x340] ss:$8 sps:$4 sm:$0xff]   ;;  %6447 = vmatprep.subr.bf16.mxu0 %v7332_v17  ;;  %v7293_v17 = vld [vmem:[#allocation11 + $0x370] ss:$8 sps:$4 sm:$0xff]  }
 0x41f   : > { %v4162_v15 = vpack.c.bf16 %v4050_v28, %v4042_v63  ;;  %v4053_v1 = vmax.f32 %v6631_v41, 0.0  ;;  %v7289_v28 = vld [vmem:[#allocation11 + $0x354] ss:$8 sps:$4 sm:$0xff]  }
 0x420   : > { %v8534_v62 = vpack.c.bf16 %v4052_v53, %v4044_v48  ;;  %v4163_v8 = vpack.c.bf16 %v4051_v36, %v4043_v6  ;;  %v3737_v3 = vpop.f32.mrb[40].mxu1  ;;  %5336 = vmatpush1.bf16.msra.mxu1 %v7275_v50  ;;  %v7333_v53 = vld [vmem:[%s8766_s9 + $0x30] sm:$0xff]  }
 0x421   : > { %v8536_v25 = vpack.c.bf16 %v4053_v1, %v4045_v0  ;;  %v6600_v30 = vadd.f32 %v3737_v3, %v8475_v52  ;;  %v3963_v60 = vpop.f32.mrb[136].mxu0  ;;  %v3739_v57 = vpop.f32.mrb[41].mxu1  ;;  %5337 = vmatprep.subr.bf16.mxu1 %v7280_v56  ;;  %v7287_v3 = vld [vmem:[#allocation11 + $0x350] ss:$8 sps:$4 sm:$0xff]   ;;  %6448 = vmatpush3.bf16.msra.mxu0 %v7333_v53 }
 0x422   : > { %v6632_v61 = vadd.f32 %v3963_v60, %v8478_v44  ;;  %v6601_v16 = vadd.f32 %v3739_v57, %v8481_v40  ;;  %v3965_v37 = vpop.f32.mrb[137].mxu0  ;;  %v3741_v14 = vpop.f32.mrb[42].mxu1  ;;  %5262 = vmatprep.mubr.bf16.mxu1 %v4163_v8  ;;  %v7292_v57 = vld [vmem:[#allocation11 + $0x364] ss:$8 sps:$4 sm:$0xff]  }
 0x423   : > { %v6633_v43 = vadd.f32 %v3965_v37, %v8484_v26  ;;  %v6602_v24 = vadd.f32 %v3741_v14, %v8475_v52  ;;  %v3967_v10 = vpop.f32.mrb[138].mxu0  ;;  %v3743_v59 = vpop.f32.mrb[43].mxu1  ;;  %5263 = vmatmul.mubr.bf16.gmra.mrb[68].mxu1 %v4162_v15  ;;  %v4058_v18 = vmax.f32 %v6600_v30, 0.0 }
 0x424   : > { %v6634_v4 = vadd.f32 %v3967_v10, %v8478_v44  ;;  %v6603_v27 = vadd.f32 %v3743_v59, %v8481_v40  ;;  %v3969_v31 = vpop.f32.mrb[139].mxu0  ;;  %5338 = vmatpush1.bf16.msra.mxu1 %v7278_v9  ;;  %v4060_v32 = vmax.f32 %v6632_v61, 0.0  ;;  %v4059_v39 = vmax.f32 %v6601_v16, 0.0 }
 0x425   : > { %v4066_v19 = vmax.f32 %v6602_v24, 0.0  ;;  %v6635_v33 = vadd.f32 %v3969_v31, %v8484_v26  ;;  %5339 = vmatprep.subr.bf16.mxu1 %v7283_v2  ;;  %v4061_v29 = vmax.f32 %v6633_v43, 0.0 }
 0x426   : > { %v4068_v13 = vmax.f32 %v6634_v4, 0.0  ;;  %v4067_v21 = vmax.f32 %v6603_v27, 0.0 }
 0x427   : > { %v4170_v45 = vpack.c.bf16 %v4066_v19, %v4058_v18  ;;  %v4069_v35 = vmax.f32 %v6635_v33, 0.0  ;;  %v7295_v18 = vld [vmem:[#allocation11 + $0x374] ss:$8 sps:$4 sm:$0xff]  }
 0x428   : > { %v8558_v55 = vpack.c.bf16 %v4068_v13, %v4060_v32  ;;  %v4171_v42 = vpack.c.bf16 %v4067_v21, %v4059_v39  ;;  %v3747_v54 = vpop.f32.mrb[44].mxu1  ;;  %5340 = vmatpush1.bf16.msra.mxu1 %v7281_v34 }
 0x429   : > { %v8560_v23 = vpack.c.bf16 %v4069_v35, %v4061_v29  ;;  %v6604_v11 = vadd.f32 %v3747_v54, %v8475_v52  ;;  %v3973_v50 = vpop.f32.mrb[140].mxu0  ;;  %v3749_v63 = vpop.f32.mrb[45].mxu1  ;;  %5341 = vmatprep.subr.bf16.mxu1 %v7286_v47 }
 0x42a   : > { %v6636_v41 = vadd.f32 %v3973_v50, %v8478_v44  ;;  %v6605_v56 = vadd.f32 %v3749_v63, %v8481_v40  ;;  %v3975_v48 = vpop.f32.mrb[141].mxu0  ;;  %v3751_v6 = vpop.f32.mrb[46].mxu1  ;;  %5272 = vmatprep.mubr.bf16.mxu1 %v4171_v42 }
 0x42b   : > { %v6637_v36 = vadd.f32 %v3975_v48, %v8484_v26  ;;  %v6606_v58 = vadd.f32 %v3751_v6, %v8475_v52  ;;  %v3977_v0 = vpop.f32.mrb[142].mxu0  ;;  %v3753_v15 = vpop.f32.mrb[47].mxu1  ;;  %5273 = vmatmul.mubr.bf16.gmra.mrb[72].mxu1 %v4170_v45  ;;  %v4074_v9 = vmax.f32 %v6604_v11, 0.0  ;;  %v7298_v11 = vld [vmem:[#allocation11 + $0x384] ss:$8 sps:$4 sm:$0xff]  }
 0x42c   : > { %v6638_v1 = vadd.f32 %v3977_v0, %v8478_v44  ;;  %v6607_v51 = vadd.f32 %v3753_v15, %v8481_v40  ;;  %v3979_v8 = vpop.f32.mrb[143].mxu0  ;;  %5342 = vmatpush1.bf16.msra.mxu1 %v7284_v20  ;;  %v4076_v2 = vmax.f32 %v6636_v41, 0.0  ;;  %v4075_v61 = vmax.f32 %v6605_v56, 0.0  ;;  %v7296_v0 = vld [vmem:[#allocation11 + $0x380] ss:$8 sps:$4 sm:$0xff]  }
 0x42d   : > { %v4082_v30 = vmax.f32 %v6606_v58, 0.0  ;;  %v6639_v60 = vadd.f32 %v3979_v8, %v8484_v26  ;;  %5343 = vmatprep.subr.bf16.mxu1 %v7289_v28  ;;  %v4077_v14 = vmax.f32 %v6637_v36, 0.0 }
 0x42e   : > { %v4084_v16 = vmax.f32 %v6638_v1, 0.0  ;;  %v4083_v37 = vmax.f32 %v6607_v51, 0.0 }
 0x42f   : > { %v4178_v46 = vpack.c.bf16 %v4082_v30, %v4074_v9  ;;  %v4085_v43 = vmax.f32 %v6639_v60, 0.0 }
 0x430   : > { %v8573_v24 = vpack.c.bf16 %v4084_v16, %v4076_v2  ;;  %v4179_v10 = vpack.c.bf16 %v4083_v37, %v4075_v61  ;;  %v3757_v59 = vpop.f32.mrb[48].mxu1  ;;  %5344 = vmatpush1.bf16.msra.mxu1 %v7287_v3  ;;  %v7301_v3 = vld [vmem:[#allocation11 + $0x394] ss:$8 sps:$4 sm:$0xff]  }
 0x431   : > { %v8575_v4 = vpack.c.bf16 %v4085_v43, %v4077_v14  ;;  %v6608_v27 = vadd.f32 %v3757_v59, %v8475_v52  ;;  %v3983_v31 = vpop.f32.mrb[144].mxu0  ;;  %v3759_v34 = vpop.f32.mrb[49].mxu1  ;;  %5345 = vmatprep.subr.bf16.mxu1 %v7292_v57 }
 0x432   : > { %v6640_v19 = vadd.f32 %v3983_v31, %v8478_v44  ;;  %v6609_v33 = vadd.f32 %v3759_v34, %v8481_v40  ;;  %v3985_v47 = vpop.f32.mrb[145].mxu0  ;;  %v3761_v32 = vpop.f32.mrb[50].mxu1  ;;  %5282 = vmatprep.mubr.bf16.mxu1 %v4179_v10  ;;  %v7299_v10 = vld [vmem:[#allocation11 + $0x390] ss:$8 sps:$4 sm:$0xff]   ;;  %v7304_v31 = vld [vmem:[#allocation11 + $0x3a4] ss:$8 sps:$4 sm:$0xff]  }
 0x433   : > { %v6641_v39 = vadd.f32 %v3985_v47, %v8484_v26  ;;  %v6610_v13 = vadd.f32 %v3761_v32, %v8475_v52  ;;  %v3987_v21 = vpop.f32.mrb[146].mxu0  ;;  %v3763_v38 = vpop.f32.mrb[51].mxu1  ;;  %5283 = vmatmul.mubr.bf16.gmra.mrb[76].mxu1 %v4178_v46  ;;  %v4090_v42 = vmax.f32 %v6608_v27, 0.0 }
 0x434   : > { %v6642_v29 = vadd.f32 %v3987_v21, %v8478_v44  ;;  %v6611_v45 = vadd.f32 %v3763_v38, %v8481_v40  ;;  %v3989_v35 = vpop.f32.mrb[147].mxu0  ;;  %5346 = vmatpush1.bf16.msra.mxu1 %v7290_v12  ;;  %v4092_v50 = vmax.f32 %v6640_v19, 0.0  ;;  %v4091_v63 = vmax.f32 %v6609_v33, 0.0 }
 0x435   : > { %v4098_v54 = vmax.f32 %v6610_v13, 0.0  ;;  %v6643_v20 = vadd.f32 %v3989_v35, %v8484_v26  ;;  %5347 = vmatprep.subr.bf16.mxu1 %v7295_v18  ;;  %v4093_v56 = vmax.f32 %v6641_v39, 0.0 }
 0x436   : > { %v4100_v28 = vmax.f32 %v6642_v29, 0.0  ;;  %v4099_v41 = vmax.f32 %v6611_v45, 0.0  ;;  %v7302_v29 = vld [vmem:[#allocation11 + $0x3a0] ss:$8 sps:$4 sm:$0xff]  }
 0x437   : > { %v4186_v48 = vpack.c.bf16 %v4098_v54, %v4090_v42  ;;  %v4101_v6 = vmax.f32 %v6643_v20, 0.0  ;;  %v7307_v54 = vld [vmem:[#allocation11 + $0x3b4] ss:$8 sps:$4 sm:$0xff]  }
 0x438   : > { %v8585_v53 = vpack.c.bf16 %v4100_v28, %v4092_v50  ;;  %v4187_v36 = vpack.c.bf16 %v4099_v41, %v4091_v63  ;;  %v3767_v58 = vpop.f32.mrb[52].mxu1  ;;  %5348 = vmatpush1.bf16.msra.mxu1 %v7293_v17 }
 0x439   : > { %v8587_v15 = vpack.c.bf16 %v4101_v6, %v4093_v56  ;;  %v6612_v1 = vadd.f32 %v3767_v58, %v8475_v52  ;;  %v3993_v51 = vpop.f32.mrb[148].mxu0  ;;  %v3769_v8 = vpop.f32.mrb[53].mxu1  ;;  %5349 = vmatprep.subr.bf16.mxu1 %v7298_v11 }
 0x43a   : > { %v6644_v9 = vadd.f32 %v3993_v51, %v8478_v44  ;;  %v6613_v30 = vadd.f32 %v3769_v8, %v8481_v40  ;;  %v3995_v60 = vpop.f32.mrb[149].mxu0  ;;  %v3771_v57 = vpop.f32.mrb[54].mxu1  ;;  %5292 = vmatprep.mubr.bf16.mxu1 %v4187_v36 }
 0x43b   : > { %v6645_v2 = vadd.f32 %v3995_v60, %v8484_v26  ;;  %v6614_v61 = vadd.f32 %v3771_v57, %v8475_v52  ;;  %v3997_v16 = vpop.f32.mrb[150].mxu0  ;;  %v3773_v37 = vpop.f32.mrb[55].mxu1  ;;  %5293 = vmatmul.mubr.bf16.gmra.mrb[80].mxu1 %v4186_v48  ;;  %v4106_v59 = vmax.f32 %v6612_v1, 0.0 }
 0x43c   : > { %v6646_v14 = vadd.f32 %v3997_v16, %v8478_v44  ;;  %v6615_v46 = vadd.f32 %v3773_v37, %v8481_v40  ;;  %v3999_v43 = vpop.f32.mrb[151].mxu0  ;;  %5350 = vmatpush1.bf16.msra.mxu1 %v7296_v0  ;;  %v4108_v34 = vmax.f32 %v6644_v9, 0.0  ;;  %v4107_v18 = vmax.f32 %v6613_v30, 0.0  ;;  %v7305_v0 = vld [vmem:[#allocation11 + $0x3b0] ss:$8 sps:$4 sm:$0xff]  }
 0x43d   : > { %v4114_v12 = vmax.f32 %v6614_v61, 0.0  ;;  %v6647_v27 = vadd.f32 %v3999_v43, %v8484_v26  ;;  %5351 = vmatprep.subr.bf16.mxu1 %v7301_v3  ;;  %v4109_v47 = vmax.f32 %v6645_v2, 0.0  ;;  %v7310_v3 = vld [vmem:[#allocation11 + $0x3c4] ss:$8 sps:$4 sm:$0xff]   ;;  %v7308_v43 = vld [vmem:[#allocation11 + $0x3c0] ss:$8 sps:$4 sm:$0xff]  }
 0x43e   : > { %v4116_v19 = vmax.f32 %v6646_v14, 0.0  ;;  %v4115_v33 = vmax.f32 %v6615_v46, 0.0 }
 0x43f   : > { %v4194_v32 = vpack.c.bf16 %v4114_v12, %v4106_v59  ;;  %v4117_v39 = vmax.f32 %v6647_v27, 0.0 }
 0x440   : > { %v8597_v13 = vpack.c.bf16 %v4116_v19, %v4108_v34  ;;  %v4195_v21 = vpack.c.bf16 %v4115_v33, %v4107_v18  ;;  %v3777_v38 = vpop.f32.mrb[56].mxu1  ;;  %5352 = vmatpush1.bf16.msra.mxu1 %v7299_v10 }
 0x441   : > { %v8599_v45 = vpack.c.bf16 %v4117_v39, %v4109_v47  ;;  %v6616_v35 = vadd.f32 %v3777_v38, %v8475_v52  ;;  %v4003_v17 = vpop.f32.mrb[152].mxu0  ;;  %v3779_v42 = vpop.f32.mrb[57].mxu1  ;;  %5353 = vmatprep.subr.bf16.mxu1 %v7304_v31  ;;  %v7313_v31 = vld [vmem:[#allocation11 + $0x3d4] ss:$8 sps:$4 sm:$0xff]  }
 0x442   : > { %v6648_v20 = vadd.f32 %v4003_v17, %v8478_v44  ;;  %v6617_v11 = vadd.f32 %v3779_v42, %v8481_v40  ;;  %v4005_v50 = vpop.f32.mrb[153].mxu0  ;;  %v3781_v63 = vpop.f32.mrb[58].mxu1  ;;  %5302 = vmatprep.mubr.bf16.mxu1 %v4195_v21  ;;  %v7311_v17 = vld [vmem:[#allocation11 + $0x3d0] ss:$8 sps:$4 sm:$0xff]  }
 0x443   : > { %v6649_v28 = vadd.f32 %v4005_v50, %v8484_v26  ;;  %v6618_v41 = vadd.f32 %v3781_v63, %v8475_v52  ;;  %v4007_v56 = vpop.f32.mrb[154].mxu0  ;;  %v3783_v48 = vpop.f32.mrb[59].mxu1  ;;  %5303 = vmatmul.mubr.bf16.gmra.mrb[84].mxu1 %v4194_v32  ;;  %v4122_v1 = vmax.f32 %v6616_v35, 0.0 }
 0x444   : > { %v6650_v6 = vadd.f32 %v4007_v56, %v8478_v44  ;;  %v6619_v36 = vadd.f32 %v3783_v48, %v8481_v40  ;;  %v4009_v58 = vpop.f32.mrb[155].mxu0  ;;  %5354 = vmatpush1.bf16.msra.mxu1 %v7302_v29  ;;  %v4124_v9 = vmax.f32 %v6648_v20, 0.0  ;;  %v4123_v30 = vmax.f32 %v6617_v11, 0.0  ;;  %v7316_v11 = vld [vmem:[#allocation11 + $0x3e4] ss:$8 sps:$4 sm:$0xff]  }
 0x445   : > { %v4130_v51 = vmax.f32 %v6618_v41, 0.0  ;;  %v6651_v8 = vadd.f32 %v4009_v58, %v8484_v26  ;;  %5355 = vmatprep.subr.bf16.mxu1 %v7307_v54  ;;  %v4125_v2 = vmax.f32 %v6649_v28, 0.0  ;;  %v7319_v58 = vld [vmem:[#allocation11 + $0x3f4] ss:$8 sps:$4 sm:$0xff]  }
 0x446   : > { %v4132_v60 = vmax.f32 %v6650_v6, 0.0  ;;  %v4131_v57 = vmax.f32 %v6619_v36, 0.0 }
 0x447   : > { %v4202_v61 = vpack.c.bf16 %v4130_v51, %v4122_v1  ;;  %v4133_v16 = vmax.f32 %v6651_v8, 0.0 }
 0x448   : > { %v8609_v37 = vpack.c.bf16 %v4132_v60, %v4124_v9  ;;  %v4203_v14 = vpack.c.bf16 %v4131_v57, %v4123_v30  ;;  %v3787_v46 = vpop.f32.mrb[60].mxu1  ;;  %5356 = vmatpush1.bf16.msra.mxu1 %v7305_v0 }
 0x449   : > { %v4205_v10 = vpack.c.bf16 %v4133_v16, %v4125_v2  ;;  %v6620_v59 = vadd.f32 %v3787_v46, %v8475_v52  ;;  %v4013_v12 = vpop.f32.mrb[156].mxu0  ;;  %v3789_v27 = vpop.f32.mrb[61].mxu1  ;;  %5357 = vmatprep.subr.bf16.mxu1 %v7310_v3 }
 0x44a   : > { %v6652_v34 = vadd.f32 %v4013_v12, %v8478_v44  ;;  %v6621_v18 = vadd.f32 %v3789_v27, %v8481_v40  ;;  %v4015_v19 = vpop.f32.mrb[157].mxu0  ;;  %v3791_v33 = vpop.f32.mrb[62].mxu1  ;;  %5312 = vmatprep.mubr.bf16.mxu1 %v4203_v14 }
 0x44b   : > { %v6653_v47 = vadd.f32 %v4015_v19, %v8484_v26  ;;  %v6622_v32 = vadd.f32 %v3791_v33, %v8475_v52  ;;  %v4017_v39 = vpop.f32.mrb[158].mxu0  ;;  %v3793_v21 = vpop.f32.mrb[63].mxu1  ;;  %5313 = vmatmul.mubr.bf16.gmra.mrb[88].mxu1 %v4202_v61  ;;  %v4138_v42 = vmax.f32 %v6620_v59, 0.0 }
 0x44c   : > { %v6654_v38 = vadd.f32 %v4017_v39, %v8478_v44  ;;  %v6623_v29 = vadd.f32 %v3793_v21, %v8481_v40  ;;  %v4019_v35 = vpop.f32.mrb[159].mxu0  ;;  %5358 = vmatpush1.bf16.msra.mxu1 %v7308_v43  ;;  %v4140_v50 = vmax.f32 %v6652_v34, 0.0  ;;  %v4139_v63 = vmax.f32 %v6621_v18, 0.0  ;;  %v7314_v40 = vld [vmem:[#allocation11 + $0x3e0] ss:$8 sps:$4 sm:$0xff]  }
 0x44d   : > { %v4146_v54 = vmax.f32 %v6622_v32, 0.0  ;;  %v6655_v20 = vadd.f32 %v4019_v35, %v8484_v26  ;;  %5359 = vmatprep.subr.bf16.mxu1 %v7313_v31  ;;  %v4141_v41 = vmax.f32 %v6653_v47, 0.0  ;;  %v7317_v26 = vld [vmem:[#allocation11 + $0x3f0] ss:$8 sps:$4 sm:$0xff]  }
 0x44e   : > { %v4148_v28 = vmax.f32 %v6654_v38, 0.0  ;;  %v4147_v52 = vmax.f32 %v6623_v29, 0.0 }
 0x44f   : > { %v4210_v56 = vpack.c.bf16 %v4146_v54, %v4138_v42  ;;  %v4149_v48 = vmax.f32 %v6655_v20, 0.0 }
 0x450   : > { %v4212_v6 = vpack.c.bf16 %v4148_v28, %v4140_v50  ;;  %v4211_v44 = vpack.c.bf16 %v4147_v52, %v4139_v63  ;;  %5360 = vmatpush1.bf16.msra.mxu1 %v7311_v17 }
 0x451   : > { %v4213_v36 = vpack.c.bf16 %v4149_v48, %v4141_v41  ;;  %5361 = vmatprep.subr.bf16.mxu1 %v7316_v11 }
 0x452   : > { %5322 = vmatprep.mubr.bf16.mxu1 %v4211_v44 }
 0x453   : > { %5323 = vmatmul.mubr.bf16.gmra.mrb[92].mxu1 %v4210_v56 }
 0x454   : > { %5362 = vmatpush1.bf16.msra.mxu1 %v7314_v40  ;;  %5365 = vmatprep.mubr.bf16.mxu1 %v8512_v22  ;;  %v7335_v22 = vld [vmem:[%s8766_s9 + $0x38] sm:$0xff]  }
 0x455   : > { %5363 = vmatprep.subr.bf16.mxu1 %v7319_v58 }
 0x458   : > { %5364 = vmatpush1.bf16.msra.mxu1 %v7317_v26 }
 0x45b   : > { %5366 = vmatmul.mubr.bf16.vlgmr.msra.gmra.mrb[64].mxu1 %v8510_v5  ;;  %v7334_v5 = vld [vmem:[%s8766_s9 + $0x78] sm:$0xff]  }
 0x45c   : > { %5375 = vmatprep.mubr.bf16.mxu1 %v8536_v25  ;;  %6449 = vmatprep.subr.bf16.mxu0 %v7334_v5 }
 0x45d   : > { %6450 = vmatpush3.bf16.msra.mxu0 %v7335_v22 }
 0x463   : > { %5376 = vmatmul.mubr.bf16.gmra.mrb[68].mxu1 %v8534_v62  ;;  %v4342_v62 = vld [vmem:[#allocation12] sm:$0x3] }
 0x464   : > { %5385 = vmatprep.mubr.bf16.mxu1 %v8560_v23  ;;  %v8639_v25 = vrot.slane %v4342_v62, %v7921_v49 }
 0x46b   : > { %5386 = vmatmul.mubr.bf16.gmra.mrb[72].mxu1 %v8558_v55  ;;  %v8642_v55 = vrot.slane %v4342_v62, %v8810_v7 }
 0x46c   : > { %5395 = vmatprep.mubr.bf16.mxu1 %v8575_v4 }
 0x473   : > { %5396 = vmatmul.mubr.bf16.gmra.mrb[76].mxu1 %v8573_v24 }
 0x474   : > { %5405 = vmatprep.mubr.bf16.mxu1 %v8587_v15 }
 0x47b   : > { %5406 = vmatmul.mubr.bf16.gmra.mrb[80].mxu1 %v8585_v53 }
 0x47c   : > { %5415 = vmatprep.mubr.bf16.mxu1 %v8599_v45 }
 0x483   : > { %5416 = vmatmul.mubr.bf16.gmra.mrb[84].mxu1 %v8597_v13 }
 0x484   : > { %5425 = vmatprep.mubr.bf16.mxu1 %v4205_v10 }
 0x48b   : > { %5426 = vmatmul.mubr.bf16.gmra.mrb[88].mxu1 %v8609_v37 }
 0x48c   : > { %5435 = vmatprep.mubr.bf16.mxu1 %v4213_v36 }
 0x493   : > { %5436 = vmatmul.mubr.bf16.gmra.mrb[92].mxu1 %v4212_v6 }
 0x52e   : > { %v5367_v23 = vpop.f32.mrb[64].mxu1 }
 0x52f   : > { %v6656_v24 = vadd.f32 %v5367_v23, %v8639_v25  ;;  %v5369_v4 = vpop.f32.mrb[65].mxu1 }
 0x530   : > { %v6657_v53 = vadd.f32 %v5369_v4, %v8642_v55  ;;  %v5371_v15 = vpop.f32.mrb[66].mxu1 }
 0x531   : > { %v6658_v13 = vadd.f32 %v5371_v15, %v8639_v25  ;;  %v5373_v45 = vpop.f32.mrb[67].mxu1  ;;  %v5446_v1 = vmax.f32 %v6656_v24, 0.0 }
 0x532   : > { %v6659_v0 = vadd.f32 %v5373_v45, %v8642_v55  ;;  %v5447_v8 = vmax.f32 %v6657_v53, 0.0 }
 0x533   : > { %v5448_v51 = vmax.f32 %v6658_v13, 0.0 }
 0x534   : > { %v5449_v3 = vmax.f32 %v6659_v0, 0.0 }
 0x535   : > { %v5478_v9 = vpack.c.bf16 %v5448_v51, %v5446_v1 }
 0x536   : > { %v5479_v30 = vpack.c.bf16 %v5449_v3, %v5447_v8  ;;  %v5377_v7 = vpop.f32.mrb[68].mxu1 }
 0x537   : > { %v6660_v60 = vadd.f32 %v5377_v7, %v8639_v25  ;;  %v5379_v57 = vpop.f32.mrb[69].mxu1 }
 0x538   : > { %v6661_v2 = vadd.f32 %v5379_v57, %v8642_v55  ;;  %v5381_v61 = vpop.f32.mrb[70].mxu1  ;;  %5661 = vmatprep.mubr.bf16.mxu0 %v5479_v30 }
 0x539   : > { %v6662_v16 = vadd.f32 %v5381_v61, %v8639_v25  ;;  %v5383_v37 = vpop.f32.mrb[71].mxu1  ;;  %5662 = vmatmul.mubr.bf16.vlgmr.msra.gmra.mrb[160].mxu0 %v5478_v9  ;;  %v5450_v46 = vmax.f32 %v6660_v60, 0.0 }
 0x53a   : > { %v6663_v14 = vadd.f32 %v5383_v37, %v8642_v55  ;;  %v5451_v10 = vmax.f32 %v6661_v2, 0.0 }
 0x53b   : > { %v5452_v43 = vmax.f32 %v6662_v16, 0.0 }
 0x53c   : > { %v5453_v59 = vmax.f32 %v6663_v14, 0.0 }
 0x53d   : > { %v5480_v12 = vpack.c.bf16 %v5452_v43, %v5450_v46 }
 0x53e   : > { %v5481_v27 = vpack.c.bf16 %v5453_v59, %v5451_v10  ;;  %v5387_v31 = vpop.f32.mrb[72].mxu1 }
 0x53f   : > { %v6664_v34 = vadd.f32 %v5387_v31, %v8639_v25  ;;  %v5389_v18 = vpop.f32.mrb[73].mxu1 }
 0x540   : > { %v6665_v19 = vadd.f32 %v5389_v18, %v8642_v55  ;;  %v5391_v33 = vpop.f32.mrb[74].mxu1  ;;  %5669 = vmatprep.mubr.bf16.mxu0 %v5481_v27 }
 0x541   : > { %v6666_v47 = vadd.f32 %v5391_v33, %v8639_v25  ;;  %v5393_v32 = vpop.f32.mrb[75].mxu1  ;;  %5670 = vmatmul.mubr.bf16.gmra.mrb[164].mxu0 %v5480_v12  ;;  %v5454_v21 = vmax.f32 %v6664_v34, 0.0 }
 0x542   : > { %v6667_v39 = vadd.f32 %v5393_v32, %v8642_v55  ;;  %v5455_v29 = vmax.f32 %v6665_v19, 0.0 }
 0x543   : > { %v5456_v38 = vmax.f32 %v6666_v47, 0.0 }
 0x544   : > { %v5457_v35 = vmax.f32 %v6667_v39, 0.0 }
 0x545   : > { %v5482_v17 = vpack.c.bf16 %v5456_v38, %v5454_v21 }
 0x546   : > { %v5483_v42 = vpack.c.bf16 %v5457_v35, %v5455_v29  ;;  %v5397_v54 = vpop.f32.mrb[76].mxu1 }
 0x547   : > { %v6668_v20 = vadd.f32 %v5397_v54, %v8639_v25  ;;  %v5399_v11 = vpop.f32.mrb[77].mxu1 }
 0x548   : > { %v6669_v50 = vadd.f32 %v5399_v11, %v8642_v55  ;;  %v5401_v63 = vpop.f32.mrb[78].mxu1  ;;  %5677 = vmatprep.mubr.bf16.mxu0 %v5483_v42 }
 0x549   : > { %v6670_v28 = vadd.f32 %v5401_v63, %v8639_v25  ;;  %v5403_v52 = vpop.f32.mrb[79].mxu1  ;;  %5678 = vmatmul.mubr.bf16.gmra.mrb[168].mxu0 %v5482_v17  ;;  %v5458_v56 = vmax.f32 %v6668_v20, 0.0 }
 0x54a   : > { %v6671_v41 = vadd.f32 %v5403_v52, %v8642_v55  ;;  %v5459_v6 = vmax.f32 %v6669_v50, 0.0 }
 0x54b   : > { %v5460_v48 = vmax.f32 %v6670_v28, 0.0 }
 0x54c   : > { %v5461_v44 = vmax.f32 %v6671_v41, 0.0 }
 0x54d   : > { %v5484_v40 = vpack.c.bf16 %v5460_v48, %v5458_v56  ;;  %v7597_v48 = vmov 0.0  }
 0x54e   : > { %v5485_v36 = vpack.c.bf16 %v5461_v44, %v5459_v6  ;;  %v5407_v58 = vpop.f32.mrb[80].mxu1  ;;  %6508 = vmatprep.subr.bf16.mxu0 %v7597_v48  ;;  %v5751_v6 = vld [vmem:[#allocation2] sm:$0x1] }
 0x54f   : > { %v6672_v26 = vadd.f32 %v5407_v58, %v8639_v25  ;;  %v5409_v5 = vpop.f32.mrb[81].mxu1  ;;  %5754 = vperm.xlu0 %7021, %v5751_v6  }
 0x550   : > { %v6673_v22 = vadd.f32 %v5409_v5, %v8642_v55  ;;  %v5411_v62 = vpop.f32.mrb[82].mxu1  ;;  %5685 = vmatprep.mubr.bf16.mxu0 %v5485_v36 }
 0x551   : > { %v6674_v23 = vadd.f32 %v5411_v62, %v8639_v25  ;;  %v5413_v24 = vpop.f32.mrb[83].mxu1  ;;  %5686 = vmatmul.mubr.bf16.gmra.mrb[172].mxu0 %v5484_v40  ;;  %v5462_v53 = vmax.f32 %v6672_v26, 0.0 }
 0x552   : > { %v6675_v4 = vadd.f32 %v5413_v24, %v8642_v55  ;;  %v5463_v13 = vmax.f32 %v6673_v22, 0.0 }
 0x553   : > { %v5464_v15 = vmax.f32 %v6674_v23, 0.0 }
 0x554   : > { %v5465_v45 = vmax.f32 %v6675_v4, 0.0 }
 0x555   : > { %v5486_v0 = vpack.c.bf16 %v5464_v15, %v5462_v53 }
 0x556   : > { %v5487_v1 = vpack.c.bf16 %v5465_v45, %v5463_v13  ;;  %v5417_v51 = vpop.f32.mrb[84].mxu1 }
 0x557   : > { %v6676_v8 = vadd.f32 %v5417_v51, %v8639_v25  ;;  %v5419_v3 = vpop.f32.mrb[85].mxu1 }
 0x558   : > { %v6677_v9 = vadd.f32 %v5419_v3, %v8642_v55  ;;  %v5421_v30 = vpop.f32.mrb[86].mxu1  ;;  %5693 = vmatprep.mubr.bf16.mxu0 %v5487_v1 }
 0x559   : > { %v6678_v7 = vadd.f32 %v5421_v30, %v8639_v25  ;;  %v5423_v60 = vpop.f32.mrb[87].mxu1  ;;  %5694 = vmatmul.mubr.bf16.gmra.mrb[176].mxu0 %v5486_v0  ;;  %v5466_v2 = vmax.f32 %v6676_v8, 0.0 }
 0x55a   : > { %v6679_v57 = vadd.f32 %v5423_v60, %v8642_v55  ;;  %v5467_v16 = vmax.f32 %v6677_v9, 0.0 }
 0x55b   : > { %v5468_v61 = vmax.f32 %v6678_v7, 0.0 }
 0x55c   : > { %v5469_v37 = vmax.f32 %v6679_v57, 0.0 }
 0x55d   : > { %v5488_v14 = vpack.c.bf16 %v5468_v61, %v5466_v2 }
 0x55e   : > { %v5489_v46 = vpack.c.bf16 %v5469_v37, %v5467_v16  ;;  %v5427_v43 = vpop.f32.mrb[88].mxu1 }
 0x55f   : > { %v6680_v10 = vadd.f32 %v5427_v43, %v8639_v25  ;;  %v5429_v59 = vpop.f32.mrb[89].mxu1 }
 0x560   : > { %v6681_v12 = vadd.f32 %v5429_v59, %v8642_v55  ;;  %v5431_v27 = vpop.f32.mrb[90].mxu1  ;;  %5701 = vmatprep.mubr.bf16.mxu0 %v5489_v46 }
 0x561   : > { %v6682_v31 = vadd.f32 %v5431_v27, %v8639_v25  ;;  %v5433_v34 = vpop.f32.mrb[91].mxu1  ;;  %5702 = vmatmul.mubr.bf16.gmra.mrb[180].mxu0 %v5488_v14  ;;  %v5470_v19 = vmax.f32 %v6680_v10, 0.0 }
 0x562   : > { %v6683_v18 = vadd.f32 %v5433_v34, %v8642_v55  ;;  %v5471_v47 = vmax.f32 %v6681_v12, 0.0 }
 0x563   : > { %v5472_v33 = vmax.f32 %v6682_v31, 0.0 }
 0x564   : > { %v5473_v32 = vmax.f32 %v6683_v18, 0.0 }
 0x565   : > { %v5490_v39 = vpack.c.bf16 %v5472_v33, %v5470_v19 }
 0x566   : > { %v5491_v21 = vpack.c.bf16 %v5473_v32, %v5471_v47  ;;  %v5437_v38 = vpop.f32.mrb[92].mxu1 }
 0x567   : > { %v6684_v29 = vadd.f32 %v5437_v38, %v8639_v25  ;;  %v5439_v35 = vpop.f32.mrb[93].mxu1 }
 0x568   : > { %v6685_v17 = vadd.f32 %v5439_v35, %v8642_v55  ;;  %v5441_v42 = vpop.f32.mrb[94].mxu1  ;;  %5709 = vmatprep.mubr.bf16.mxu0 %v5491_v21 }
 0x569   : > { %v6686_v54 = vadd.f32 %v5441_v42, %v8639_v25  ;;  %v5443_v20 = vpop.f32.mrb[95].mxu1  ;;  %5710 = vmatmul.mubr.bf16.gmra.mrb[184].mxu0 %v5490_v39  ;;  %v5474_v50 = vmax.f32 %v6684_v29, 0.0 }
 0x56a   : > { %v6687_v11 = vadd.f32 %v5443_v20, %v8642_v55  ;;  %v5475_v28 = vmax.f32 %v6685_v17, 0.0  ;;  %v8681_v55 = vld [vmem:[%s8767_s10] ss:$0 sm:$0xff] }
 0x56b   : > { %v5476_v63 = vmax.f32 %v6686_v54, 0.0 }
 0x56c   : > { %v5477_v52 = vmax.f32 %v6687_v11, 0.0 }
 0x56d   : > { %v5492_v41 = vpack.c.bf16 %v5476_v63, %v5474_v50 }
 0x56e   : > { %v5493_v56 = vpack.c.bf16 %v5477_v52, %v5475_v28 }
 0x570   : > { %5717 = vmatprep.mubr.bf16.mxu0 %v5493_v56 }
 0x571   : > { %5718 = vmatmul.mubr.bf16.gmra.mrb[188].mxu0 %v5492_v41 }
 0x572   : > { %6524 = vmatprep.mubr.msk.bf16.mxu0 %vm7598_vm2, %v7597_v48 }
 0x60c   : > { %v6451_v25 = vpop.f32.mrb[160].mxu0 }
 0x60d   : > { %v6452_v44 = vpop.f32.mrb[161].mxu0 }
 0x60e   : > { %v6453_v40 = vadd.f32 %v6452_v44, %v6451_v25  ;;  %v6454_v36 = vpop.f32.mrb[162].mxu0 }
 0x60f   : > { %v6455_v58 = vpop.f32.mrb[163].mxu0 }
 0x610   : > { %v5664_v26 = vadd.f32 %v6453_v40, %v8681_v55  ;;  %v6456_v5 = vadd.f32 %v6455_v58, %v6454_v36 }
 0x612   : > { %v5667_v22 = vadd.f32 %v6456_v5, %v8681_v55  ;;  %v5726_v62 = vmax.f32 %v5664_v26, 0.0 }
 0x614   : > { %v5727_v23 = vmax.f32 %v5667_v22, 0.0  ;;  %v6457_v24 = vpop.f32.mrb[164].mxu0 }
 0x615   : > { %v6458_v4 = vpop.f32.mrb[165].mxu0 }
 0x616   : > { %v5743_v53 = vpack.c.bf16 %v5727_v23, %v5726_v62  ;;  %v6459_v15 = vadd.f32 %v6458_v4, %v6457_v24  ;;  %v6460_v13 = vpop.f32.mrb[166].mxu0 }
 0x617   : > { %v6461_v45 = vpop.f32.mrb[167].mxu0 }
 0x618   : > { %v5672_v0 = vadd.f32 %v6459_v15, %v8681_v55  ;;  %v6462_v1 = vadd.f32 %v6461_v45, %v6460_v13  ;;  %6509 = vmatpush3.bf16.xpose.msra.mxu0 %v5743_v53 }
 0x619   : > { %6510 = vmatprep.subr.bf16.mxu0 %v7597_v48 }
 0x61a   : > { %v5675_v51 = vadd.f32 %v6462_v1, %v8681_v55  ;;  %v5728_v8 = vmax.f32 %v5672_v0, 0.0 }
 0x61c   : > { %v5729_v3 = vmax.f32 %v5675_v51, 0.0  ;;  %v6463_v9 = vpop.f32.mrb[168].mxu0 }
 0x61d   : > { %v6464_v30 = vpop.f32.mrb[169].mxu0 }
 0x61e   : > { %v5744_v7 = vpack.c.bf16 %v5729_v3, %v5728_v8  ;;  %v6465_v60 = vadd.f32 %v6464_v30, %v6463_v9  ;;  %v6466_v57 = vpop.f32.mrb[170].mxu0 }
 0x61f   : > { %v6467_v2 = vpop.f32.mrb[171].mxu0 }
 0x620   : > { %v5680_v61 = vadd.f32 %v6465_v60, %v8681_v55  ;;  %v6468_v16 = vadd.f32 %v6467_v2, %v6466_v57  ;;  %6511 = vmatpush3.bf16.xpose.msra.mxu0 %v5744_v7 }
 0x621   : > { %6512 = vmatprep.subr.bf16.mxu0 %v7597_v48 }
 0x622   : > { %v5683_v37 = vadd.f32 %v6468_v16, %v8681_v55  ;;  %v5730_v14 = vmax.f32 %v5680_v61, 0.0  ;;  %v5742_v61 = vld [vmem:[%s8768_s11] sm:$0x1]  ;;  %v5755_v16 = vpop.permute.xlu0 %5754 }
 0x624   : > { %v5731_v46 = vmax.f32 %v5683_v37, 0.0  ;;  %v6469_v43 = vpop.f32.mrb[172].mxu0  ;;  %v5760_v37 = vrot.slane %v5755_v16, %v7921_v49 }
 0x625   : > { %v6470_v10 = vpop.f32.mrb[173].mxu0 }
 0x626   : > { %v5745_v59 = vpack.c.bf16 %v5731_v46, %v5730_v14  ;;  %v6471_v12 = vadd.f32 %v6470_v10, %v6469_v43  ;;  %v6472_v27 = vpop.f32.mrb[174].mxu0 }
 0x627   : > { %v6473_v31 = vpop.f32.mrb[175].mxu0 }
 0x628   : > { %v5688_v34 = vadd.f32 %v6471_v12, %v8681_v55  ;;  %v6474_v18 = vadd.f32 %v6473_v31, %v6472_v27  ;;  %6513 = vmatpush3.bf16.xpose.msra.mxu0 %v5745_v59 }
 0x629   : > { %6514 = vmatprep.subr.bf16.mxu0 %v7597_v48 }
 0x62a   : > { %v5691_v19 = vadd.f32 %v6474_v18, %v8681_v55  ;;  %v5732_v33 = vmax.f32 %v5688_v34, 0.0 }
 0x62c   : > { %v5733_v47 = vmax.f32 %v5691_v19, 0.0  ;;  %v6475_v32 = vpop.f32.mrb[176].mxu0 }
 0x62d   : > { %v6476_v39 = vpop.f32.mrb[177].mxu0 }
 0x62e   : > { %v5746_v21 = vpack.c.bf16 %v5733_v47, %v5732_v33  ;;  %v6477_v38 = vadd.f32 %v6476_v39, %v6475_v32  ;;  %v6478_v29 = vpop.f32.mrb[178].mxu0 }
 0x62f   : > { %v6479_v35 = vpop.f32.mrb[179].mxu0 }
 0x630   : > { %v5696_v17 = vadd.f32 %v6477_v38, %v8681_v55  ;;  %v6480_v42 = vadd.f32 %v6479_v35, %v6478_v29  ;;  %6515 = vmatpush3.bf16.xpose.msra.mxu0 %v5746_v21 }
 0x631   : > { %6516 = vmatprep.subr.bf16.mxu0 %v7597_v48 }
 0x632   : > { %v5699_v54 = vadd.f32 %v6480_v42, %v8681_v55  ;;  %v5734_v20 = vmax.f32 %v5696_v17, 0.0 }
 0x634   : > { %v5735_v11 = vmax.f32 %v5699_v54, 0.0  ;;  %v6481_v50 = vpop.f32.mrb[180].mxu0 }
 0x635   : > { %v6482_v63 = vpop.f32.mrb[181].mxu0 }
 0x636   : > { %v5747_v28 = vpack.c.bf16 %v5735_v11, %v5734_v20  ;;  %v6483_v52 = vadd.f32 %v6482_v63, %v6481_v50  ;;  %v6484_v41 = vpop.f32.mrb[182].mxu0 }
 0x637   : > { %v6485_v56 = vpop.f32.mrb[183].mxu0 }
 0x638   : > { %v5704_v6 = vadd.f32 %v6483_v52, %v8681_v55  ;;  %v6486_v25 = vadd.f32 %v6485_v56, %v6484_v41  ;;  %6517 = vmatpush3.bf16.xpose.msra.mxu0 %v5747_v28 }
 0x639   : > { %6518 = vmatprep.subr.bf16.mxu0 %v7597_v48 }
 0x63a   : > { %v5707_v44 = vadd.f32 %v6486_v25, %v8681_v55  ;;  %v5736_v40 = vmax.f32 %v5704_v6, 0.0 }
 0x63c   : > { %v5737_v36 = vmax.f32 %v5707_v44, 0.0  ;;  %v6487_v58 = vpop.f32.mrb[184].mxu0 }
 0x63d   : > { %v6488_v26 = vpop.f32.mrb[185].mxu0 }
 0x63e   : > { %v5748_v5 = vpack.c.bf16 %v5737_v36, %v5736_v40  ;;  %v6489_v22 = vadd.f32 %v6488_v26, %v6487_v58  ;;  %v6490_v62 = vpop.f32.mrb[186].mxu0 }
 0x63f   : > { %v6491_v23 = vpop.f32.mrb[187].mxu0 }
 0x640   : > { %v5712_v24 = vadd.f32 %v6489_v22, %v8681_v55  ;;  %v6492_v4 = vadd.f32 %v6491_v23, %v6490_v62  ;;  %6519 = vmatpush3.bf16.xpose.msra.mxu0 %v5748_v5 }
 0x641   : > { %6520 = vmatprep.subr.bf16.mxu0 %v7597_v48 }
 0x642   : > { %v5715_v53 = vadd.f32 %v6492_v4, %v8681_v55  ;;  %v5738_v15 = vmax.f32 %v5712_v24, 0.0 }
 0x644   : > { %v5739_v13 = vmax.f32 %v5715_v53, 0.0  ;;  %v6493_v45 = vpop.f32.mrb[188].mxu0 }
 0x645   : > { %v6494_v0 = vpop.f32.mrb[189].mxu0 }
 0x646   : > { %v5749_v1 = vpack.c.bf16 %v5739_v13, %v5738_v15  ;;  %v6495_v51 = vadd.f32 %v6494_v0, %v6493_v45  ;;  %v6496_v8 = vpop.f32.mrb[190].mxu0 }
 0x647   : > { %v6497_v3 = vpop.f32.mrb[191].mxu0 }
 0x648   : > { %v5720_v9 = vadd.f32 %v6495_v51, %v8681_v55  ;;  %v6498_v30 = vadd.f32 %v6497_v3, %v6496_v8  ;;  %6521 = vmatpush3.bf16.xpose.msra.mxu0 %v5749_v1 }
 0x649   : > { %6522 = vmatprep.subr.bf16.mxu0 %v7597_v48 }
 0x64a   : > { %v5723_v7 = vadd.f32 %v6498_v30, %v8681_v55  ;;  %v5740_v60 = vmax.f32 %v5720_v9, 0.0 }
 0x64c   : > { %v5741_v57 = vmax.f32 %v5723_v7, 0.0 }
 0x64e   : > { %v5750_v2 = vpack.c.bf16 %v5741_v57, %v5740_v60 }
 0x650   : > { %6523 = vmatpush3.bf16.xpose.msra.mxu0 %v5750_v2 }
 0x657   : > { %6525 = vmatmul.mubr.bf16.vlgmr.msra.gmra.mrb[192].mxu0 %v5742_v61 }
 0x72a   : > { %v5795_v48 = vpop.f32.mrb[192].mxu0 }
 0x72b   : > { %v5796_v14 = vadd.f32 %v5795_v48, %v5760_v37  ;;  %v6526_v46 = vpop.f32.mrb[193].mxu0 }
 0x72c   : > { %v5798_v55 = vpop.f32.mrb[194].mxu0 }
 0x72d   : > { %5801 = vst [vmem:[%s529_s14] sm:$0x1] %v5796_v14  ;;  %v6527_v43 = vpop.f32.mrb[195].mxu0 }
 0x72e   : > { %7517 = shalt.err (!%p7514_p6)
}
 0x72f   : > { %s7518_s21 = scalar_lea.hbm %s8715_s24, 16  ;;  %s7522_s29 = scalar_lea.hbm %s8812_s18, 32 }
 0x730   : > { %p7519_p9 = scmp.ne.s32.totalorder %s8715_s24, %s7518_s21  ;;  %p7523_p1 = scmp.lt.u32.totalorder %s8715_s24, %s8812_s18 }
 0x731   : > { %p7524_p2 = scmp.lt.u32.totalorder %s7522_s29, %s7518_s21  ;;  %p7526_p4 = scmp.lt.u32.totalorder %s7518_s21, %s8715_s24 }
 0x732   : > { %p7520_p10 = pnand %p7519_p9, %p8813_p7 }
 0x733   : > { %p7525_p3 = por %p7524_p2, %p7523_p1 }
 0x734   : > { %p7521_p12 = pneg %p7520_p10 }
 0x735   : > { %p7527_p8 = por %p7526_p4, %p7525_p3 }
 0x737   : > { %p7528_p11 = pnand %p7527_p8, %p7521_p12 }
 0x739   : > { %7531 = shalt.err (!%p7528_p11)
}
 0x73a   : > { %6936 = dma.vmem_to_hbm [thread:$0]  (%p8813_p7), %s8717_s16, 16, %s8715_s24, %s5803_s22  }
 0x73b PF: > { %s8814_s25 = sld [smem:[#allocation22_spill]]  ;;  %s8815_s14 = sld [smem:[#allocation20_spill]] }
 0x73c   : > { %s8816_s3 = sld [smem:[#allocation25_spill]] }
 0x741   : > { %p6973_p13 = scmp.ge.s32.totalorder %s8814_s25, 2  ;;  %s5827_s23 = sand.u32 1, %s8815_s14  }
 0x742   : > { %p8817_p5 = scmp.ne.s32.totalorder %s8816_s3, 0  ;;  %s5828_s30 = scalar_lea.sflag [#allocation5], %s5827_s23 }
 0x744   : > { %p6958_p0 = pnand %p6973_p13, %p8817_p5 }
 0x746   : > { %7565 = dma.done.wait (!%p6958_p0), %s5828_s30, 16  }
 0x747   : > { %7567 = vsyncadd (!%p6958_p0), %s5828_s30, 4294967280  ;;  %s8818_s30 = sld [smem:[#allocation23_spill]]  ;;  %s8819_s26 = sld [smem:[#allocation21_spill]] }
 0x748   : > { %s8820_s29 = sld [smem:[#allocation24_spill]]  ;;  %s8821_s27 = smov %s7574_s28 }
 0x74d   : > { %p29_p6 = scmp.ge.s32.totalorder %s8818_s30, 4   ;;  %s8822_s28 = smov %s8819_s26 }
 0x74f   :  { %31 = sbr.rel (!%p29_p6) target bundleno = 10 (0xa), region = 132 }
 0x756   :  { %5832 = vsyncpa [#allocation4], 1 }
 0x757   :  { %5834 = vsyncpa [#allocation4 + $0x1], 1 }
 0x758   :  { %5835 = vsyncpa [#allocation7], 1 }
 0x759   :  { %5836 = vsyncpa [#allocation10], 1 }
 0x75a   :  { %5837 = vsyncpa [#allocation13], 1 }
 0x75b   :  { %5838 = vsyncpa [#allocation5], 1 }
 0x75c   :  { %5840 = vsyncpa [#allocation5 + $0x1], 1 }

</bundles_post_ra>
